<compile_context>
chip_gen: v7x
topology: tpu7x:2x2x1
jax: 0.10.0
libtpu: 0.0.40
codegen_flags: <defaults>
</compile_context>

<pallas_src>
import functools
import math

import jax
import jax.numpy as jnp
from jax.experimental import pallas as pl
from jax.experimental.pallas import tpu as pltpu


MATMUL_DTYPE = jnp.bfloat16   # matmul operand dtype; accumulation stays f32


# ----------------------------- in-kernel helpers -----------------------------

def _mm(a, b):
    """2-D matmul on the MXU: bf16 operands, f32 accumulation."""
    return jnp.dot(a.astype(MATMUL_DTYPE), b.astype(MATMUL_DTYPE),
                   preferred_element_type=jnp.float32)


def _bmm(eq, a, b):
    """Turn-batched matmul (single leading batch dim) on the MXU."""
    return jnp.einsum(eq, a.astype(MATMUL_DTYPE), b.astype(MATMUL_DTYPE),
                      preferred_element_type=jnp.float32)


def _layernorm(x, gamma, beta, eps=1e-5):
    mean = jnp.mean(x, axis=-1, keepdims=True)
    var = jnp.mean((x - mean) ** 2, axis=-1, keepdims=True)
    return (x - mean) * jax.lax.rsqrt(var + eps) * gamma + beta


def _softmax_lastdim(x):
    m = jnp.max(x, axis=-1, keepdims=True)
    e = jnp.exp(x - m)
    return e / jnp.sum(e, axis=-1, keepdims=True)   # exact (review correctness note)


def _gelu_exact(x):
    # nn.GELU() default = exact (erf-based) GELU
    return 0.5 * x * (1.0 + jax.lax.erf(x / math.sqrt(2.0)))


# --------------------------- fused whole-stack kernel --------------------------

def saute_fused_kernel(x_ref, mask_ref, onehot_ref, state_ref, *refs,
                       num_heads, cross_heads, turns, seq_len):
    (wq, bq, wk, bk, wv, bv, wo, bo,
     w1, b1, w2, b2, g1, be1, g2, be2,
     wtp, btp, cwq, cbq, cwk, cbk, cwv, cbv, cwo, cbo,
     wg0, wg1, wg2, bg, gn, bn,
     xnew_ref, part_ref) = refs

    TB, L = turns, seq_len
    layer = pl.program_id(1)
    last_layer = pl.num_programs(1) - 1

    # ---- layer-initial speaker embedding (exact f32 one-hot gather) ----
    # TODO(synk): per the module every layer's incoming speaker state is zeros, so
    # s_embed == 0 and cross-attn K/V collapse to biases; the general nonzero-state
    # path is kept so a real carried state could be piped in unchanged.
    state = state_ref[...]                                    # (S, H)
    onehot = onehot_ref[0]                                    # (TB, S)
    s_embed = jnp.dot(onehot, state, preferred_element_type=jnp.float32)   # (TB, H)

    # X carry: the output block stays VMEM-resident across the inner layer axis
    @pl.when(layer == 0)
    def _():
        xnew_ref[...] = x_ref[...]
    x = xnew_ref[0]                                           # (TB*L, H)
    H = x.shape[-1]

    # h_input = X[:, t] + s_embed
    h_in = (x.reshape(TB, L, H) + s_embed[:, None, :]).reshape(TB * L, H)
    h_in_w = h_in.astype(MATMUL_DTYPE)

    # --------- self multi-head attention (custom MHA: SDPA, no mask) ---------
    q = _mm(h_in_w, wq[0]) + bq[0]
    k = _mm(h_in_w, wk[0]) + bk[0]
    v = _mm(h_in_w, wv[0]) + bv[0]
    q3 = q.reshape(TB, L, H)
    k3 = k.reshape(TB, L, H)
    v3 = v.reshape(TB, L, H)
    hd = H // num_heads
    scale = 1.0 / math.sqrt(hd)
    # TODO(synk): at realistic head counts fold heads into the einsum batch dim
    # ('bqhd,bkhd->bhqk') instead of this short unrolled loop.
    ctx_heads = []
    for h in range(num_heads):
        sl = slice(h * hd, (h + 1) * hd)
        scores = _bmm('bqd,bkd->bqk', q3[..., sl], k3[..., sl]) * scale   # (TB,L,L)
        p = _softmax_lastdim(scores)
        ctx_heads.append(_bmm('bqk,bkd->bqd', p, v3[..., sl]))            # (TB,L,hd)
    ctx = jnp.concatenate(ctx_heads, axis=-1).reshape(TB * L, H)
    attn = _mm(ctx, wo[0]) + bo[0]            # ONE full-K output projection

    # norm1(h + attn), FFN(GELU), norm2(h + ffn(h))
    h1 = _layernorm(h_in + attn, g1[0], be1[0])
    ff = _mm(_gelu_exact(_mm(h1, w1[0]) + b1[0]), w2[0]) + b2[0]
    h2 = _layernorm(h1 + ff, g2[0], be2[0])
    # TODO(synk): pad H to a multiple of 128 at realistic sizes so this store is
    # lane-dense (here H=32 -> masked vst).
    xnew_ref[0] = h2

    # --- post-encoder work only feeds speaker_states[-1]: last layer only ---
    @pl.when(layer == last_layer)
    def _():
        mask = mask_ref[0]                                     # (TB, L)

        # token-level pooling over the turn's tokens
        # TODO(synk): at realistic H move these rank-1 reductions onto the MXU
        # ('bld,bd->bl' / 'bl,bld->bd'); trivial at these sizes.
        token_query = _mm(s_embed, wtp[...]) + btp[...]        # (TB, H)
        h2_3 = h2.reshape(TB, L, H)
        logits = jnp.sum(h2_3 * token_query[:, None, :], axis=-1)    # (TB, L)
        logits = jnp.where(mask > 0.0, logits, -1e30)          # masked_fill(==0,-inf)
        tw = _softmax_lastdim(logits)
        token_context = jnp.sum(tw[:, :, None] * h2_3, axis=1)       # (TB, H)

        # cross attention over the (batch-shared) speaker state
        chd = H // cross_heads
        cscale = 1.0 / math.sqrt(chd)
        cq = _mm(token_context, cwq[...]) + cbq[...]           # (TB, H)
        ck = _mm(state, cwk[...]) + cbk[...]                   # (S, H)
        cv = _mm(state, cwv[...]) + cbv[...]                   # (S, H)
        cross_ctx = []
        for h in range(cross_heads):
            sl = slice(h * chd, (h + 1) * chd)
            sc = jax.lax.dot_general(
                cq[:, sl].astype(MATMUL_DTYPE), ck[:, sl].astype(MATMUL_DTYPE),
                (((1,), (1,)), ((), ())),
                preferred_element_type=jnp.float32) * cscale    # (TB, S)
            p = _softmax_lastdim(sc)
            cross_ctx.append(_mm(p, cv[:, sl]))                 # (TB, chd)
        cross = _mm(jnp.concatenate(cross_ctx, axis=-1), cwo[...]) + cbo[...]

        # speaker gate (three (H,H) matmuls: no lane concatenate) + speaker norm
        gated = (_mm(token_context, wg0[...]) + _mm(s_embed, wg1[...])
                 + _mm(cross, wg2[...]) + bg[...])
        updated = _layernorm(gated + s_embed, gn[...], bn[...])      # (TB, H)

        # index_add_(s_idx, updated) for this block: exact f32 one-hot scatter-sum
        part_ref[0] = jax.lax.dot_general(
            onehot, updated, (((0,), (0,)), ((), ())),
            preferred_element_type=jnp.float32)                      # (S, H)


# ----------------------------------- wrapper -----------------------------------

_PER_LAYER_ORDER = ('wq', 'bq', 'wk', 'bk', 'wv', 'bv', 'wo', 'bo',
                    'w1', 'b1', 'w2', 'b2', 'g1', 'be1', 'g2', 'be2')
_PER_LAYER_MATS = ('wq', 'wk', 'wv', 'wo', 'w1', 'w2')


def _nbytes(shape, dtype):
    n = 1
    for s in shape:
        n *= int(s)
    return n * jnp.dtype(dtype).itemsize


def _pick_turn_block(bt, seq_len, max_rows=512):
    """Largest turn-block <= BT//2 (so nblk >= 2, preferring even nblk) with
    roughly max_rows token rows per grid step."""
    target = max(1, min(bt // 2 if bt > 1 else 1,
                        max(1, max_rows // max(seq_len, 1))))
    best = None
    for tb in range(target, 0, -1):
        if bt % tb != 0:
            continue
        if best is None:
            best = tb
        if (bt // tb) % 2 == 0:
            return tb
    return best if best is not None else 1


def _stack_layer_weights(layers):
    stacked = []
    for name in _PER_LAYER_ORDER:
        arr = jnp.stack([lyr[name] for lyr in layers], axis=0)
        if name in _PER_LAYER_MATS:
            arr = arr.astype(MATMUL_DTYPE)   # bf16 weights: half the DMA / VMEM
        stacked.append(arr)
    return stacked


def _shared_weights(shared, last_layer, hidden):
    wg = last_layer['wg']                       # (3H, H), rows = [token_ctx|s_embed|cross]
    bf = lambda w: w.astype(MATMUL_DTYPE)
    return [
        bf(shared['wtp']), shared['btp'],
        bf(shared['cwq']), shared['cbq'],
        bf(shared['cwk']), shared['cbk'],
        bf(shared['cwv']), shared['cbv'],
        bf(shared['cwo']), shared['cbo'],
        bf(wg[:hidden]), bf(wg[hidden:2 * hidden]), bf(wg[2 * hidden:]),
        last_layer['bg'], last_layer['gn'], last_layer['bn'],
    ]


def saute_forward(params, input_ids, attention_mask, speaker_ids, cfg):
    """speaker_ids: (B, T) int32 — dense speaker index per turn, standing in for
    the host-side speaker-name -> id dict of the PyTorch module."""
    B, T, L = input_ids.shape
    H = cfg['hidden_size']
    S = cfg['num_speakers']
    NL = cfg['num_layers']
    BT = B * T
    assert H % cfg['num_heads'] == 0 and H % 4 == 0

    # embedding glue (plain JAX gathers): token embeddings + token positional
    tok = params['token_embeddings'][input_ids]               # (B,T,L,H)
    pos = params['token_pe'][jnp.arange(L)]                   # (L,H)
    X = (tok + pos[None, None]).astype(jnp.float32)

    TB = _pick_turn_block(BT, L)
    nblk = BT // TB

    # Leading turn-block axis: blocks are full in the last two dims, so TB has no
    # (8,128) divisibility constraint and nblk stays >= 2 (v7x megacore + pipeline).
    x3 = X.reshape(nblk, TB * L, H)
    mask3 = attention_mask.astype(jnp.float32).reshape(nblk, TB, L)
    onehot3 = jax.nn.one_hot(speaker_ids.reshape(BT), S,
                             dtype=jnp.float32).reshape(nblk, TB, S)
    state0 = jnp.zeros((S, H), jnp.float32)   # each layer (re)starts from zeros

    stacked = _stack_layer_weights(params['layers'])
    shared = _shared_weights(params['shared'], params['layers'][-1], H)

    blk = lambda i, l: (i, 0, 0)      # per-turn-block data
    lyr = lambda i, l: (l, 0, 0)      # per-layer (stacked) weights
    rep2 = lambda i, l: (0, 0)        # shared / replicated 2-D weights
    in_specs = ([pl.BlockSpec((1, TB * L, H), blk),
                 pl.BlockSpec((1, TB, L), blk),
                 pl.BlockSpec((1, TB, S), blk),
                 pl.BlockSpec((S, H), rep2)]
                + [pl.BlockSpec((1,) + w.shape[1:], lyr) for w in stacked]
                # TODO(synk): constant-index weight specs could be single-buffered
                # (pipeline_mode=pl.Buffered(1)) to halve their VMEM footprint on
                # v7x at realistic H/I.
                + [pl.BlockSpec(w.shape, rep2) for w in shared])
    out_specs = [pl.BlockSpec((1, TB * L, H), blk),
                 pl.BlockSpec((1, S, H), blk)]
    out_shape = [jax.ShapeDtypeStruct((nblk, TB * L, H), jnp.float32),
                 jax.ShapeDtypeStruct((nblk, S, H), jnp.float32)]

    # explicit VMEM budget: v5e's default scoped limit is only 16 MiB; keep
    # headroom under v7x's 64 MiB physical VMEM.
    block_bytes = (_nbytes((1, TB * L, H), jnp.float32)
                   + _nbytes((1, TB, L), jnp.float32)
                   + _nbytes((1, TB, S), jnp.float32)
                   + _nbytes((S, H), jnp.float32)
                   + sum(_nbytes((1,) + w.shape[1:], w.dtype) for w in stacked)
                   + sum(_nbytes(w.shape, w.dtype) for w in shared)
                   + _nbytes((1, TB * L, H), jnp.float32)
                   + _nbytes((1, S, H), jnp.float32))
    vmem_limit = int(min(max(4 * block_bytes, 32 * 2**20), 48 * 2**20))

    fn = pl.pallas_call(
        functools.partial(saute_fused_kernel,
                          num_heads=cfg['num_heads'], cross_heads=4,
                          turns=TB, seq_len=L),
        grid=(nblk, NL),                      # block axis outer, layer axis inner
        in_specs=in_specs,
        out_specs=out_specs,
        out_shape=out_shape,
        compiler_params=pltpu.CompilerParams(
            dimension_semantics=("parallel", "arbitrary"),
            vmem_limit_bytes=vmem_limit),
    )
    x_new, partials = fn(x3, mask3, onehot3, state0, *stacked, *shared)

    # clone + index_add_: per-block partial sums are reduced outside the kernel so
    # the block axis stays embarrassingly parallel across TensorCores.
    speaker_state = state0 + jnp.sum(partials, axis=0)
    return x_new.reshape(B, T, L, H), speaker_state


# ------------------------------ params construction ------------------------------

def _dense(key, shape, scale=0.02):
    return scale * jax.random.normal(key, shape, dtype=jnp.float32)


def init_params(key, cfg):
    H, I = cfg['hidden_size'], cfg['intermediate_size']
    n_layers = cfg['num_layers']
    keys = jax.random.split(key, 4 + n_layers)
    zeros_h = jnp.zeros((1, H), jnp.float32)
    ones_h = jnp.ones((1, H), jnp.float32)

    sk = jax.random.split(keys[2], 5)
    shared = dict(
        # token_level_proj (speaker_embedding_size == hidden_size here)
        wtp=_dense(sk[0], (H, H)), btp=zeros_h,
        # cross_speaker_mha (nn.MultiheadAttention, 4 heads), (in, out) layout
        cwq=_dense(sk[1], (H, H)), cbq=zeros_h,
        cwk=_dense(sk[2], (H, H)), cbk=zeros_h,
        cwv=_dense(sk[3], (H, H)), cbv=zeros_h,
        cwo=_dense(sk[4], (H, H)), cbo=zeros_h,
    )

    layers = []
    for l in range(n_layers):
        lk = jax.random.split(keys[4 + l], 7)
        layers.append(dict(
            wq=_dense(lk[0], (H, H)), bq=zeros_h,
            wk=_dense(lk[1], (H, H)), bk=zeros_h,
            wv=_dense(lk[2], (H, H)), bv=zeros_h,
            wo=_dense(lk[3], (H, H)), bo=zeros_h,
            w1=_dense(lk[4], (H, I)), b1=jnp.zeros((1, I), jnp.float32),
            w2=_dense(lk[5], (I, H)), b2=zeros_h,
            g1=ones_h, be1=zeros_h,
            g2=ones_h, be2=zeros_h,
            wg=_dense(lk[6], (3 * H, H)), bg=zeros_h,
            gn=ones_h, bn=zeros_h,
        ))
    return dict(
        token_embeddings=_dense(keys[0], (cfg['vocab_size'], H)),
        token_pe=_dense(keys[1], (cfg['max_pos'], H)),
        shared=shared,
        layers=layers,
    )


# ------------------------------------- main -------------------------------------

if __name__ == "__main__":
    cfg = dict(vocab_size=50, hidden_size=32, intermediate_size=64,
               num_heads=4, num_layers=2, max_pos=16, num_speakers=2)
    B, T, L = 2, 4, 8

    key = jax.random.PRNGKey(0)
    k_ids, k_mask, k_spk, k_par = jax.random.split(key, 4)
    input_ids = jax.random.randint(k_ids, (B, T, L), 0, cfg['vocab_size'], dtype=jnp.int32)
    attention_mask = (jax.random.uniform(k_mask, (B, T, L)) > 0.2).astype(jnp.float32)
    attention_mask = attention_mask.at[..., 0].set(1.0)   # >=1 valid token per turn
    speaker_ids = jax.random.randint(k_spk, (B, T), 0, cfg['num_speakers'], dtype=jnp.int32)

    params = init_params(k_par, cfg)

    X_out, speaker_memory = saute_forward(params, input_ids, attention_mask,
                                          speaker_ids, cfg)
    jax.block_until_ready((X_out, speaker_memory))

    assert X_out.shape == (B, T, L, cfg['hidden_size'])
    assert speaker_memory.shape == (cfg['num_speakers'], cfg['hidden_size'])
    print("KERNEL_OK")
</pallas_src>

<mosaic_0001>
module attributes {stable_mosaic.version = 11 : i64} {
  func.func @saute_fused_kernel(%arg0: i32, %arg1: i32, %arg2: memref<1x32x32xf32, #tpu.memory_space<vmem>>, %arg3: memref<1x4x8xf32, #tpu.memory_space<vmem>>, %arg4: memref<1x4x2xf32, #tpu.memory_space<vmem>>, %arg5: memref<2x32xf32, #tpu.memory_space<vmem>>, %arg6: memref<1x32x32xbf16, #tpu.memory_space<vmem>>, %arg7: memref<1x1x32xf32, #tpu.memory_space<vmem>>, %arg8: memref<1x32x32xbf16, #tpu.memory_space<vmem>>, %arg9: memref<1x1x32xf32, #tpu.memory_space<vmem>>, %arg10: memref<1x32x32xbf16, #tpu.memory_space<vmem>>, %arg11: memref<1x1x32xf32, #tpu.memory_space<vmem>>, %arg12: memref<1x32x32xbf16, #tpu.memory_space<vmem>>, %arg13: memref<1x1x32xf32, #tpu.memory_space<vmem>>, %arg14: memref<1x32x64xbf16, #tpu.memory_space<vmem>>, %arg15: memref<1x1x64xf32, #tpu.memory_space<vmem>>, %arg16: memref<1x64x32xbf16, #tpu.memory_space<vmem>>, %arg17: memref<1x1x32xf32, #tpu.memory_space<vmem>>, %arg18: memref<1x1x32xf32, #tpu.memory_space<vmem>>, %arg19: memref<1x1x32xf32, #tpu.memory_space<vmem>>, %arg20: memref<1x1x32xf32, #tpu.memory_space<vmem>>, %arg21: memref<1x1x32xf32, #tpu.memory_space<vmem>>, %arg22: memref<32x32xbf16, #tpu.memory_space<vmem>>, %arg23: memref<1x32xf32, #tpu.memory_space<vmem>>, %arg24: memref<32x32xbf16, #tpu.memory_space<vmem>>, %arg25: memref<1x32xf32, #tpu.memory_space<vmem>>, %arg26: memref<32x32xbf16, #tpu.memory_space<vmem>>, %arg27: memref<1x32xf32, #tpu.memory_space<vmem>>, %arg28: memref<32x32xbf16, #tpu.memory_space<vmem>>, %arg29: memref<1x32xf32, #tpu.memory_space<vmem>>, %arg30: memref<32x32xbf16, #tpu.memory_space<vmem>>, %arg31: memref<1x32xf32, #tpu.memory_space<vmem>>, %arg32: memref<32x32xbf16, #tpu.memory_space<vmem>>, %arg33: memref<32x32xbf16, #tpu.memory_space<vmem>>, %arg34: memref<32x32xbf16, #tpu.memory_space<vmem>>, %arg35: memref<1x32xf32, #tpu.memory_space<vmem>>, %arg36: memref<1x32xf32, #tpu.memory_space<vmem>>, %arg37: memref<1x32xf32, #tpu.memory_space<vmem>>, %arg38: memref<1x32x32xf32, #tpu.memory_space<vmem>>, %arg39: memref<1x2x32xf32, #tpu.memory_space<vmem>>) attributes {dimension_semantics = [#tpu.dimension_semantics<parallel>, #tpu.dimension_semantics<arbitrary>], iteration_bounds = array<i64: 2, 2>, scalar_prefetch = 0 : i64, scratch_operands = 0 : i64, tpu.core_type = #tpu.core_type<tc>, window_params = [{transform_indices = @transform_0, window_bounds = array<i64: 1, 32, 32>}, {transform_indices = @transform_1, window_bounds = array<i64: 1, 4, 8>}, {transform_indices = @transform_2, window_bounds = array<i64: 1, 4, 2>}, {pipeline_mode = #tpu.pipeline_mode<synchronous>, transform_indices = @transform_3, window_bounds = array<i64: 2, 32>}, {transform_indices = @transform_4, window_bounds = array<i64: 1, 32, 32>}, {transform_indices = @transform_5, window_bounds = array<i64: 1, 1, 32>}, {transform_indices = @transform_6, window_bounds = array<i64: 1, 32, 32>}, {transform_indices = @transform_7, window_bounds = array<i64: 1, 1, 32>}, {transform_indices = @transform_8, window_bounds = array<i64: 1, 32, 32>}, {transform_indices = @transform_9, window_bounds = array<i64: 1, 1, 32>}, {transform_indices = @transform_10, window_bounds = array<i64: 1, 32, 32>}, {transform_indices = @transform_11, window_bounds = array<i64: 1, 1, 32>}, {transform_indices = @transform_12, window_bounds = array<i64: 1, 32, 64>}, {transform_indices = @transform_13, window_bounds = array<i64: 1, 1, 64>}, {transform_indices = @transform_14, window_bounds = array<i64: 1, 64, 32>}, {transform_indices = @transform_15, window_bounds = array<i64: 1, 1, 32>}, {transform_indices = @transform_16, window_bounds = array<i64: 1, 1, 32>}, {transform_indices = @transform_17, window_bounds = array<i64: 1, 1, 32>}, {transform_indices = @transform_18, window_bounds = array<i64: 1, 1, 32>}, {transform_indices = @transform_19, window_bounds = array<i64: 1, 1, 32>}, {pipeline_mode = #tpu.pipeline_mode<synchronous>, transform_indices = @transform_20, window_bounds = array<i64: 32, 32>}, {pipeline_mode = #tpu.pipeline_mode<synchronous>, transform_indices = @transform_21, window_bounds = array<i64: 1, 32>}, {pipeline_mode = #tpu.pipeline_mode<synchronous>, transform_indices = @transform_22, window_bounds = array<i64: 32, 32>}, {pipeline_mode = #tpu.pipeline_mode<synchronous>, transform_indices = @transform_23, window_bounds = array<i64: 1, 32>}, {pipeline_mode = #tpu.pipeline_mode<synchronous>, transform_indices = @transform_24, window_bounds = array<i64: 32, 32>}, {pipeline_mode = #tpu.pipeline_mode<synchronous>, transform_indices = @transform_25, window_bounds = array<i64: 1, 32>}, {pipeline_mode = #tpu.pipeline_mode<synchronous>, transform_indices = @transform_26, window_bounds = array<i64: 32, 32>}, {pipeline_mode = #tpu.pipeline_mode<synchronous>, transform_indices = @transform_27, window_bounds = array<i64: 1, 32>}, {pipeline_mode = #tpu.pipeline_mode<synchronous>, transform_indices = @transform_28, window_bounds = array<i64: 32, 32>}, {pipeline_mode = #tpu.pipeline_mode<synchronous>, transform_indices = @transform_29, window_bounds = array<i64: 1, 32>}, {pipeline_mode = #tpu.pipeline_mode<synchronous>, transform_indices = @transform_30, window_bounds = array<i64: 32, 32>}, {pipeline_mode = #tpu.pipeline_mode<synchronous>, transform_indices = @transform_31, window_bounds = array<i64: 32, 32>}, {pipeline_mode = #tpu.pipeline_mode<synchronous>, transform_indices = @transform_32, window_bounds = array<i64: 32, 32>}, {pipeline_mode = #tpu.pipeline_mode<synchronous>, transform_indices = @transform_33, window_bounds = array<i64: 1, 32>}, {pipeline_mode = #tpu.pipeline_mode<synchronous>, transform_indices = @transform_34, window_bounds = array<i64: 1, 32>}, {pipeline_mode = #tpu.pipeline_mode<synchronous>, transform_indices = @transform_35, window_bounds = array<i64: 1, 32>}, {transform_indices = @transform_36, window_bounds = array<i64: 1, 32, 32>}, {transform_indices = @transform_37, window_bounds = array<i64: 1, 2, 32>}]} {
    %c0 = arith.constant 0 : index
    %c0_0 = arith.constant 0 : index
    %0 = vector.load %arg5[%c0, %c0_0] : memref<2x32xf32, #tpu.memory_space<vmem>>, vector<2x32xf32>
    %c0_1 = arith.constant 0 : index
    %c0_2 = arith.constant 0 : index
    %c0_3 = arith.constant 0 : index
    %1 = vector.load %arg4[%c0_1, %c0_2, %c0_3] : memref<1x4x2xf32, #tpu.memory_space<vmem>>, vector<1x4x2xf32>
    %2 = vector.shape_cast %1 : vector<1x4x2xf32> to vector<4x2xf32>
    %cst = arith.constant dense<0.000000e+00> : vector<4x32xf32>
    %3 = tpu.matmul %2, %0, %cst {dimension_numbers = #tpu.dot_dimension_numbers<[1], [0], [0], [1], [0, 0, 1, 1], [], []>} : vector<4x2xf32>, vector<2x32xf32>, vector<4x32xf32> -> vector<4x32xf32>
    %c0_i32 = arith.constant 0 : i32
    %4 = arith.cmpi eq, %arg1, %c0_i32 : i32
    %5 = arith.extui %4 : i1 to i32
    %c0_i32_4 = arith.constant 0 : i32
    %6 = arith.cmpi ne, %5, %c0_i32_4 : i32
    scf.if %6 {
      %c0_99 = arith.constant 0 : index
      %c0_100 = arith.constant 0 : index
      %c0_101 = arith.constant 0 : index
      %213 = vector.load %arg2[%c0_99, %c0_100, %c0_101] : memref<1x32x32xf32, #tpu.memory_space<vmem>>, vector<1x32x32xf32>
      %c0_102 = arith.constant 0 : index
      %c0_103 = arith.constant 0 : index
      %c0_104 = arith.constant 0 : index
      %214 = vector.load %arg38[%c0_102, %c0_103, %c0_104] : memref<1x32x32xf32, #tpu.memory_space<vmem>>, vector<1x32x32xf32>
      tpu.vector_store %arg38[%c0_102, %c0_103, %c0_104], %213 {strides = array<i32>} : memref<1x32x32xf32, #tpu.memory_space<vmem>>, vector<1x32x32xf32>,
    } else {
    }
    %c0_5 = arith.constant 0 : index
    %c0_6 = arith.constant 0 : index
    %c0_7 = arith.constant 0 : index
    %7 = vector.load %arg38[%c0_5, %c0_6, %c0_7] : memref<1x32x32xf32, #tpu.memory_space<vmem>>, vector<1x32x32xf32>
    %8 = vector.shape_cast %7 : vector<1x32x32xf32> to vector<32x32xf32>
    %9 = vector.shape_cast %8 : vector<32x32xf32> to vector<4x8x32xf32>
    %10 = vector.shape_cast %3 : vector<4x32xf32> to vector<4x1x32xf32>
    %11 = vector.broadcast %10 : vector<4x1x32xf32> to vector<4x8x32xf32>
    %12 = arith.addf %9, %11 : vector<4x8x32xf32>
    %13 = vector.shape_cast %12 : vector<4x8x32xf32> to vector<32x32xf32>
    %14 = arith.truncf %13 : vector<32x32xf32> to vector<32x32xbf16>
    %c0_8 = arith.constant 0 : index
    %c0_9 = arith.constant 0 : index
    %c0_10 = arith.constant 0 : index
    %15 = vector.load %arg6[%c0_8, %c0_9, %c0_10] : memref<1x32x32xbf16, #tpu.memory_space<vmem>>, vector<1x32x32xbf16>
    %16 = vector.shape_cast %15 : vector<1x32x32xbf16> to vector<32x32xbf16>
    %cst_11 = arith.constant dense<0.000000e+00> : vector<32x32xf32>
    %17 = tpu.matmul %14, %16, %cst_11 {dimension_numbers = #tpu.dot_dimension_numbers<[1], [0], [0], [1], [0, 0, 1, 1], [], []>} : vector<32x32xbf16>, vector<32x32xbf16>, vector<32x32xf32> -> vector<32x32xf32>
    %c0_12 = arith.constant 0 : index
    %c0_13 = arith.constant 0 : index
    %c0_14 = arith.constant 0 : index
    %18 = vector.load %arg7[%c0_12, %c0_13, %c0_14] : memref<1x1x32xf32, #tpu.memory_space<vmem>>, vector<1x1x32xf32>
    %19 = vector.shape_cast %18 : vector<1x1x32xf32> to vector<1x32xf32>
    %20 = vector.broadcast %19 : vector<1x32xf32> to vector<32x32xf32>
    %21 = arith.addf %17, %20 : vector<32x32xf32>
    %c0_15 = arith.constant 0 : index
    %c0_16 = arith.constant 0 : index
    %c0_17 = arith.constant 0 : index
    %22 = vector.load %arg8[%c0_15, %c0_16, %c0_17] : memref<1x32x32xbf16, #tpu.memory_space<vmem>>, vector<1x32x32xbf16>
    %23 = vector.shape_cast %22 : vector<1x32x32xbf16> to vector<32x32xbf16>
    %cst_18 = arith.constant dense<0.000000e+00> : vector<32x32xf32>
    %24 = tpu.matmul %14, %23, %cst_18 {dimension_numbers = #tpu.dot_dimension_numbers<[1], [0], [0], [1], [0, 0, 1, 1], [], []>} : vector<32x32xbf16>, vector<32x32xbf16>, vector<32x32xf32> -> vector<32x32xf32>
    %c0_19 = arith.constant 0 : index
    %c0_20 = arith.constant 0 : index
    %c0_21 = arith.constant 0 : index
    %25 = vector.load %arg9[%c0_19, %c0_20, %c0_21] : memref<1x1x32xf32, #tpu.memory_space<vmem>>, vector<1x1x32xf32>
    %26 = vector.shape_cast %25 : vector<1x1x32xf32> to vector<1x32xf32>
    %27 = vector.broadcast %26 : vector<1x32xf32> to vector<32x32xf32>
    %28 = arith.addf %24, %27 : vector<32x32xf32>
    %c0_22 = arith.constant 0 : index
    %c0_23 = arith.constant 0 : index
    %c0_24 = arith.constant 0 : index
    %29 = vector.load %arg10[%c0_22, %c0_23, %c0_24] : memref<1x32x32xbf16, #tpu.memory_space<vmem>>, vector<1x32x32xbf16>
    %30 = vector.shape_cast %29 : vector<1x32x32xbf16> to vector<32x32xbf16>
    %cst_25 = arith.constant dense<0.000000e+00> : vector<32x32xf32>
    %31 = tpu.matmul %14, %30, %cst_25 {dimension_numbers = #tpu.dot_dimension_numbers<[1], [0], [0], [1], [0, 0, 1, 1], [], []>} : vector<32x32xbf16>, vector<32x32xbf16>, vector<32x32xf32> -> vector<32x32xf32>
    %c0_26 = arith.constant 0 : index
    %c0_27 = arith.constant 0 : index
    %c0_28 = arith.constant 0 : index
    %32 = vector.load %arg11[%c0_26, %c0_27, %c0_28] : memref<1x1x32xf32, #tpu.memory_space<vmem>>, vector<1x1x32xf32>
    %33 = vector.shape_cast %32 : vector<1x1x32xf32> to vector<1x32xf32>
    %34 = vector.broadcast %33 : vector<1x32xf32> to vector<32x32xf32>
    %35 = arith.addf %31, %34 : vector<32x32xf32>
    %36 = vector.shape_cast %21 : vector<32x32xf32> to vector<4x8x32xf32>
    %37 = vector.shape_cast %28 : vector<32x32xf32> to vector<4x8x32xf32>
    %38 = vector.shape_cast %35 : vector<32x32xf32> to vector<4x8x32xf32>
    %39 = vector.extract_strided_slice %36 {offsets = [0, 0, 0], sizes = [4, 8, 8], strides = [1, 1, 1]} : vector<4x8x32xf32> to vector<4x8x8xf32>
    %40 = vector.extract_strided_slice %37 {offsets = [0, 0, 0], sizes = [4, 8, 8], strides = [1, 1, 1]} : vector<4x8x32xf32> to vector<4x8x8xf32>
    %41 = arith.truncf %39 : vector<4x8x8xf32> to vector<4x8x8xbf16>
    %42 = arith.truncf %40 : vector<4x8x8xf32> to vector<4x8x8xbf16>
    "tpu.trace_start"() <{level = 10 : i32, message = "bqd,bkd->bqk"}> : () -> ()
    %cst_29 = arith.constant dense<0.000000e+00> : vector<4x8x8xf32>
    %43 = tpu.matmul %41, %42, %cst_29 {dimension_numbers = #tpu.dot_dimension_numbers<[2], [2], [1], [1], [0, 0, 0, 1, 1, 1], [0], [0]>} : vector<4x8x8xbf16>, vector<4x8x8xbf16>, vector<4x8x8xf32> -> vector<4x8x8xf32>
    "tpu.trace_stop"() : () -> ()
    %cst_30 = arith.constant 0.353553385 : f32
    %44 = vector.broadcast %cst_30 : f32 to vector<4x8x8xf32>
    %45 = arith.mulf %43, %44 : vector<4x8x8xf32>
    %cst_31 = arith.constant dense<0xFF800000> : vector<4x8xf32>
    %46 = vector.multi_reduction <maximumf>, %45, %cst_31 [2] : vector<4x8x8xf32> to vector<4x8xf32>
    %47 = vector.shape_cast %46 : vector<4x8xf32> to vector<4x8x1xf32>
    %48 = vector.broadcast %47 : vector<4x8x1xf32> to vector<4x8x8xf32>
    %49 = arith.subf %45, %48 : vector<4x8x8xf32>
    %50 = math.exp %49 : vector<4x8x8xf32>
    %cst_32 = arith.constant dense<0.000000e+00> : vector<4x8xf32>
    %51 = vector.multi_reduction <add>, %50, %cst_32 [2] : vector<4x8x8xf32> to vector<4x8xf32>
    %52 = vector.shape_cast %51 : vector<4x8xf32> to vector<4x8x1xf32>
    %53 = vector.broadcast %52 : vector<4x8x1xf32> to vector<4x8x8xf32>
    %54 = arith.divf %50, %53 : vector<4x8x8xf32>
    %55 = vector.extract_strided_slice %38 {offsets = [0, 0, 0], sizes = [4, 8, 8], strides = [1, 1, 1]} : vector<4x8x32xf32> to vector<4x8x8xf32>
    %56 = arith.truncf %54 : vector<4x8x8xf32> to vector<4x8x8xbf16>
    %57 = arith.truncf %55 : vector<4x8x8xf32> to vector<4x8x8xbf16>
    "tpu.trace_start"() <{level = 10 : i32, message = "bqk,bkd->bqd"}> : () -> ()
    %cst_33 = arith.constant dense<0.000000e+00> : vector<4x8x8xf32>
    %58 = tpu.matmul %56, %57, %cst_33 {dimension_numbers = #tpu.dot_dimension_numbers<[2], [1], [1], [2], [0, 0, 0, 1, 1, 2], [0], [0]>} : vector<4x8x8xbf16>, vector<4x8x8xbf16>, vector<4x8x8xf32> -> vector<4x8x8xf32>
    "tpu.trace_stop"() : () -> ()
    %59 = vector.extract_strided_slice %36 {offsets = [0, 0, 8], sizes = [4, 8, 8], strides = [1, 1, 1]} : vector<4x8x32xf32> to vector<4x8x8xf32>
    %60 = vector.extract_strided_slice %37 {offsets = [0, 0, 8], sizes = [4, 8, 8], strides = [1, 1, 1]} : vector<4x8x32xf32> to vector<4x8x8xf32>
    %61 = arith.truncf %59 : vector<4x8x8xf32> to vector<4x8x8xbf16>
    %62 = arith.truncf %60 : vector<4x8x8xf32> to vector<4x8x8xbf16>
    "tpu.trace_start"() <{level = 10 : i32, message = "bqd,bkd->bqk"}> : () -> ()
    %cst_34 = arith.constant dense<0.000000e+00> : vector<4x8x8xf32>
    %63 = tpu.matmul %61, %62, %cst_34 {dimension_numbers = #tpu.dot_dimension_numbers<[2], [2], [1], [1], [0, 0, 0, 1, 1, 1], [0], [0]>} : vector<4x8x8xbf16>, vector<4x8x8xbf16>, vector<4x8x8xf32> -> vector<4x8x8xf32>
    "tpu.trace_stop"() : () -> ()
    %cst_35 = arith.constant 0.353553385 : f32
    %64 = vector.broadcast %cst_35 : f32 to vector<4x8x8xf32>
    %65 = arith.mulf %63, %64 : vector<4x8x8xf32>
    %cst_36 = arith.constant dense<0xFF800000> : vector<4x8xf32>
    %66 = vector.multi_reduction <maximumf>, %65, %cst_36 [2] : vector<4x8x8xf32> to vector<4x8xf32>
    %67 = vector.shape_cast %66 : vector<4x8xf32> to vector<4x8x1xf32>
    %68 = vector.broadcast %67 : vector<4x8x1xf32> to vector<4x8x8xf32>
    %69 = arith.subf %65, %68 : vector<4x8x8xf32>
    %70 = math.exp %69 : vector<4x8x8xf32>
    %cst_37 = arith.constant dense<0.000000e+00> : vector<4x8xf32>
    %71 = vector.multi_reduction <add>, %70, %cst_37 [2] : vector<4x8x8xf32> to vector<4x8xf32>
    %72 = vector.shape_cast %71 : vector<4x8xf32> to vector<4x8x1xf32>
    %73 = vector.broadcast %72 : vector<4x8x1xf32> to vector<4x8x8xf32>
    %74 = arith.divf %70, %73 : vector<4x8x8xf32>
    %75 = vector.extract_strided_slice %38 {offsets = [0, 0, 8], sizes = [4, 8, 8], strides = [1, 1, 1]} : vector<4x8x32xf32> to vector<4x8x8xf32>
    %76 = arith.truncf %74 : vector<4x8x8xf32> to vector<4x8x8xbf16>
    %77 = arith.truncf %75 : vector<4x8x8xf32> to vector<4x8x8xbf16>
    "tpu.trace_start"() <{level = 10 : i32, message = "bqk,bkd->bqd"}> : () -> ()
    %cst_38 = arith.constant dense<0.000000e+00> : vector<4x8x8xf32>
    %78 = tpu.matmul %76, %77, %cst_38 {dimension_numbers = #tpu.dot_dimension_numbers<[2], [1], [1], [2], [0, 0, 0, 1, 1, 2], [0], [0]>} : vector<4x8x8xbf16>, vector<4x8x8xbf16>, vector<4x8x8xf32> -> vector<4x8x8xf32>
    "tpu.trace_stop"() : () -> ()
    %79 = vector.extract_strided_slice %36 {offsets = [0, 0, 16], sizes = [4, 8, 8], strides = [1, 1, 1]} : vector<4x8x32xf32> to vector<4x8x8xf32>
    %80 = vector.extract_strided_slice %37 {offsets = [0, 0, 16], sizes = [4, 8, 8], strides = [1, 1, 1]} : vector<4x8x32xf32> to vector<4x8x8xf32>
    %81 = arith.truncf %79 : vector<4x8x8xf32> to vector<4x8x8xbf16>
    %82 = arith.truncf %80 : vector<4x8x8xf32> to vector<4x8x8xbf16>
    "tpu.trace_start"() <{level = 10 : i32, message = "bqd,bkd->bqk"}> : () -> ()
    %cst_39 = arith.constant dense<0.000000e+00> : vector<4x8x8xf32>
    %83 = tpu.matmul %81, %82, %cst_39 {dimension_numbers = #tpu.dot_dimension_numbers<[2], [2], [1], [1], [0, 0, 0, 1, 1, 1], [0], [0]>} : vector<4x8x8xbf16>, vector<4x8x8xbf16>, vector<4x8x8xf32> -> vector<4x8x8xf32>
    "tpu.trace_stop"() : () -> ()
    %cst_40 = arith.constant 0.353553385 : f32
    %84 = vector.broadcast %cst_40 : f32 to vector<4x8x8xf32>
    %85 = arith.mulf %83, %84 : vector<4x8x8xf32>
    %cst_41 = arith.constant dense<0xFF800000> : vector<4x8xf32>
    %86 = vector.multi_reduction <maximumf>, %85, %cst_41 [2] : vector<4x8x8xf32> to vector<4x8xf32>
    %87 = vector.shape_cast %86 : vector<4x8xf32> to vector<4x8x1xf32>
    %88 = vector.broadcast %87 : vector<4x8x1xf32> to vector<4x8x8xf32>
    %89 = arith.subf %85, %88 : vector<4x8x8xf32>
    %90 = math.exp %89 : vector<4x8x8xf32>
    %cst_42 = arith.constant dense<0.000000e+00> : vector<4x8xf32>
    %91 = vector.multi_reduction <add>, %90, %cst_42 [2] : vector<4x8x8xf32> to vector<4x8xf32>
    %92 = vector.shape_cast %91 : vector<4x8xf32> to vector<4x8x1xf32>
    %93 = vector.broadcast %92 : vector<4x8x1xf32> to vector<4x8x8xf32>
    %94 = arith.divf %90, %93 : vector<4x8x8xf32>
    %95 = vector.extract_strided_slice %38 {offsets = [0, 0, 16], sizes = [4, 8, 8], strides = [1, 1, 1]} : vector<4x8x32xf32> to vector<4x8x8xf32>
    %96 = arith.truncf %94 : vector<4x8x8xf32> to vector<4x8x8xbf16>
    %97 = arith.truncf %95 : vector<4x8x8xf32> to vector<4x8x8xbf16>
    "tpu.trace_start"() <{level = 10 : i32, message = "bqk,bkd->bqd"}> : () -> ()
    %cst_43 = arith.constant dense<0.000000e+00> : vector<4x8x8xf32>
    %98 = tpu.matmul %96, %97, %cst_43 {dimension_numbers = #tpu.dot_dimension_numbers<[2], [1], [1], [2], [0, 0, 0, 1, 1, 2], [0], [0]>} : vector<4x8x8xbf16>, vector<4x8x8xbf16>, vector<4x8x8xf32> -> vector<4x8x8xf32>
    "tpu.trace_stop"() : () -> ()
    %99 = vector.extract_strided_slice %36 {offsets = [0, 0, 24], sizes = [4, 8, 8], strides = [1, 1, 1]} : vector<4x8x32xf32> to vector<4x8x8xf32>
    %100 = vector.extract_strided_slice %37 {offsets = [0, 0, 24], sizes = [4, 8, 8], strides = [1, 1, 1]} : vector<4x8x32xf32> to vector<4x8x8xf32>
    %101 = arith.truncf %99 : vector<4x8x8xf32> to vector<4x8x8xbf16>
    %102 = arith.truncf %100 : vector<4x8x8xf32> to vector<4x8x8xbf16>
    "tpu.trace_start"() <{level = 10 : i32, message = "bqd,bkd->bqk"}> : () -> ()
    %cst_44 = arith.constant dense<0.000000e+00> : vector<4x8x8xf32>
    %103 = tpu.matmul %101, %102, %cst_44 {dimension_numbers = #tpu.dot_dimension_numbers<[2], [2], [1], [1], [0, 0, 0, 1, 1, 1], [0], [0]>} : vector<4x8x8xbf16>, vector<4x8x8xbf16>, vector<4x8x8xf32> -> vector<4x8x8xf32>
    "tpu.trace_stop"() : () -> ()
    %cst_45 = arith.constant 0.353553385 : f32
    %104 = vector.broadcast %cst_45 : f32 to vector<4x8x8xf32>
    %105 = arith.mulf %103, %104 : vector<4x8x8xf32>
    %cst_46 = arith.constant dense<0xFF800000> : vector<4x8xf32>
    %106 = vector.multi_reduction <maximumf>, %105, %cst_46 [2] : vector<4x8x8xf32> to vector<4x8xf32>
    %107 = vector.shape_cast %106 : vector<4x8xf32> to vector<4x8x1xf32>
    %108 = vector.broadcast %107 : vector<4x8x1xf32> to vector<4x8x8xf32>
    %109 = arith.subf %105, %108 : vector<4x8x8xf32>
    %110 = math.exp %109 : vector<4x8x8xf32>
    %cst_47 = arith.constant dense<0.000000e+00> : vector<4x8xf32>
    %111 = vector.multi_reduction <add>, %110, %cst_47 [2] : vector<4x8x8xf32> to vector<4x8xf32>
    %112 = vector.shape_cast %111 : vector<4x8xf32> to vector<4x8x1xf32>
    %113 = vector.broadcast %112 : vector<4x8x1xf32> to vector<4x8x8xf32>
    %114 = arith.divf %110, %113 : vector<4x8x8xf32>
    %115 = vector.extract_strided_slice %38 {offsets = [0, 0, 24], sizes = [4, 8, 8], strides = [1, 1, 1]} : vector<4x8x32xf32> to vector<4x8x8xf32>
    %116 = arith.truncf %114 : vector<4x8x8xf32> to vector<4x8x8xbf16>
    %117 = arith.truncf %115 : vector<4x8x8xf32> to vector<4x8x8xbf16>
    "tpu.trace_start"() <{level = 10 : i32, message = "bqk,bkd->bqd"}> : () -> ()
    %cst_48 = arith.constant dense<0.000000e+00> : vector<4x8x8xf32>
    %118 = tpu.matmul %116, %117, %cst_48 {dimension_numbers = #tpu.dot_dimension_numbers<[2], [1], [1], [2], [0, 0, 0, 1, 1, 2], [0], [0]>} : vector<4x8x8xbf16>, vector<4x8x8xbf16>, vector<4x8x8xf32> -> vector<4x8x8xf32>
    "tpu.trace_stop"() : () -> ()
    %119 = tpu.concatenate %58, %78, %98, %118 in 2 : vector<4x8x8xf32>, vector<4x8x8xf32>, vector<4x8x8xf32>, vector<4x8x8xf32> -> vector<4x8x32xf32>
    %120 = vector.shape_cast %119 : vector<4x8x32xf32> to vector<32x32xf32>
    %c0_49 = arith.constant 0 : index
    %c0_50 = arith.constant 0 : index
    %c0_51 = arith.constant 0 : index
    %121 = vector.load %arg12[%c0_49, %c0_50, %c0_51] : memref<1x32x32xbf16, #tpu.memory_space<vmem>>, vector<1x32x32xbf16>
    %122 = vector.shape_cast %121 : vector<1x32x32xbf16> to vector<32x32xbf16>
    %123 = arith.truncf %120 : vector<32x32xf32> to vector<32x32xbf16>
    %cst_52 = arith.constant dense<0.000000e+00> : vector<32x32xf32>
    %124 = tpu.matmul %123, %122, %cst_52 {dimension_numbers = #tpu.dot_dimension_numbers<[1], [0], [0], [1], [0, 0, 1, 1], [], []>} : vector<32x32xbf16>, vector<32x32xbf16>, vector<32x32xf32> -> vector<32x32xf32>
    %c0_53 = arith.constant 0 : index
    %c0_54 = arith.constant 0 : index
    %c0_55 = arith.constant 0 : index
    %125 = vector.load %arg13[%c0_53, %c0_54, %c0_55] : memref<1x1x32xf32, #tpu.memory_space<vmem>>, vector<1x1x32xf32>
    %126 = vector.shape_cast %125 : vector<1x1x32xf32> to vector<1x32xf32>
    %127 = vector.broadcast %126 : vector<1x32xf32> to vector<32x32xf32>
    %128 = arith.addf %124, %127 : vector<32x32xf32>
    %129 = arith.addf %13, %128 : vector<32x32xf32>
    %c0_56 = arith.constant 0 : index
    %c0_57 = arith.constant 0 : index
    %c0_58 = arith.constant 0 : index
    %130 = vector.load %arg18[%c0_56, %c0_57, %c0_58] : memref<1x1x32xf32, #tpu.memory_space<vmem>>, vector<1x1x32xf32>
    %131 = vector.shape_cast %130 : vector<1x1x32xf32> to vector<1x32xf32>
    %c0_59 = arith.constant 0 : index
    %c0_60 = arith.constant 0 : index
    %c0_61 = arith.constant 0 : index
    %132 = vector.load %arg19[%c0_59, %c0_60, %c0_61] : memref<1x1x32xf32, #tpu.memory_space<vmem>>, vector<1x1x32xf32>
    %133 = vector.shape_cast %132 : vector<1x1x32xf32> to vector<1x32xf32>
    %cst_62 = arith.constant dense<0.000000e+00> : vector<32xf32>
    %134 = vector.multi_reduction <add>, %129, %cst_62 [1] : vector<32x32xf32> to vector<32xf32>
    %135 = vector.shape_cast %134 : vector<32xf32> to vector<32x1xf32>
    %cst_63 = arith.constant 3.200000e+01 : f32
    %136 = vector.broadcast %cst_63 : f32 to vector<32x1xf32>
    %137 = arith.divf %135, %136 : vector<32x1xf32>
    %138 = vector.broadcast %137 : vector<32x1xf32> to vector<32x32xf32>
    %139 = arith.subf %129, %138 : vector<32x32xf32>
    %140 = arith.mulf %139, %139 : vector<32x32xf32>
    %cst_64 = arith.constant dense<0.000000e+00> : vector<32xf32>
    %141 = vector.multi_reduction <add>, %140, %cst_64 [1] : vector<32x32xf32> to vector<32xf32>
    %142 = vector.shape_cast %141 : vector<32xf32> to vector<32x1xf32>
    %cst_65 = arith.constant 3.200000e+01 : f32
    %143 = vector.broadcast %cst_65 : f32 to vector<32x1xf32>
    %144 = arith.divf %142, %143 : vector<32x1xf32>
    %145 = vector.broadcast %137 : vector<32x1xf32> to vector<32x32xf32>
    %146 = arith.subf %129, %145 : vector<32x32xf32>
    %cst_66 = arith.constant 9.99999974E-6 : f32
    %147 = vector.broadcast %cst_66 : f32 to vector<32x1xf32>
    %148 = arith.addf %144, %147 : vector<32x1xf32>
    %149 = math.rsqrt %148 : vector<32x1xf32>
    %150 = vector.broadcast %149 : vector<32x1xf32> to vector<32x32xf32>
    %151 = arith.mulf %146, %150 : vector<32x32xf32>
    %152 = vector.broadcast %131 : vector<1x32xf32> to vector<32x32xf32>
    %153 = arith.mulf %151, %152 : vector<32x32xf32>
    %154 = vector.broadcast %133 : vector<1x32xf32> to vector<32x32xf32>
    %155 = arith.addf %153, %154 : vector<32x32xf32>
    %c0_67 = arith.constant 0 : index
    %c0_68 = arith.constant 0 : index
    %c0_69 = arith.constant 0 : index
    %156 = vector.load %arg14[%c0_67, %c0_68, %c0_69] : memref<1x32x64xbf16, #tpu.memory_space<vmem>>, vector<1x32x64xbf16>
    %157 = vector.shape_cast %156 : vector<1x32x64xbf16> to vector<32x64xbf16>
    %158 = arith.truncf %155 : vector<32x32xf32> to vector<32x32xbf16>
    %cst_70 = arith.constant dense<0.000000e+00> : vector<32x64xf32>
    %159 = tpu.matmul %158, %157, %cst_70 {dimension_numbers = #tpu.dot_dimension_numbers<[1], [0], [0], [1], [0, 0, 1, 1], [], []>} : vector<32x32xbf16>, vector<32x64xbf16>, vector<32x64xf32> -> vector<32x64xf32>
    %c0_71 = arith.constant 0 : index
    %c0_72 = arith.constant 0 : index
    %c0_73 = arith.constant 0 : index
    %160 = vector.load %arg15[%c0_71, %c0_72, %c0_73] : memref<1x1x64xf32, #tpu.memory_space<vmem>>, vector<1x1x64xf32>
    %161 = vector.shape_cast %160 : vector<1x1x64xf32> to vector<1x64xf32>
    %162 = vector.broadcast %161 : vector<1x64xf32> to vector<32x64xf32>
    %163 = arith.addf %159, %162 : vector<32x64xf32>
    %cst_74 = arith.constant 5.000000e-01 : f32
    %164 = vector.broadcast %cst_74 : f32 to vector<32x64xf32>
    %165 = arith.mulf %164, %163 : vector<32x64xf32>
    %cst_75 = arith.constant 1.41421354 : f32
    %166 = vector.broadcast %cst_75 : f32 to vector<32x64xf32>
    %167 = arith.divf %163, %166 : vector<32x64xf32>
    %168 = math.erf %167 : vector<32x64xf32>
    %cst_76 = arith.constant 1.000000e+00 : f32
    %169 = vector.broadcast %cst_76 : f32 to vector<32x64xf32>
    %170 = arith.addf %169, %168 : vector<32x64xf32>
    %171 = arith.mulf %165, %170 : vector<32x64xf32>
    %c0_77 = arith.constant 0 : index
    %c0_78 = arith.constant 0 : index
    %c0_79 = arith.constant 0 : index
    %172 = vector.load %arg16[%c0_77, %c0_78, %c0_79] : memref<1x64x32xbf16, #tpu.memory_space<vmem>>, vector<1x64x32xbf16>
    %173 = vector.shape_cast %172 : vector<1x64x32xbf16> to vector<64x32xbf16>
    %174 = arith.truncf %171 : vector<32x64xf32> to vector<32x64xbf16>
    %cst_80 = arith.constant dense<0.000000e+00> : vector<32x32xf32>
    %175 = tpu.matmul %174, %173, %cst_80 {dimension_numbers = #tpu.dot_dimension_numbers<[1], [0], [0], [1], [0, 0, 1, 1], [], []>} : vector<32x64xbf16>, vector<64x32xbf16>, vector<32x32xf32> -> vector<32x32xf32>
    %c0_81 = arith.constant 0 : index
    %c0_82 = arith.constant 0 : index
    %c0_83 = arith.constant 0 : index
    %176 = vector.load %arg17[%c0_81, %c0_82, %c0_83] : memref<1x1x32xf32, #tpu.memory_space<vmem>>, vector<1x1x32xf32>
    %177 = vector.shape_cast %176 : vector<1x1x32xf32> to vector<1x32xf32>
    %178 = vector.broadcast %177 : vector<1x32xf32> to vector<32x32xf32>
    %179 = arith.addf %175, %178 : vector<32x32xf32>
    %180 = arith.addf %155, %179 : vector<32x32xf32>
    %c0_84 = arith.constant 0 : index
    %c0_85 = arith.constant 0 : index
    %c0_86 = arith.constant 0 : index
    %181 = vector.load %arg20[%c0_84, %c0_85, %c0_86] : memref<1x1x32xf32, #tpu.memory_space<vmem>>, vector<1x1x32xf32>
    %182 = vector.shape_cast %181 : vector<1x1x32xf32> to vector<1x32xf32>
    %c0_87 = arith.constant 0 : index
    %c0_88 = arith.constant 0 : index
    %c0_89 = arith.constant 0 : index
    %183 = vector.load %arg21[%c0_87, %c0_88, %c0_89] : memref<1x1x32xf32, #tpu.memory_space<vmem>>, vector<1x1x32xf32>
    %184 = vector.shape_cast %183 : vector<1x1x32xf32> to vector<1x32xf32>
    %cst_90 = arith.constant dense<0.000000e+00> : vector<32xf32>
    %185 = vector.multi_reduction <add>, %180, %cst_90 [1] : vector<32x32xf32> to vector<32xf32>
    %186 = vector.shape_cast %185 : vector<32xf32> to vector<32x1xf32>
    %cst_91 = arith.constant 3.200000e+01 : f32
    %187 = vector.broadcast %cst_91 : f32 to vector<32x1xf32>
    %188 = arith.divf %186, %187 : vector<32x1xf32>
    %189 = vector.broadcast %188 : vector<32x1xf32> to vector<32x32xf32>
    %190 = arith.subf %180, %189 : vector<32x32xf32>
    %191 = arith.mulf %190, %190 : vector<32x32xf32>
    %cst_92 = arith.constant dense<0.000000e+00> : vector<32xf32>
    %192 = vector.multi_reduction <add>, %191, %cst_92 [1] : vector<32x32xf32> to vector<32xf32>
    %193 = vector.shape_cast %192 : vector<32xf32> to vector<32x1xf32>
    %cst_93 = arith.constant 3.200000e+01 : f32
    %194 = vector.broadcast %cst_93 : f32 to vector<32x1xf32>
    %195 = arith.divf %193, %194 : vector<32x1xf32>
    %196 = vector.broadcast %188 : vector<32x1xf32> to vector<32x32xf32>
    %197 = arith.subf %180, %196 : vector<32x32xf32>
    %cst_94 = arith.constant 9.99999974E-6 : f32
    %198 = vector.broadcast %cst_94 : f32 to vector<32x1xf32>
    %199 = arith.addf %195, %198 : vector<32x1xf32>
    %200 = math.rsqrt %199 : vector<32x1xf32>
    %201 = vector.broadcast %200 : vector<32x1xf32> to vector<32x32xf32>
    %202 = arith.mulf %197, %201 : vector<32x32xf32>
    %203 = vector.broadcast %182 : vector<1x32xf32> to vector<32x32xf32>
    %204 = arith.mulf %202, %203 : vector<32x32xf32>
    %205 = vector.broadcast %184 : vector<1x32xf32> to vector<32x32xf32>
    %206 = arith.addf %204, %205 : vector<32x32xf32>
    %c0_95 = arith.constant 0 : index
    %c0_96 = arith.constant 0 : index
    %c0_97 = arith.constant 0 : index
    %207 = vector.load %arg38[%c0_95, %c0_96, %c0_97] : memref<1x32x32xf32, #tpu.memory_space<vmem>>, vector<1x32x32xf32>
    %208 = vector.shape_cast %207 : vector<1x32x32xf32> to vector<32x32xf32>
    %209 = vector.shape_cast %206 : vector<32x32xf32> to vector<1x32x32xf32>
    tpu.vector_store %arg38[%c0_95, %c0_96, %c0_97], %209 {strides = array<i32>} : memref<1x32x32xf32, #tpu.memory_space<vmem>>, vector<1x32x32xf32>,
    %c1_i32 = arith.constant 1 : i32
    %210 = arith.cmpi eq, %arg1, %c1_i32 : i32
    %211 = arith.extui %210 : i1 to i32
    %c0_i32_98 = arith.constant 0 : i32
    %212 = arith.cmpi ne, %211, %c0_i32_98 : i32
    scf.if %212 {
      %c0_99 = arith.constant 0 : index
      %c0_100 = arith.constant 0 : index
      %c0_101 = arith.constant 0 : index
      %213 = vector.load %arg3[%c0_99, %c0_100, %c0_101] : memref<1x4x8xf32, #tpu.memory_space<vmem>>, vector<1x4x8xf32>
      %214 = vector.shape_cast %213 : vector<1x4x8xf32> to vector<4x8xf32>
      %c0_102 = arith.constant 0 : index
      %c0_103 = arith.constant 0 : index
      %215 = vector.load %arg22[%c0_102, %c0_103] : memref<32x32xbf16, #tpu.memory_space<vmem>>, vector<32x32xbf16>
      %216 = arith.truncf %3 : vector<4x32xf32> to vector<4x32xbf16>
      %cst_104 = arith.constant dense<0.000000e+00> : vector<4x32xf32>
      %217 = tpu.matmul %216, %215, %cst_104 {dimension_numbers = #tpu.dot_dimension_numbers<[1], [0], [0], [1], [0, 0, 1, 1], [], []>} : vector<4x32xbf16>, vector<32x32xbf16>, vector<4x32xf32> -> vector<4x32xf32>
      %c0_105 = arith.constant 0 : index
      %c0_106 = arith.constant 0 : index
      %218 = vector.load %arg23[%c0_105, %c0_106] : memref<1x32xf32, #tpu.memory_space<vmem>>, vector<1x32xf32>
      %219 = vector.broadcast %218 : vector<1x32xf32> to vector<4x32xf32>
      %220 = arith.addf %217, %219 : vector<4x32xf32>
      %221 = vector.shape_cast %206 : vector<32x32xf32> to vector<4x8x32xf32>
      %222 = vector.shape_cast %220 : vector<4x32xf32> to vector<4x1x32xf32>
      %223 = vector.broadcast %222 : vector<4x1x32xf32> to vector<4x8x32xf32>
      %224 = arith.mulf %221, %223 : vector<4x8x32xf32>
      %cst_107 = arith.constant dense<0.000000e+00> : vector<4x8xf32>
      %225 = vector.multi_reduction <add>, %224, %cst_107 [2] : vector<4x8x32xf32> to vector<4x8xf32>
      %cst_108 = arith.constant 0.000000e+00 : f32
      %226 = vector.broadcast %cst_108 : f32 to vector<4x8xf32>
      %227 = arith.cmpf ogt, %214, %226 : vector<4x8xf32>
      %cst_109 = arith.constant -1.000000e+30 : f32
      %228 = vector.broadcast %cst_109 : f32 to vector<4x8xf32>
      %229 = arith.select %227, %225, %228 : vector<4x8xi1>, vector<4x8xf32>
      %cst_110 = arith.constant dense<0xFF800000> : vector<4xf32>
      %230 = vector.multi_reduction <maximumf>, %229, %cst_110 [1] : vector<4x8xf32> to vector<4xf32>
      %231 = vector.shape_cast %230 : vector<4xf32> to vector<4x1xf32>
      %232 = vector.broadcast %231 : vector<4x1xf32> to vector<4x8xf32>
      %233 = arith.subf %229, %232 : vector<4x8xf32>
      %234 = math.exp %233 : vector<4x8xf32>
      %cst_111 = arith.constant dense<0.000000e+00> : vector<4xf32>
      %235 = vector.multi_reduction <add>, %234, %cst_111 [1] : vector<4x8xf32> to vector<4xf32>
      %236 = vector.shape_cast %235 : vector<4xf32> to vector<4x1xf32>
      %237 = vector.broadcast %236 : vector<4x1xf32> to vector<4x8xf32>
      %238 = arith.divf %234, %237 : vector<4x8xf32>
      %239 = vector.shape_cast %238 : vector<4x8xf32> to vector<4x8x1xf32>
      %240 = vector.broadcast %239 : vector<4x8x1xf32> to vector<4x8x32xf32>
      %241 = arith.mulf %240, %221 : vector<4x8x32xf32>
      %cst_112 = arith.constant dense<0.000000e+00> : vector<4x32xf32>
      %242 = vector.multi_reduction <add>, %241, %cst_112 [1] : vector<4x8x32xf32> to vector<4x32xf32>
      %c0_113 = arith.constant 0 : index
      %c0_114 = arith.constant 0 : index
      %243 = vector.load %arg24[%c0_113, %c0_114] : memref<32x32xbf16, #tpu.memory_space<vmem>>, vector<32x32xbf16>
      %244 = arith.truncf %242 : vector<4x32xf32> to vector<4x32xbf16>
      %cst_115 = arith.constant dense<0.000000e+00> : vector<4x32xf32>
      %245 = tpu.matmul %244, %243, %cst_115 {dimension_numbers = #tpu.dot_dimension_numbers<[1], [0], [0], [1], [0, 0, 1, 1], [], []>} : vector<4x32xbf16>, vector<32x32xbf16>, vector<4x32xf32> -> vector<4x32xf32>
      %c0_116 = arith.constant 0 : index
      %c0_117 = arith.constant 0 : index
      %246 = vector.load %arg25[%c0_116, %c0_117] : memref<1x32xf32, #tpu.memory_space<vmem>>, vector<1x32xf32>
      %247 = vector.broadcast %246 : vector<1x32xf32> to vector<4x32xf32>
      %248 = arith.addf %245, %247 : vector<4x32xf32>
      %c0_118 = arith.constant 0 : index
      %c0_119 = arith.constant 0 : index
      %249 = vector.load %arg26[%c0_118, %c0_119] : memref<32x32xbf16, #tpu.memory_space<vmem>>, vector<32x32xbf16>
      %250 = arith.truncf %0 : vector<2x32xf32> to vector<2x32xbf16>
      %cst_120 = arith.constant dense<0.000000e+00> : vector<2x32xf32>
      %251 = tpu.matmul %250, %249, %cst_120 {dimension_numbers = #tpu.dot_dimension_numbers<[1], [0], [0], [1], [0, 0, 1, 1], [], []>} : vector<2x32xbf16>, vector<32x32xbf16>, vector<2x32xf32> -> vector<2x32xf32>
      %c0_121 = arith.constant 0 : index
      %c0_122 = arith.constant 0 : index
      %252 = vector.load %arg27[%c0_121, %c0_122] : memref<1x32xf32, #tpu.memory_space<vmem>>, vector<1x32xf32>
      %253 = vector.broadcast %252 : vector<1x32xf32> to vector<2x32xf32>
      %254 = arith.addf %251, %253 : vector<2x32xf32>
      %c0_123 = arith.constant 0 : index
      %c0_124 = arith.constant 0 : index
      %255 = vector.load %arg28[%c0_123, %c0_124] : memref<32x32xbf16, #tpu.memory_space<vmem>>, vector<32x32xbf16>
      %256 = arith.truncf %0 : vector<2x32xf32> to vector<2x32xbf16>
      %cst_125 = arith.constant dense<0.000000e+00> : vector<2x32xf32>
      %257 = tpu.matmul %256, %255, %cst_125 {dimension_numbers = #tpu.dot_dimension_numbers<[1], [0], [0], [1], [0, 0, 1, 1], [], []>} : vector<2x32xbf16>, vector<32x32xbf16>, vector<2x32xf32> -> vector<2x32xf32>
      %c0_126 = arith.constant 0 : index
      %c0_127 = arith.constant 0 : index
      %258 = vector.load %arg29[%c0_126, %c0_127] : memref<1x32xf32, #tpu.memory_space<vmem>>, vector<1x32xf32>
      %259 = vector.broadcast %258 : vector<1x32xf32> to vector<2x32xf32>
      %260 = arith.addf %257, %259 : vector<2x32xf32>
      %261 = vector.extract_strided_slice %248 {offsets = [0, 0], sizes = [4, 8], strides = [1, 1]} : vector<4x32xf32> to vector<4x8xf32>
      %262 = arith.truncf %261 : vector<4x8xf32> to vector<4x8xbf16>
      %263 = vector.extract_strided_slice %254 {offsets = [0, 0], sizes = [2, 8], strides = [1, 1]} : vector<2x32xf32> to vector<2x8xf32>
      %264 = arith.truncf %263 : vector<2x8xf32> to vector<2x8xbf16>
      %cst_128 = arith.constant dense<0.000000e+00> : vector<4x2xf32>
      %265 = tpu.matmul %262, %264, %cst_128 {dimension_numbers = #tpu.dot_dimension_numbers<[1], [1], [0], [0], [0, 0, 1, 0], [], []>} : vector<4x8xbf16>, vector<2x8xbf16>, vector<4x2xf32> -> vector<4x2xf32>
      %cst_129 = arith.constant 0.353553385 : f32
      %266 = vector.broadcast %cst_129 : f32 to vector<4x2xf32>
      %267 = arith.mulf %265, %266 : vector<4x2xf32>
      %cst_130 = arith.constant dense<0xFF800000> : vector<4xf32>
      %268 = vector.multi_reduction <maximumf>, %267, %cst_130 [1] : vector<4x2xf32> to vector<4xf32>
      %269 = vector.shape_cast %268 : vector<4xf32> to vector<4x1xf32>
      %270 = vector.broadcast %269 : vector<4x1xf32> to vector<4x2xf32>
      %271 = arith.subf %267, %270 : vector<4x2xf32>
      %272 = math.exp %271 : vector<4x2xf32>
      %cst_131 = arith.constant dense<0.000000e+00> : vector<4xf32>
      %273 = vector.multi_reduction <add>, %272, %cst_131 [1] : vector<4x2xf32> to vector<4xf32>
      %274 = vector.shape_cast %273 : vector<4xf32> to vector<4x1xf32>
      %275 = vector.broadcast %274 : vector<4x1xf32> to vector<4x2xf32>
      %276 = arith.divf %272, %275 : vector<4x2xf32>
      %277 = vector.extract_strided_slice %260 {offsets = [0, 0], sizes = [2, 8], strides = [1, 1]} : vector<2x32xf32> to vector<2x8xf32>
      %278 = arith.truncf %276 : vector<4x2xf32> to vector<4x2xbf16>
      %279 = arith.truncf %277 : vector<2x8xf32> to vector<2x8xbf16>
      %cst_132 = arith.constant dense<0.000000e+00> : vector<4x8xf32>
      %280 = tpu.matmul %278, %279, %cst_132 {dimension_numbers = #tpu.dot_dimension_numbers<[1], [0], [0], [1], [0, 0, 1, 1], [], []>} : vector<4x2xbf16>, vector<2x8xbf16>, vector<4x8xf32> -> vector<4x8xf32>
      %281 = vector.extract_strided_slice %248 {offsets = [0, 8], sizes = [4, 8], strides = [1, 1]} : vector<4x32xf32> to vector<4x8xf32>
      %282 = arith.truncf %281 : vector<4x8xf32> to vector<4x8xbf16>
      %283 = vector.extract_strided_slice %254 {offsets = [0, 8], sizes = [2, 8], strides = [1, 1]} : vector<2x32xf32> to vector<2x8xf32>
      %284 = arith.truncf %283 : vector<2x8xf32> to vector<2x8xbf16>
      %cst_133 = arith.constant dense<0.000000e+00> : vector<4x2xf32>
      %285 = tpu.matmul %282, %284, %cst_133 {dimension_numbers = #tpu.dot_dimension_numbers<[1], [1], [0], [0], [0, 0, 1, 0], [], []>} : vector<4x8xbf16>, vector<2x8xbf16>, vector<4x2xf32> -> vector<4x2xf32>
      %cst_134 = arith.constant 0.353553385 : f32
      %286 = vector.broadcast %cst_134 : f32 to vector<4x2xf32>
      %287 = arith.mulf %285, %286 : vector<4x2xf32>
      %cst_135 = arith.constant dense<0xFF800000> : vector<4xf32>
      %288 = vector.multi_reduction <maximumf>, %287, %cst_135 [1] : vector<4x2xf32> to vector<4xf32>
      %289 = vector.shape_cast %288 : vector<4xf32> to vector<4x1xf32>
      %290 = vector.broadcast %289 : vector<4x1xf32> to vector<4x2xf32>
      %291 = arith.subf %287, %290 : vector<4x2xf32>
      %292 = math.exp %291 : vector<4x2xf32>
      %cst_136 = arith.constant dense<0.000000e+00> : vector<4xf32>
      %293 = vector.multi_reduction <add>, %292, %cst_136 [1] : vector<4x2xf32> to vector<4xf32>
      %294 = vector.shape_cast %293 : vector<4xf32> to vector<4x1xf32>
      %295 = vector.broadcast %294 : vector<4x1xf32> to vector<4x2xf32>
      %296 = arith.divf %292, %295 : vector<4x2xf32>
      %297 = vector.extract_strided_slice %260 {offsets = [0, 8], sizes = [2, 8], strides = [1, 1]} : vector<2x32xf32> to vector<2x8xf32>
      %298 = arith.truncf %296 : vector<4x2xf32> to vector<4x2xbf16>
      %299 = arith.truncf %297 : vector<2x8xf32> to vector<2x8xbf16>
      %cst_137 = arith.constant dense<0.000000e+00> : vector<4x8xf32>
      %300 = tpu.matmul %298, %299, %cst_137 {dimension_numbers = #tpu.dot_dimension_numbers<[1], [0], [0], [1], [0, 0, 1, 1], [], []>} : vector<4x2xbf16>, vector<2x8xbf16>, vector<4x8xf32> -> vector<4x8xf32>
      %301 = vector.extract_strided_slice %248 {offsets = [0, 16], sizes = [4, 8], strides = [1, 1]} : vector<4x32xf32> to vector<4x8xf32>
      %302 = arith.truncf %301 : vector<4x8xf32> to vector<4x8xbf16>
      %303 = vector.extract_strided_slice %254 {offsets = [0, 16], sizes = [2, 8], strides = [1, 1]} : vector<2x32xf32> to vector<2x8xf32>
      %304 = arith.truncf %303 : vector<2x8xf32> to vector<2x8xbf16>
      %cst_138 = arith.constant dense<0.000000e+00> : vector<4x2xf32>
      %305 = tpu.matmul %302, %304, %cst_138 {dimension_numbers = #tpu.dot_dimension_numbers<[1], [1], [0], [0], [0, 0, 1, 0], [], []>} : vector<4x8xbf16>, vector<2x8xbf16>, vector<4x2xf32> -> vector<4x2xf32>
      %cst_139 = arith.constant 0.353553385 : f32
      %306 = vector.broadcast %cst_139 : f32 to vector<4x2xf32>
      %307 = arith.mulf %305, %306 : vector<4x2xf32>
      %cst_140 = arith.constant dense<0xFF800000> : vector<4xf32>
      %308 = vector.multi_reduction <maximumf>, %307, %cst_140 [1] : vector<4x2xf32> to vector<4xf32>
      %309 = vector.shape_cast %308 : vector<4xf32> to vector<4x1xf32>
      %310 = vector.broadcast %309 : vector<4x1xf32> to vector<4x2xf32>
      %311 = arith.subf %307, %310 : vector<4x2xf32>
      %312 = math.exp %311 : vector<4x2xf32>
      %cst_141 = arith.constant dense<0.000000e+00> : vector<4xf32>
      %313 = vector.multi_reduction <add>, %312, %cst_141 [1] : vector<4x2xf32> to vector<4xf32>
      %314 = vector.shape_cast %313 : vector<4xf32> to vector<4x1xf32>
      %315 = vector.broadcast %314 : vector<4x1xf32> to vector<4x2xf32>
      %316 = arith.divf %312, %315 : vector<4x2xf32>
      %317 = vector.extract_strided_slice %260 {offsets = [0, 16], sizes = [2, 8], strides = [1, 1]} : vector<2x32xf32> to vector<2x8xf32>
      %318 = arith.truncf %316 : vector<4x2xf32> to vector<4x2xbf16>
      %319 = arith.truncf %317 : vector<2x8xf32> to vector<2x8xbf16>
      %cst_142 = arith.constant dense<0.000000e+00> : vector<4x8xf32>
      %320 = tpu.matmul %318, %319, %cst_142 {dimension_numbers = #tpu.dot_dimension_numbers<[1], [0], [0], [1], [0, 0, 1, 1], [], []>} : vector<4x2xbf16>, vector<2x8xbf16>, vector<4x8xf32> -> vector<4x8xf32>
      %321 = vector.extract_strided_slice %248 {offsets = [0, 24], sizes = [4, 8], strides = [1, 1]} : vector<4x32xf32> to vector<4x8xf32>
      %322 = arith.truncf %321 : vector<4x8xf32> to vector<4x8xbf16>
      %323 = vector.extract_strided_slice %254 {offsets = [0, 24], sizes = [2, 8], strides = [1, 1]} : vector<2x32xf32> to vector<2x8xf32>
      %324 = arith.truncf %323 : vector<2x8xf32> to vector<2x8xbf16>
      %cst_143 = arith.constant dense<0.000000e+00> : vector<4x2xf32>
      %325 = tpu.matmul %322, %324, %cst_143 {dimension_numbers = #tpu.dot_dimension_numbers<[1], [1], [0], [0], [0, 0, 1, 0], [], []>} : vector<4x8xbf16>, vector<2x8xbf16>, vector<4x2xf32> -> vector<4x2xf32>
      %cst_144 = arith.constant 0.353553385 : f32
      %326 = vector.broadcast %cst_144 : f32 to vector<4x2xf32>
      %327 = arith.mulf %325, %326 : vector<4x2xf32>
      %cst_145 = arith.constant dense<0xFF800000> : vector<4xf32>
      %328 = vector.multi_reduction <maximumf>, %327, %cst_145 [1] : vector<4x2xf32> to vector<4xf32>
      %329 = vector.shape_cast %328 : vector<4xf32> to vector<4x1xf32>
      %330 = vector.broadcast %329 : vector<4x1xf32> to vector<4x2xf32>
      %331 = arith.subf %327, %330 : vector<4x2xf32>
      %332 = math.exp %331 : vector<4x2xf32>
      %cst_146 = arith.constant dense<0.000000e+00> : vector<4xf32>
      %333 = vector.multi_reduction <add>, %332, %cst_146 [1] : vector<4x2xf32> to vector<4xf32>
      %334 = vector.shape_cast %333 : vector<4xf32> to vector<4x1xf32>
      %335 = vector.broadcast %334 : vector<4x1xf32> to vector<4x2xf32>
      %336 = arith.divf %332, %335 : vector<4x2xf32>
      %337 = vector.extract_strided_slice %260 {offsets = [0, 24], sizes = [2, 8], strides = [1, 1]} : vector<2x32xf32> to vector<2x8xf32>
      %338 = arith.truncf %336 : vector<4x2xf32> to vector<4x2xbf16>
      %339 = arith.truncf %337 : vector<2x8xf32> to vector<2x8xbf16>
      %cst_147 = arith.constant dense<0.000000e+00> : vector<4x8xf32>
      %340 = tpu.matmul %338, %339, %cst_147 {dimension_numbers = #tpu.dot_dimension_numbers<[1], [0], [0], [1], [0, 0, 1, 1], [], []>} : vector<4x2xbf16>, vector<2x8xbf16>, vector<4x8xf32> -> vector<4x8xf32>
      %341 = tpu.concatenate %280, %300, %320, %340 in 1 : vector<4x8xf32>, vector<4x8xf32>, vector<4x8xf32>, vector<4x8xf32> -> vector<4x32xf32>
      %c0_148 = arith.constant 0 : index
      %c0_149 = arith.constant 0 : index
      %342 = vector.load %arg30[%c0_148, %c0_149] : memref<32x32xbf16, #tpu.memory_space<vmem>>, vector<32x32xbf16>
      %343 = arith.truncf %341 : vector<4x32xf32> to vector<4x32xbf16>
      %cst_150 = arith.constant dense<0.000000e+00> : vector<4x32xf32>
      %344 = tpu.matmul %343, %342, %cst_150 {dimension_numbers = #tpu.dot_dimension_numbers<[1], [0], [0], [1], [0, 0, 1, 1], [], []>} : vector<4x32xbf16>, vector<32x32xbf16>, vector<4x32xf32> -> vector<4x32xf32>
      %c0_151 = arith.constant 0 : index
      %c0_152 = arith.constant 0 : index
      %345 = vector.load %arg31[%c0_151, %c0_152] : memref<1x32xf32, #tpu.memory_space<vmem>>, vector<1x32xf32>
      %346 = vector.broadcast %345 : vector<1x32xf32> to vector<4x32xf32>
      %347 = arith.addf %344, %346 : vector<4x32xf32>
      %c0_153 = arith.constant 0 : index
      %c0_154 = arith.constant 0 : index
      %348 = vector.load %arg32[%c0_153, %c0_154] : memref<32x32xbf16, #tpu.memory_space<vmem>>, vector<32x32xbf16>
      %349 = arith.truncf %242 : vector<4x32xf32> to vector<4x32xbf16>
      %cst_155 = arith.constant dense<0.000000e+00> : vector<4x32xf32>
      %350 = tpu.matmul %349, %348, %cst_155 {dimension_numbers = #tpu.dot_dimension_numbers<[1], [0], [0], [1], [0, 0, 1, 1], [], []>} : vector<4x32xbf16>, vector<32x32xbf16>, vector<4x32xf32> -> vector<4x32xf32>
      %c0_156 = arith.constant 0 : index
      %c0_157 = arith.constant 0 : index
      %351 = vector.load %arg33[%c0_156, %c0_157] : memref<32x32xbf16, #tpu.memory_space<vmem>>, vector<32x32xbf16>
      %352 = arith.truncf %3 : vector<4x32xf32> to vector<4x32xbf16>
      %cst_158 = arith.constant dense<0.000000e+00> : vector<4x32xf32>
      %353 = tpu.matmul %352, %351, %cst_158 {dimension_numbers = #tpu.dot_dimension_numbers<[1], [0], [0], [1], [0, 0, 1, 1], [], []>} : vector<4x32xbf16>, vector<32x32xbf16>, vector<4x32xf32> -> vector<4x32xf32>
      %354 = arith.addf %350, %353 : vector<4x32xf32>
      %c0_159 = arith.constant 0 : index
      %c0_160 = arith.constant 0 : index
      %355 = vector.load %arg34[%c0_159, %c0_160] : memref<32x32xbf16, #tpu.memory_space<vmem>>, vector<32x32xbf16>
      %356 = arith.truncf %347 : vector<4x32xf32> to vector<4x32xbf16>
      %cst_161 = arith.constant dense<0.000000e+00> : vector<4x32xf32>
      %357 = tpu.matmul %356, %355, %cst_161 {dimension_numbers = #tpu.dot_dimension_numbers<[1], [0], [0], [1], [0, 0, 1, 1], [], []>} : vector<4x32xbf16>, vector<32x32xbf16>, vector<4x32xf32> -> vector<4x32xf32>
      %358 = arith.addf %354, %357 : vector<4x32xf32>
      %c0_162 = arith.constant 0 : index
      %c0_163 = arith.constant 0 : index
      %359 = vector.load %arg35[%c0_162, %c0_163] : memref<1x32xf32, #tpu.memory_space<vmem>>, vector<1x32xf32>
      %360 = vector.broadcast %359 : vector<1x32xf32> to vector<4x32xf32>
      %361 = arith.addf %358, %360 : vector<4x32xf32>
      %362 = arith.addf %361, %3 : vector<4x32xf32>
      %c0_164 = arith.constant 0 : index
      %c0_165 = arith.constant 0 : index
      %363 = vector.load %arg36[%c0_164, %c0_165] : memref<1x32xf32, #tpu.memory_space<vmem>>, vector<1x32xf32>
      %c0_166 = arith.constant 0 : index
      %c0_167 = arith.constant 0 : index
      %364 = vector.load %arg37[%c0_166, %c0_167] : memref<1x32xf32, #tpu.memory_space<vmem>>, vector<1x32xf32>
      %cst_168 = arith.constant dense<0.000000e+00> : vector<4xf32>
      %365 = vector.multi_reduction <add>, %362, %cst_168 [1] : vector<4x32xf32> to vector<4xf32>
      %366 = vector.shape_cast %365 : vector<4xf32> to vector<4x1xf32>
      %cst_169 = arith.constant 3.200000e+01 : f32
      %367 = vector.broadcast %cst_169 : f32 to vector<4x1xf32>
      %368 = arith.divf %366, %367 : vector<4x1xf32>
      %369 = vector.broadcast %368 : vector<4x1xf32> to vector<4x32xf32>
      %370 = arith.subf %362, %369 : vector<4x32xf32>
      %371 = arith.mulf %370, %370 : vector<4x32xf32>
      %cst_170 = arith.constant dense<0.000000e+00> : vector<4xf32>
      %372 = vector.multi_reduction <add>, %371, %cst_170 [1] : vector<4x32xf32> to vector<4xf32>
      %373 = vector.shape_cast %372 : vector<4xf32> to vector<4x1xf32>
      %cst_171 = arith.constant 3.200000e+01 : f32
      %374 = vector.broadcast %cst_171 : f32 to vector<4x1xf32>
      %375 = arith.divf %373, %374 : vector<4x1xf32>
      %376 = vector.broadcast %368 : vector<4x1xf32> to vector<4x32xf32>
      %377 = arith.subf %362, %376 : vector<4x32xf32>
      %cst_172 = arith.constant 9.99999974E-6 : f32
      %378 = vector.broadcast %cst_172 : f32 to vector<4x1xf32>
      %379 = arith.addf %375, %378 : vector<4x1xf32>
      %380 = math.rsqrt %379 : vector<4x1xf32>
      %381 = vector.broadcast %380 : vector<4x1xf32> to vector<4x32xf32>
      %382 = arith.mulf %377, %381 : vector<4x32xf32>
      %383 = vector.broadcast %363 : vector<1x32xf32> to vector<4x32xf32>
      %384 = arith.mulf %382, %383 : vector<4x32xf32>
      %385 = vector.broadcast %364 : vector<1x32xf32> to vector<4x32xf32>
      %386 = arith.addf %384, %385 : vector<4x32xf32>
      %cst_173 = arith.constant dense<0.000000e+00> : vector<2x32xf32>
      %387 = tpu.matmul %2, %386, %cst_173 {dimension_numbers = #tpu.dot_dimension_numbers<[0], [0], [1], [1], [0, 1, 1, 1], [], []>} : vector<4x2xf32>, vector<4x32xf32>, vector<2x32xf32> -> vector<2x32xf32>
      %c0_174 = arith.constant 0 : index
      %c0_175 = arith.constant 0 : index
      %c0_176 = arith.constant 0 : index
      %388 = vector.load %arg39[%c0_174, %c0_175, %c0_176] : memref<1x2x32xf32, #tpu.memory_space<vmem>>, vector<1x2x32xf32>
      %389 = vector.shape_cast %388 : vector<1x2x32xf32> to vector<2x32xf32>
      %390 = vector.shape_cast %387 : vector<2x32xf32> to vector<1x2x32xf32>
      tpu.vector_store %arg39[%c0_174, %c0_175, %c0_176], %390 {strides = array<i32>} : memref<1x2x32xf32, #tpu.memory_space<vmem>>, vector<1x2x32xf32>,
    } else {
    }
    return
  }
  func.func @transform_0(%arg0: i32, %arg1: i32) -> (i32, i32, i32) {
    %c0_i32 = arith.constant 0 : i32
    %c0_i32_0 = arith.constant 0 : i32
    %c0_i32_1 = arith.constant 0 : i32
    return %arg0, %c0_i32, %c0_i32_0 : i32, i32, i32
  }
  func.func @transform_1(%arg0: i32, %arg1: i32) -> (i32, i32, i32) {
    %c0_i32 = arith.constant 0 : i32
    %c0_i32_0 = arith.constant 0 : i32
    %c0_i32_1 = arith.constant 0 : i32
    return %arg0, %c0_i32, %c0_i32_0 : i32, i32, i32
  }
  func.func @transform_2(%arg0: i32, %arg1: i32) -> (i32, i32, i32) {
    %c0_i32 = arith.constant 0 : i32
    %c0_i32_0 = arith.constant 0 : i32
    %c0_i32_1 = arith.constant 0 : i32
    return %arg0, %c0_i32, %c0_i32_0 : i32, i32, i32
  }
  func.func @transform_3(%arg0: i32, %arg1: i32) -> (i32, i32) {
    %c0_i32 = arith.constant 0 : i32
    %c0_i32_0 = arith.constant 0 : i32
    %c0_i32_1 = arith.constant 0 : i32
    return %c0_i32, %c0_i32_0 : i32, i32
  }
  func.func @transform_4(%arg0: i32, %arg1: i32) -> (i32, i32, i32) {
    %c0_i32 = arith.constant 0 : i32
    %c0_i32_0 = arith.constant 0 : i32
    %c0_i32_1 = arith.constant 0 : i32
    return %arg1, %c0_i32, %c0_i32_0 : i32, i32, i32
  }
  func.func @transform_5(%arg0: i32, %arg1: i32) -> (i32, i32, i32) {
    %c0_i32 = arith.constant 0 : i32
    %c0_i32_0 = arith.constant 0 : i32
    %c0_i32_1 = arith.constant 0 : i32
    return %arg1, %c0_i32, %c0_i32_0 : i32, i32, i32
  }
  func.func @transform_6(%arg0: i32, %arg1: i32) -> (i32, i32, i32) {
    %c0_i32 = arith.constant 0 : i32
    %c0_i32_0 = arith.constant 0 : i32
    %c0_i32_1 = arith.constant 0 : i32
    return %arg1, %c0_i32, %c0_i32_0 : i32, i32, i32
  }
  func.func @transform_7(%arg0: i32, %arg1: i32) -> (i32, i32, i32) {
    %c0_i32 = arith.constant 0 : i32
    %c0_i32_0 = arith.constant 0 : i32
    %c0_i32_1 = arith.constant 0 : i32
    return %arg1, %c0_i32, %c0_i32_0 : i32, i32, i32
  }
  func.func @transform_8(%arg0: i32, %arg1: i32) -> (i32, i32, i32) {
    %c0_i32 = arith.constant 0 : i32
    %c0_i32_0 = arith.constant 0 : i32
    %c0_i32_1 = arith.constant 0 : i32
    return %arg1, %c0_i32, %c0_i32_0 : i32, i32, i32
  }
  func.func @transform_9(%arg0: i32, %arg1: i32) -> (i32, i32, i32) {
    %c0_i32 = arith.constant 0 : i32
    %c0_i32_0 = arith.constant 0 : i32
    %c0_i32_1 = arith.constant 0 : i32
    return %arg1, %c0_i32, %c0_i32_0 : i32, i32, i32
  }
  func.func @transform_10(%arg0: i32, %arg1: i32) -> (i32, i32, i32) {
    %c0_i32 = arith.constant 0 : i32
    %c0_i32_0 = arith.constant 0 : i32
    %c0_i32_1 = arith.constant 0 : i32
    return %arg1, %c0_i32, %c0_i32_0 : i32, i32, i32
  }
  func.func @transform_11(%arg0: i32, %arg1: i32) -> (i32, i32, i32) {
    %c0_i32 = arith.constant 0 : i32
    %c0_i32_0 = arith.constant 0 : i32
    %c0_i32_1 = arith.constant 0 : i32
    return %arg1, %c0_i32, %c0_i32_0 : i32, i32, i32
  }
  func.func @transform_12(%arg0: i32, %arg1: i32) -> (i32, i32, i32) {
    %c0_i32 = arith.constant 0 : i32
    %c0_i32_0 = arith.constant 0 : i32
    %c0_i32_1 = arith.constant 0 : i32
    return %arg1, %c0_i32, %c0_i32_0 : i32, i32, i32
  }
  func.func @transform_13(%arg0: i32, %arg1: i32) -> (i32, i32, i32) {
    %c0_i32 = arith.constant 0 : i32
    %c0_i32_0 = arith.constant 0 : i32
    %c0_i32_1 = arith.constant 0 : i32
    return %arg1, %c0_i32, %c0_i32_0 : i32, i32, i32
  }
  func.func @transform_14(%arg0: i32, %arg1: i32) -> (i32, i32, i32) {
    %c0_i32 = arith.constant 0 : i32
    %c0_i32_0 = arith.constant 0 : i32
    %c0_i32_1 = arith.constant 0 : i32
    return %arg1, %c0_i32, %c0_i32_0 : i32, i32, i32
  }
  func.func @transform_15(%arg0: i32, %arg1: i32) -> (i32, i32, i32) {
    %c0_i32 = arith.constant 0 : i32
    %c0_i32_0 = arith.constant 0 : i32
    %c0_i32_1 = arith.constant 0 : i32
    return %arg1, %c0_i32, %c0_i32_0 : i32, i32, i32
  }
  func.func @transform_16(%arg0: i32, %arg1: i32) -> (i32, i32, i32) {
    %c0_i32 = arith.constant 0 : i32
    %c0_i32_0 = arith.constant 0 : i32
    %c0_i32_1 = arith.constant 0 : i32
    return %arg1, %c0_i32, %c0_i32_0 : i32, i32, i32
  }
  func.func @transform_17(%arg0: i32, %arg1: i32) -> (i32, i32, i32) {
    %c0_i32 = arith.constant 0 : i32
    %c0_i32_0 = arith.constant 0 : i32
    %c0_i32_1 = arith.constant 0 : i32
    return %arg1, %c0_i32, %c0_i32_0 : i32, i32, i32
  }
  func.func @transform_18(%arg0: i32, %arg1: i32) -> (i32, i32, i32) {
    %c0_i32 = arith.constant 0 : i32
    %c0_i32_0 = arith.constant 0 : i32
    %c0_i32_1 = arith.constant 0 : i32
    return %arg1, %c0_i32, %c0_i32_0 : i32, i32, i32
  }
  func.func @transform_19(%arg0: i32, %arg1: i32) -> (i32, i32, i32) {
    %c0_i32 = arith.constant 0 : i32
    %c0_i32_0 = arith.constant 0 : i32
    %c0_i32_1 = arith.constant 0 : i32
    return %arg1, %c0_i32, %c0_i32_0 : i32, i32, i32
  }
  func.func @transform_20(%arg0: i32, %arg1: i32) -> (i32, i32) {
    %c0_i32 = arith.constant 0 : i32
    %c0_i32_0 = arith.constant 0 : i32
    %c0_i32_1 = arith.constant 0 : i32
    return %c0_i32, %c0_i32_0 : i32, i32
  }
  func.func @transform_21(%arg0: i32, %arg1: i32) -> (i32, i32) {
    %c0_i32 = arith.constant 0 : i32
    %c0_i32_0 = arith.constant 0 : i32
    %c0_i32_1 = arith.constant 0 : i32
    return %c0_i32, %c0_i32_0 : i32, i32
  }
  func.func @transform_22(%arg0: i32, %arg1: i32) -> (i32, i32) {
    %c0_i32 = arith.constant 0 : i32
    %c0_i32_0 = arith.constant 0 : i32
    %c0_i32_1 = arith.constant 0 : i32
    return %c0_i32, %c0_i32_0 : i32, i32
  }
  func.func @transform_23(%arg0: i32, %arg1: i32) -> (i32, i32) {
    %c0_i32 = arith.constant 0 : i32
    %c0_i32_0 = arith.constant 0 : i32
    %c0_i32_1 = arith.constant 0 : i32
    return %c0_i32, %c0_i32_0 : i32, i32
  }
  func.func @transform_24(%arg0: i32, %arg1: i32) -> (i32, i32) {
    %c0_i32 = arith.constant 0 : i32
    %c0_i32_0 = arith.constant 0 : i32
    %c0_i32_1 = arith.constant 0 : i32
    return %c0_i32, %c0_i32_0 : i32, i32
  }
  func.func @transform_25(%arg0: i32, %arg1: i32) -> (i32, i32) {
    %c0_i32 = arith.constant 0 : i32
    %c0_i32_0 = arith.constant 0 : i32
    %c0_i32_1 = arith.constant 0 : i32
    return %c0_i32, %c0_i32_0 : i32, i32
  }
  func.func @transform_26(%arg0: i32, %arg1: i32) -> (i32, i32) {
    %c0_i32 = arith.constant 0 : i32
    %c0_i32_0 = arith.constant 0 : i32
    %c0_i32_1 = arith.constant 0 : i32
    return %c0_i32, %c0_i32_0 : i32, i32
  }
  func.func @transform_27(%arg0: i32, %arg1: i32) -> (i32, i32) {
    %c0_i32 = arith.constant 0 : i32
    %c0_i32_0 = arith.constant 0 : i32
    %c0_i32_1 = arith.constant 0 : i32
    return %c0_i32, %c0_i32_0 : i32, i32
  }
  func.func @transform_28(%arg0: i32, %arg1: i32) -> (i32, i32) {
    %c0_i32 = arith.constant 0 : i32
    %c0_i32_0 = arith.constant 0 : i32
    %c0_i32_1 = arith.constant 0 : i32
    return %c0_i32, %c0_i32_0 : i32, i32
  }
  func.func @transform_29(%arg0: i32, %arg1: i32) -> (i32, i32) {
    %c0_i32 = arith.constant 0 : i32
    %c0_i32_0 = arith.constant 0 : i32
    %c0_i32_1 = arith.constant 0 : i32
    return %c0_i32, %c0_i32_0 : i32, i32
  }
  func.func @transform_30(%arg0: i32, %arg1: i32) -> (i32, i32) {
    %c0_i32 = arith.constant 0 : i32
    %c0_i32_0 = arith.constant 0 : i32
    %c0_i32_1 = arith.constant 0 : i32
    return %c0_i32, %c0_i32_0 : i32, i32
  }
  func.func @transform_31(%arg0: i32, %arg1: i32) -> (i32, i32) {
    %c0_i32 = arith.constant 0 : i32
    %c0_i32_0 = arith.constant 0 : i32
    %c0_i32_1 = arith.constant 0 : i32
    return %c0_i32, %c0_i32_0 : i32, i32
  }
  func.func @transform_32(%arg0: i32, %arg1: i32) -> (i32, i32) {
    %c0_i32 = arith.constant 0 : i32
    %c0_i32_0 = arith.constant 0 : i32
    %c0_i32_1 = arith.constant 0 : i32
    return %c0_i32, %c0_i32_0 : i32, i32
  }
  func.func @transform_33(%arg0: i32, %arg1: i32) -> (i32, i32) {
    %c0_i32 = arith.constant 0 : i32
    %c0_i32_0 = arith.constant 0 : i32
    %c0_i32_1 = arith.constant 0 : i32
    return %c0_i32, %c0_i32_0 : i32, i32
  }
  func.func @transform_34(%arg0: i32, %arg1: i32) -> (i32, i32) {
    %c0_i32 = arith.constant 0 : i32
    %c0_i32_0 = arith.constant 0 : i32
    %c0_i32_1 = arith.constant 0 : i32
    return %c0_i32, %c0_i32_0 : i32, i32
  }
  func.func @transform_35(%arg0: i32, %arg1: i32) -> (i32, i32) {
    %c0_i32 = arith.constant 0 : i32
    %c0_i32_0 = arith.constant 0 : i32
    %c0_i32_1 = arith.constant 0 : i32
    return %c0_i32, %c0_i32_0 : i32, i32
  }
  func.func @transform_36(%arg0: i32, %arg1: i32) -> (i32, i32, i32) {
    %c0_i32 = arith.constant 0 : i32
    %c0_i32_0 = arith.constant 0 : i32
    %c0_i32_1 = arith.constant 0 : i32
    return %arg0, %c0_i32, %c0_i32_0 : i32, i32, i32
  }
  func.func @transform_37(%arg0: i32, %arg1: i32) -> (i32, i32, i32) {
    %c0_i32 = arith.constant 0 : i32
    %c0_i32_0 = arith.constant 0 : i32
    %c0_i32_1 = arith.constant 0 : i32
    return %arg0, %c0_i32, %c0_i32_0 : i32, i32, i32
  }
}

</mosaic_0001>

<bundles_post_ra>
// kernel: tpu_custom_call.1
= control target key start
LH: loop header
LB: loop body
LE: loop exit
PB: predicated region body
PF: predicated region fallthrough
CT: control target
= control target key end

     0   :  { %s8279_s6 = smov 1   ;;  %s8280_s10 = smov 2   ;;  %s9986_s0 = inlined_call_operand.smem [shape: u32[38], index: -1, kind: input, shape index: {}] }
   0x1   :  { %s8371_s5 = sld [smem:[%s9986_s0]]   ;;  %s8281_s14 = smov 3  }
   0x2   :  { %s8376_s9 = sld [smem:[%s9986_s0 + %s8279_s6]]   ;;  %s8282_s18 = smov 4  }
   0x3   :  { %s8381_s13 = sld [smem:[%s9986_s0 + %s8280_s10]]   ;;  %s8283_s22 = smov 5  }
   0x4   :  { %s8386_s17 = sld [smem:[%s9986_s0 + %s8281_s14]]   ;;  %s8284_s26 = smov 6  }
   0x5   :  { %s8391_s21 = sld [smem:[%s9986_s0 + %s8282_s18]]   ;;  %s8285_s30 = smov 7  }
   0x6   :  { %s8396_s25 = sld [smem:[%s9986_s0 + %s8283_s22]]   ;;  %s8286_s4 = smov 8  }
   0x7   :  { %10054 = sst [smem:[#allocation45_spill]] %s8371_s5  ;;  %s8287_s10 = smov 9  }
   0x8   :  { %10055 = sst [smem:[#allocation46_spill]] %s8376_s9  ;;  %s8288_s15 = smov 10  }
   0x9   :  { %10056 = sst [smem:[#allocation47_spill]] %s8381_s13  ;;  %s8289_s20 = smov 11  }
   0xa   :  { %10057 = sst [smem:[#allocation48_spill]] %s8386_s17  ;;  %s8291_s1 = smov 13  }
   0xb   :  { %10058 = sst [smem:[#allocation49_spill]] %s8391_s21  ;;  %s8292_s7 = smov 14  }
   0xc   :  { %10059 = sst [smem:[#allocation50_spill]] %s8396_s25  ;;  %s8294_s22 = smov 16  }
   0xd   :  { %s8401_s29 = sld [smem:[%s9986_s0 + %s8284_s26]]   ;;  %s8290_s26 = smov 12  }
   0xe   :  { %s8406_s3 = sld [smem:[%s9986_s0 + %s8285_s30]]   ;;  %s8295_s28 = smov 17  }
   0xf   :  { %s8411_s8 = sld [smem:[%s9986_s0 + %s8286_s4]]  }
  0x10   :  { %s8416_s14 = sld [smem:[%s9986_s0 + %s8287_s10]]  }
  0x11   :  { %s8421_s19 = sld [smem:[%s9986_s0 + %s8288_s15]]   ;;  %s8293_s15 = smov 15  }
  0x12   :  { %s8426_s24 = sld [smem:[%s9986_s0 + %s8289_s20]]  }
  0x13   :  { %10060 = sst [smem:[#allocation51_spill]] %s8401_s29 }
  0x14   :  { %10061 = sst [smem:[#allocation52_spill]] %s8406_s3 }
  0x15   :  { %10062 = sst [smem:[#allocation53_spill]] %s8411_s8 }
  0x16   :  { %10063 = sst [smem:[#allocation54_spill]] %s8416_s14 }
  0x17   :  { %10064 = sst [smem:[#allocation55_spill]] %s8421_s19 }
  0x18   :  { %10065 = sst [smem:[#allocation56_spill]] %s8426_s24 }
  0x19   :  { %s8431_s30 = sld [smem:[%s9986_s0 + %s8290_s26]]  }
  0x1a   :  { %s8436_s6 = sld [smem:[%s9986_s0 + %s8291_s1]]  }
  0x1b   :  { %s8441_s12 = sld [smem:[%s9986_s0 + %s8292_s7]]   ;;  %s8296_s7 = smov 18  }
  0x1c   :  { %s8446_s20 = sld [smem:[%s9986_s0 + %s8293_s15]]   ;;  %s8297_s15 = smov 19  }
  0x1d   :  { %s8451_s27 = sld [smem:[%s9986_s0 + %s8294_s22]]   ;;  %s8298_s22 = smov 20  }
  0x1e   :  { %s8456_s4 = sld [smem:[%s9986_s0 + %s8295_s28]]   ;;  %s8299_s28 = smov 21  }
  0x1f   :  { %10066 = sst [smem:[#allocation57_spill]] %s8431_s30 }
  0x20   :  { %10067 = sst [smem:[#allocation58_spill]] %s8436_s6 }
  0x21   :  { %10068 = sst [smem:[#allocation59_spill]] %s8441_s12 }
  0x22   :  { %10069 = sst [smem:[#allocation60_spill]] %s8446_s20 }
  0x23   :  { %10070 = sst [smem:[#allocation61_spill]] %s8451_s27 }
  0x24   :  { %10071 = sst [smem:[#allocation62_spill]] %s8456_s4 }
  0x25   :  { %s8461_s13 = sld [smem:[%s9986_s0 + %s8296_s7]]   ;;  %s8300_s7 = smov 22  }
  0x26   :  { %s8466_s5 = sld [smem:[%s9986_s0 + %s8297_s15]]   ;;  %s8301_s15 = smov 23  }
  0x27   :  { %s8471_s12 = sld [smem:[%s9986_s0 + %s8298_s22]]   ;;  %s8302_s22 = smov 24  }
  0x28   :  { %s8476_s29 = sld [smem:[%s9986_s0 + %s8299_s28]]   ;;  %s8303_s28 = smov 25  }
  0x29   :  { %s8481_s21 = sld [smem:[%s9986_s0 + %s8300_s7]]   ;;  %s8304_s7 = smov 26  }
  0x2b   :  { %10072 = sst [smem:[#allocation63_spill]] %s8461_s13 }
  0x2c   :  { %10073 = sst [smem:[#allocation64_spill]] %s8466_s5 }
  0x2d   :  { %10074 = sst [smem:[#allocation65_spill]] %s8471_s12 }
  0x2e   :  { %10075 = sst [smem:[#allocation66_spill]] %s8476_s29 }
  0x2f   :  { %10076 = sst [smem:[#allocation67_spill]] %s8481_s21 }
  0x30   :  { %s8486_s5 = sld [smem:[%s9986_s0 + %s8301_s15]]   ;;  %s8305_s15 = smov 27  }
  0x31   :  { %s8491_s12 = sld [smem:[%s9986_s0 + %s8302_s22]]   ;;  %s8306_s22 = smov 28  }
  0x32   :  { %s8496_s29 = sld [smem:[%s9986_s0 + %s8303_s28]]   ;;  %s8307_s28 = smov 29  }
  0x33   :  { %s8501_s13 = sld [smem:[%s9986_s0 + %s8304_s7]]   ;;  %s8308_s7 = smov 30  }
  0x34   :  { %s8506_s4 = sld [smem:[%s9986_s0 + %s8305_s15]]   ;;  %s8309_s15 = smov 31  }
  0x35   :  { %s8516_s27 = sld [smem:[%s9986_s0 + %s8307_s28]]   ;;  %s8311_s28 = smov 33  }
  0x36   :  { %10077 = sst [smem:[#allocation68_spill]] %s8486_s5 }
  0x37   :  { %10078 = sst [smem:[#allocation69_spill]] %s8491_s12 }
  0x38   :  { %s8511_s12 = sld [smem:[%s9986_s0 + %s8306_s22]]   ;;  %s8310_s22 = smov 32  }
  0x39   :  { %10079 = sst [smem:[#allocation70_spill]] %s8501_s13 }
  0x3a   :  { %10080 = sst [smem:[#allocation71_spill]] %s8506_s4 }
  0x3b   :  { %s8521_s20 = sld [smem:[%s9986_s0 + %s8308_s7]]   ;;  %s8312_s7 = smov 34  }
  0x3c   :  { %s8526_s6 = sld [smem:[%s9986_s0 + %s8309_s15]]   ;;  %s8313_s15 = smov 35  }
  0x3d   :  { %s8536_s30 = sld [smem:[%s9986_s0 + %s8311_s28]]   ;;  %s8315_s28 = smov 37  }
  0x3e   :  { %10081 = sst [smem:[#allocation72_spill]] %s8511_s12 }
  0x3f   :  { %s8531_s12 = sld [smem:[%s9986_s0 + %s8310_s22]]   ;;  %s8314_s22 = smov 36  }
  0x40   :  { %s8541_s24 = sld [smem:[%s9986_s0 + %s8312_s7]]  }
  0x41   :  { %10082 = sst [smem:[#allocation73_spill]] %s8521_s20 }
  0x42   :  { %10083 = sst [smem:[#allocation74_spill]] %s8526_s6 }
  0x43   :  { %10085 = sst [smem:[#allocation76_spill]] %s8536_s30 }
  0x44   :  { %s8546_s6 = sld [smem:[%s9986_s0 + %s8313_s15]]  }
  0x45   :  { %10084 = sst [smem:[#allocation75_spill]] %s8531_s12 }
  0x46   :  { %10086 = sst [smem:[#allocation77_spill]] %s8541_s24 }
  0x47   :  { %s8551_s19 = sld [smem:[%s9986_s0 + %s8314_s22]]  }
  0x48   :  { %s8556_s30 = sld [smem:[%s9986_s0 + %s8315_s28]]  }
  0x4a   :  { %10087 = sst [smem:[#allocation78_spill]] %s8546_s6 }
  0x4d   :  { %10088 = sst [smem:[#allocation79_spill]] %s8551_s19 }
  0x4e   :  { %10089 = sst [smem:[#allocation80_spill]] %s8556_s30 }
  0x4f   :  { %81 = vsyncpa [#allocation3], 0 }
  0x50   :  { %83 = vsyncpa [#allocation3 + $0x1], 0 }
  0x51   :  { %84 = vsyncpa [#allocation6], 0 }
  0x52   :  { %85 = vsyncpa [#allocation22], 0 }
  0x53   :  { %86 = vsyncpa [#allocation25], 0 }
  0x54   :  { %87 = vsyncpa [#allocation28], 0 }
  0x55   :  { %88 = vsyncpa [#allocation31], 0 }
  0x56   :  { %89 = vsyncpa [#allocation4], 0 }
  0x57   :  { %91 = vsyncpa [#allocation4 + $0x1], 0 }
  0x58   :  { %92 = vsyncpa [#allocation34], 0 }
  0x59   :  { %94 = vsyncpa [#allocation34 + $0x1], 0  ;;  %s8558_s7 = smov 0   ;;  %s8560_s10 = smov 0  }
  0x5a   :  { %s8562_s11 = smov 0   ;;  %s8564_s15 = smov 0  }
  0x5b   :  { %s8566_s0 = smov 0   ;;  %s8568_s16 = smov 0  }
  0x5c   :  { %s8570_s18 = smov 0   ;;  %s8572_s22 = smov 0  }
  0x5d   :  { %s8574_s23 = smov 0   ;;  %s8576_s26 = smov 0  }
  0x5e   :  { %s8578_s28 = smov 0  }
  0x5f LB: > { %s10090_s21 = sld [smem:[#allocation67_spill]]  ;;  %s10091_s20 = sld [smem:[#allocation73_spill]]  ;;  %s8265_s22 = sphi %s8572_s22, %s10210_s22   ;;  %s8261_s18 = sphi %s8570_s18, %s10201_s18   ;;  %s8257_s16 = sphi %s8568_s16, %s10209_s16   ;;  %s8253_s0 = sphi %s8566_s0, %s10208_s0   ;;  %s8249_s15 = sphi %s8564_s15, %s10207_s15   ;;  %s8245_s11 = sphi %s8562_s11, %s10206_s11   ;;  %s8241_s10 = sphi %s8560_s10, %s10205_s10   ;;  %s8237_s7 = sphi %s8558_s7, %s10204_s7   ;;  %s8277_s28 = sphi %s8578_s28, %s100_s28   ;;  %s8273_s26 = sphi %s8576_s26, %s10211_s26   ;;  %s8269_s23 = sphi %s8574_s23, %s10202_s23  }
  0x60   : > { %s10092_s12 = sld [smem:[#allocation75_spill]]  ;;  %s10093_s9 = sld [smem:[#allocation46_spill]] }
  0x61   : > { %s10094_s4 = sld [smem:[#allocation71_spill]]  ;;  %s10095_s13 = sld [smem:[#allocation70_spill]] }
  0x62   : > { %s10096_s5 = sld [smem:[#allocation68_spill]]  ;;  %s10097_s17 = sld [smem:[#allocation48_spill]] }
  0x63   : > { %10098 = sst [smem:[#allocation81_spill]] %s8249_s15  ;;  %s8614_s1 = sadd.s32 4294967295, %s8277_s28  }
  0x64   : > { %10099 = sst [smem:[#allocation82_spill]] %s8261_s18  ;;  %s6316_s2 = sadd.s32 4294967294, %s8277_s28  }
  0x65   : > { %10100 = sst [smem:[#allocation83_spill]] %s8265_s22  ;;  %s109_s30 = sadd.s32 1, %s8269_s23 }
  0x66   : > { %10101 = sst [smem:[#allocation84_spill]] %s8269_s23  ;;  %s112_s19 = sadd.s32 1, %s8273_s26 }
  0x67   : > { %p110_p0 = scmp.ge.s32.totalorder %s109_s30, 2  ;;  %s145_s6 = sadd.s32 1, %s8257_s16 }
  0x68   : > { %p152_p1 = scmp.ne.s32.totalorder %s8257_s16, %s8253_s0  ;;  %p153_p2 = scmp.eq.s32.totalorder %s8277_s28, 0 }
  0x69   : > { %s10213_s30 = smov (%p110_p0, %s109_s30), 0  ;;  %s10215_s19 = smov (!%p110_p0, %s112_s19), %s8273_s26 }
  0x6a   : > { %10102 = sst [smem:[#allocation85_spill]] %s10213_s30  ;;  %p8631_p3 = por %p153_p2, %p152_p1 }
  0x6b   : > { %p10012_p4 = scmp.ne.s32.totalorder %s8253_s0, %s8249_s15  ;;  %p114_p5 = scmp.ge.s32.totalorder %s10215_s19, 2 }
  0x6c   : > { %s10103_s24 = scalar_select %p8631_p3, 1, 0 }
  0x6d   : > { %p10013_p6 = scmp.eq.s32.totalorder %s8614_s1, 0  ;;  %s241_s22 = ssub.s32 %s8269_s23, %s10213_s30 }
  0x6e   : > { %s244_s18 = sadd.s32 1, %s8245_s11  ;;  %s10217_s19 = smov (%p114_p5, %s10215_s19), 0 }
  0x6f   : > { %10104 = sst [smem:[#allocation86_spill]] %s10217_s19  ;;  %p8648_p7 = por %p10013_p6, %p10012_p4 }
  0x70   : > { %p242_p8 = scmp.eq.s32.totalorder %s241_s22, 0  ;;  %s142_s8 = ssub.s32 %s8273_s26, %s10217_s19 }
  0x71   : > { %s10105_s14 = scalar_select %p8648_p7, 1, 0 }
  0x72   : > { %p251_p9 = scmp.ne.s32.totalorder %s8245_s11, %s8241_s10  ;;  %p143_p10 = scmp.eq.s32.totalorder %s142_s8, 0 }
  0x73   : > { %p257_p11 = scmp.ne.s32.totalorder %s8241_s10, %s8237_s7  ;;  %p981_p0 = scmp.eq.s32.totalorder %s8614_s1, 3 }
  0x74   : > { %s8659_s30 = scalar_select %p242_p8, %s8245_s11, %s244_s18  }
  0x75   : > { %s8662_s3 = scalar_select %p143_p10, %s8257_s16, %s145_s6  }
  0x76   : > { %10106 = sst [smem:[#allocation87_spill]] %s8659_s30  ;;  %p8666_p12 = por %p251_p9, %p153_p2 }
  0x77   : > { %10107 = sst [smem:[#allocation88_spill]] %s8662_s3  ;;  %p8672_p13 = por %p257_p11, %p10013_p6 }
  0x78   : > { %s10108_s25 = scalar_select %p8666_p12, 1, 0 }
  0x79   : > { %s10109_s23 = scalar_select %p8672_p13, 1, 0 }
  0x7a   : > { %p987_p5 = scmp.eq.s32.totalorder %s6316_s2, 3  ;;  %p6317_p4 = scmp.ge.s32.totalorder %s8277_s28, 1 }
  0x7b   : > { %p1020_p8 = scmp.lt.s32.totalorder %s8277_s28, 5  ;;  %p8682_p10 = por %p981_p0, %p152_p1 }
  0x7c   : > { %p10112_p2 = scmp.ne.s32.totalorder %s8253_s0, %s8249_s15  ;;  %s8316_s18 = smov [#allocation5]  }
  0x7d   : > { %s10110_s8 = scalar_select %p8682_p10, 1, 0 }
  0x7e   : > { %p8689_p9 = por %p987_p5, %p10112_p2  ;;  %p8693_p11 = pnand %p6317_p4, %p1020_p8 }
  0x7f   : > { %10111 = sst [smem:[#allocation89_spill]] %s10110_s8  ;;  %s1033_s22 = sshll.u32 %s8316_s18, 4  ;;  %s1034_s22 = int_to_ptr.vmem [resolvable:$true] %s1033_s22 }
  0x80   : > { %s10113_s6 = scalar_select %p8689_p9, 1, 0 }
  0x81   : > { %s10115_s7 = scalar_select %p8693_p11, 1, 0 }
  0x82   : > { %10114 = sst [smem:[#allocation90_spill]] %s10113_s6  ;;  %p7071_p6 = pneg %p8693_p11 }
  0x83   : > { %s8317_s2 = smov [#allocation21]   ;;  %p10116_p1 = scmp.eq.s32.totalorder %s8614_s1, 0 }
  0x84   : > { %s1063_s19 = sshll.u32 %s8317_s2, 4  ;;  %s7451_s30 = scalar_lea.hbm %s10097_s17, 32  ;;  %s8705_s19 = int_to_ptr.vmem [resolvable:$true] %s1063_s19 }
  0x85   : > { %p8701_p0 = pnand %p7071_p6, %p10116_p1  ;;  %p7452_p4 = scmp.ne.s32.totalorder %s10097_s17, %s7451_s30 }
  0x86   : > { %p7458_p9 = scmp.lt.u32.totalorder %s7451_s30, %s10097_s17 }
  0x87   : > { %p8711_p5 = pneg %p8701_p0 }
  0x89   : > { %p7454_p8 = pnand %p8711_p5, %p7452_p4 }
  0x8b   : > { %p7455_p2 = pneg %p7454_p8 }
  0x8d   : > { %p7460_p10 = pnand %p7458_p9, %p7455_p2 }
  0x8f   : > { %7463 = shalt.err (!%p7460_p10)
}
  0x90   : > { %s7464_s18 = scalar_lea.vmem %s1034_s22, 32  ;;  %p7472_p7 = scmp.lt.s32.totalorder %s1034_s22, %s1034_s22 }
  0x91   : > { %p7465_p6 = scmp.ne.s32.totalorder %s1034_s22, %s7464_s18  ;;  %p7473_p11 = scmp.lt.s32.totalorder %s7464_s18, %s7464_s18 }
  0x93   : > { %p7467_p1 = pnand %p7465_p6, %p8711_p5  ;;  %p7474_p12 = por %p7473_p11, %p7472_p7 }
  0x95   : > { %p7468_p13 = pneg %p7467_p1 }
  0x97   : > { %p7475_p3 = pnand %p7474_p12, %p7468_p13 }
  0x99   : > { %7478 = shalt.err (!%p7475_p3)
}
  0x9a   : > { %7074 = dma.hbm_to_vmem [thread:$0]  (!%p8701_p0), %s10097_s17, 32, %s1034_s22, [#allocation6]  }
  0x9b   : > { %s7479_s30 = scalar_lea.hbm %s10096_s5, 16 }
  0x9c   : > { %p7480_p10 = scmp.ne.s32.totalorder %s10096_s5, %s7479_s30  ;;  %p7486_p8 = scmp.lt.u32.totalorder %s7479_s30, %s10096_s5 }
  0x9e   : > { %p7482_p9 = pnand %p7480_p10, %p8711_p5 }
  0xa0   : > { %p7483_p4 = pneg %p7482_p9 }
  0xa2   : > { %p7488_p2 = pnand %p7486_p8, %p7483_p4 }
  0xa4   : > { %7491 = shalt.err (!%p7488_p2)
}
  0xa5   : > { %s7492_s2 = scalar_lea.vmem %s8705_s19, 16  ;;  %s7499_s18 = scalar_lea.vmem %s8705_s19, 32 }
  0xa6   : > { %p7493_p3 = scmp.ne.s32.totalorder %s8705_s19, %s7492_s2  ;;  %p7500_p13 = scmp.lt.s32.totalorder %s8705_s19, %s8705_s19 }
  0xa7   : > { %p7501_p11 = scmp.lt.s32.totalorder %s7499_s18, %s7492_s2 }
  0xa8   : > { %p7495_p7 = pnand %p7493_p3, %p8711_p5 }
  0xa9   : > { %p7502_p6 = por %p7501_p11, %p7500_p13 }
  0xaa   : > { %p7496_p12 = pneg %p7495_p7 }
  0xac   : > { %p7503_p1 = pnand %p7502_p6, %p7496_p12 }
  0xae   : > { %7506 = shalt.err (!%p7503_p1)
}
  0xaf   : > { %7080 = dma.hbm_to_vmem [thread:$0]  (!%p8701_p0), %s10096_s5, 16, %s8705_s19, [#allocation22]  }
  0xb0   : > { %s8318_s22 = smov [#allocation24]   ;;  %s8319_s17 = smov [#allocation27]  }
  0xb1   : > { %s1087_s30 = sshll.u32 %s8318_s22, 4  ;;  %s1115_s15 = sshll.u32 %s8319_s17, 4  ;;  %s1088_s30 = int_to_ptr.vmem [resolvable:$true] %s1087_s30  ;;  %s1116_s15 = int_to_ptr.vmem [resolvable:$true] %s1115_s15 }
  0xb2   : > { %s7507_s8 = scalar_lea.hbm %s10095_s13, 256 }
  0xb3   : > { %p7508_p10 = scmp.ne.s32.totalorder %s10095_s13, %s7507_s8  ;;  %p7514_p8 = scmp.lt.u32.totalorder %s7507_s8, %s10095_s13 }
  0xb5   : > { %p7510_p9 = pnand %p7508_p10, %p8711_p5 }
  0xb7   : > { %p7511_p4 = pneg %p7510_p9 }
  0xb9   : > { %p7516_p2 = pnand %p7514_p8, %p7511_p4 }
  0xbb   : > { %7519 = shalt.err (!%p7516_p2)
}
  0xbc   : > { %s7520_s2 = scalar_lea.vmem %s1088_s30, 256  ;;  %p7528_p13 = scmp.lt.s32.totalorder %s1088_s30, %s1088_s30 }
  0xbd   : > { %p7521_p3 = scmp.ne.s32.totalorder %s1088_s30, %s7520_s2  ;;  %p7529_p11 = scmp.lt.s32.totalorder %s7520_s2, %s7520_s2 }
  0xbf   : > { %p7523_p7 = pnand %p7521_p3, %p8711_p5  ;;  %p7530_p6 = por %p7529_p11, %p7528_p13 }
  0xc1   : > { %p7524_p12 = pneg %p7523_p7 }
  0xc3   : > { %p7531_p1 = pnand %p7530_p6, %p7524_p12 }
  0xc5   : > { %7534 = shalt.err (!%p7531_p1)
}
  0xc6   : > { %s10026_s17 = smov 64   ;;  %s10028_s19 = smov 4  }
  0xc7   : > { %7086 = dma.hbm_to_vmem [thread:$0]  (!%p8701_p0), %s10095_s13, 256, %s1088_s30, [#allocation25], %s10026_s17, %s10026_s17, %s10028_s19  }
  0xc8   : > { %s7535_s8 = scalar_lea.hbm %s8516_s27, 16 }
  0xc9   : > { %p7536_p10 = scmp.ne.s32.totalorder %s8516_s27, %s7535_s8  ;;  %p7542_p8 = scmp.lt.u32.totalorder %s7535_s8, %s8516_s27 }
  0xcb   : > { %p7538_p9 = pnand %p7536_p10, %p8711_p5 }
  0xcd   : > { %p7539_p4 = pneg %p7538_p9 }
  0xcf   : > { %p7544_p2 = pnand %p7542_p8, %p7539_p4 }
  0xd1   : > { %7547 = shalt.err (!%p7544_p2)
}
  0xd2   : > { %s7548_s18 = scalar_lea.vmem %s1116_s15, 16  ;;  %s7555_s22 = scalar_lea.vmem %s1116_s15, 32 }
  0xd3   : > { %p7549_p3 = scmp.ne.s32.totalorder %s1116_s15, %s7548_s18  ;;  %p7556_p13 = scmp.lt.s32.totalorder %s1116_s15, %s1116_s15 }
  0xd4   : > { %p7557_p11 = scmp.lt.s32.totalorder %s7555_s22, %s7548_s18 }
  0xd5   : > { %p7551_p7 = pnand %p7549_p3, %p8711_p5 }
  0xd6   : > { %p7558_p6 = por %p7557_p11, %p7556_p13 }
  0xd7   : > { %p7552_p12 = pneg %p7551_p7 }
  0xd9   : > { %p7559_p1 = pnand %p7558_p6, %p7552_p12 }
  0xdb   : > { %7562 = shalt.err (!%p7559_p1)
}
  0xdc   : > { %7092 = dma.hbm_to_vmem [thread:$0]  (!%p8701_p0), %s8516_s27, 16, %s1116_s15, [#allocation28]  }
  0xdd   : > { %s8322_s30 = smov [#allocation20]   ;;  %s8323_s8 = smov [#allocation23]  }
  0xde   : > { %s1049_s2 = sshll.u32 %s8322_s30, 4  ;;  %s1077_s17 = sshll.u32 %s8323_s8, 4  ;;  %s1050_s2 = int_to_ptr.vmem [resolvable:$true] %s1049_s2  ;;  %s1078_s17 = int_to_ptr.vmem [resolvable:$true] %s1077_s17 }
  0xdf   : > { %s7563_s19 = scalar_lea.hbm %s10090_s21, 256 }
  0xe0   : > { %p7564_p10 = scmp.ne.s32.totalorder %s10090_s21, %s7563_s19  ;;  %p7570_p8 = scmp.lt.u32.totalorder %s7563_s19, %s10090_s21 }
  0xe2   : > { %p7566_p9 = pnand %p7564_p10, %p8711_p5 }
  0xe4   : > { %p7567_p4 = pneg %p7566_p9 }
  0xe6   : > { %p7572_p2 = pnand %p7570_p8, %p7567_p4 }
  0xe8   : > { %7575 = shalt.err (!%p7572_p2)
}
  0xe9   : > { %s7576_s18 = scalar_lea.vmem %s1050_s2, 256  ;;  %p7584_p13 = scmp.lt.s32.totalorder %s1050_s2, %s1050_s2 }
  0xea   : > { %p7577_p3 = scmp.ne.s32.totalorder %s1050_s2, %s7576_s18  ;;  %p7585_p11 = scmp.lt.s32.totalorder %s7576_s18, %s7576_s18 }
  0xec   : > { %p7579_p7 = pnand %p7577_p3, %p8711_p5  ;;  %p7586_p6 = por %p7585_p11, %p7584_p13 }
  0xee   : > { %p7580_p12 = pneg %p7579_p7 }
  0xf0   : > { %p7587_p1 = pnand %p7586_p6, %p7580_p12 }
  0xf2   : > { %7590 = shalt.err (!%p7587_p1)
}
  0xf3   : > { %s10119_s15 = smov 4   ;;  %s10120_s22 = smov 64  }
  0xf4   : > { %7077 = dma.hbm_to_vmem [thread:$0]  (!%p8701_p0), %s10090_s21, 256, %s1050_s2, [#allocation6], %s10120_s22, %s10120_s22, %s10119_s15  }
  0xf5   : > { %s7591_s19 = scalar_lea.hbm %s8496_s29, 16 }
  0xf6   : > { %p7592_p10 = scmp.ne.s32.totalorder %s8496_s29, %s7591_s19  ;;  %p7598_p8 = scmp.lt.u32.totalorder %s7591_s19, %s8496_s29 }
  0xf8   : > { %p7594_p9 = pnand %p7592_p10, %p8711_p5 }
  0xfa   : > { %p7595_p4 = pneg %p7594_p9 }
  0xfc   : > { %p7600_p2 = pnand %p7598_p8, %p7595_p4 }
  0xfe   : > { %7603 = shalt.err (!%p7600_p2)
}
  0xff   : > { %s7604_s30 = scalar_lea.vmem %s1078_s17, 16  ;;  %s7611_s8 = scalar_lea.vmem %s1078_s17, 32 }
 0x100   : > { %p7605_p3 = scmp.ne.s32.totalorder %s1078_s17, %s7604_s30  ;;  %p7612_p13 = scmp.lt.s32.totalorder %s1078_s17, %s1078_s17 }
 0x101   : > { %p7613_p11 = scmp.lt.s32.totalorder %s7611_s8, %s7604_s30 }
 0x102   : > { %p7607_p7 = pnand %p7605_p3, %p8711_p5 }
 0x103   : > { %p7614_p6 = por %p7613_p11, %p7612_p13 }
 0x104   : > { %p7608_p12 = pneg %p7607_p7 }
 0x106   : > { %p7615_p1 = pnand %p7614_p6, %p7608_p12 }
 0x108   : > { %7618 = shalt.err (!%p7615_p1)
}
 0x109   : > { %7083 = dma.hbm_to_vmem [thread:$0]  (!%p8701_p0), %s8496_s29, 16, %s1078_s17, [#allocation22]  }
 0x10a   : > { %s8324_s2 = smov [#allocation26]   ;;  %s8325_s19 = smov [#allocation29]  }
 0x10b   : > { %s1101_s18 = sshll.u32 %s8324_s2, 4  ;;  %s1125_s5 = sshll.u32 %s8325_s19, 4  ;;  %s1102_s18 = int_to_ptr.vmem [resolvable:$true] %s1101_s18  ;;  %s1126_s5 = int_to_ptr.vmem [resolvable:$true] %s1125_s5 }
 0x10c   : > { %s7619_s13 = scalar_lea.hbm %s10094_s4, 16 }
 0x10d   : > { %p7620_p10 = scmp.ne.s32.totalorder %s10094_s4, %s7619_s13  ;;  %p7626_p8 = scmp.lt.u32.totalorder %s7619_s13, %s10094_s4 }
 0x10f   : > { %p7622_p9 = pnand %p7620_p10, %p8711_p5 }
 0x111   : > { %p7623_p4 = pneg %p7622_p9 }
 0x113   : > { %p7628_p2 = pnand %p7626_p8, %p7623_p4 }
 0x115   : > { %7631 = shalt.err (!%p7628_p2)
}
 0x116   : > { %s7632_s30 = scalar_lea.vmem %s1102_s18, 16  ;;  %s7639_s17 = scalar_lea.vmem %s1102_s18, 32 }
 0x117   : > { %p7633_p3 = scmp.ne.s32.totalorder %s1102_s18, %s7632_s30  ;;  %p7640_p13 = scmp.lt.s32.totalorder %s1102_s18, %s1102_s18 }
 0x118   : > { %p7641_p11 = scmp.lt.s32.totalorder %s7639_s17, %s7632_s30 }
 0x119   : > { %p7635_p7 = pnand %p7633_p3, %p8711_p5 }
 0x11a   : > { %p7642_p6 = por %p7641_p11, %p7640_p13 }
 0x11b   : > { %p7636_p12 = pneg %p7635_p7 }
 0x11d   : > { %p7643_p1 = pnand %p7642_p6, %p7636_p12 }
 0x11f   : > { %7646 = shalt.err (!%p7643_p1)
}
 0x120   : > { %7089 = dma.hbm_to_vmem [thread:$0]  (!%p8701_p0), %s10094_s4, 16, %s1102_s18, [#allocation25]  }
 0x121   : > { %s7647_s13 = scalar_lea.hbm %s10091_s20, 256 }
 0x122   : > { %p7648_p10 = scmp.ne.s32.totalorder %s10091_s20, %s7647_s13  ;;  %p7654_p8 = scmp.lt.u32.totalorder %s7647_s13, %s10091_s20 }
 0x124   : > { %p7650_p9 = pnand %p7648_p10, %p8711_p5 }
 0x126   : > { %p7651_p4 = pneg %p7650_p9 }
 0x128   : > { %p7656_p2 = pnand %p7654_p8, %p7651_p4 }
 0x12a   : > { %7659 = shalt.err (!%p7656_p2)
}
 0x12b   : > { %s7660_s8 = scalar_lea.vmem %s1126_s5, 256  ;;  %p7668_p13 = scmp.lt.s32.totalorder %s1126_s5, %s1126_s5 }
 0x12c   : > { %p7661_p3 = scmp.ne.s32.totalorder %s1126_s5, %s7660_s8  ;;  %p7669_p11 = scmp.lt.s32.totalorder %s7660_s8, %s7660_s8 }
 0x12e   : > { %p7663_p7 = pnand %p7661_p3, %p8711_p5  ;;  %p7670_p6 = por %p7669_p11, %p7668_p13 }
 0x130   : > { %p7664_p12 = pneg %p7663_p7 }
 0x132   : > { %p7671_p1 = pnand %p7670_p6, %p7664_p12 }
 0x134   : > { %7674 = shalt.err (!%p7671_p1)
}
 0x135   : > { %7095 = dma.hbm_to_vmem [thread:$0]  (!%p8701_p0), %s10091_s20, 256, %s1126_s5, [#allocation28], %s10120_s22, %s10120_s22, %s10119_s15  }
 0x136   : > { %s8326_s2 = smov [#allocation30]   ;;  %s7675_s19 = scalar_lea.hbm %s10092_s12, 256 }
 0x137   : > { %s1141_s18 = sshll.u32 %s8326_s2, 4  ;;  %p7676_p10 = scmp.ne.s32.totalorder %s10092_s12, %s7675_s19  ;;  %s1142_s18 = int_to_ptr.vmem [resolvable:$true] %s1141_s18 }
 0x138   : > { %p7682_p8 = scmp.lt.u32.totalorder %s7675_s19, %s10092_s12 }
 0x139   : > { %p7678_p9 = pnand %p7676_p10, %p8711_p5 }
 0x13b   : > { %p7679_p4 = pneg %p7678_p9 }
 0x13d   : > { %p7684_p2 = pnand %p7682_p8, %p7679_p4 }
 0x13f   : > { %7687 = shalt.err (!%p7684_p2)
}
 0x140   : > { %s7688_s30 = scalar_lea.vmem %s1142_s18, 256  ;;  %p7696_p13 = scmp.lt.s32.totalorder %s1142_s18, %s1142_s18 }
 0x141   : > { %p7689_p3 = scmp.ne.s32.totalorder %s1142_s18, %s7688_s30  ;;  %p7697_p11 = scmp.lt.s32.totalorder %s7688_s30, %s7688_s30 }
 0x143   : > { %p7691_p7 = pnand %p7689_p3, %p8711_p5  ;;  %p7698_p6 = por %p7697_p11, %p7696_p13 }
 0x145   : > { %p7692_p12 = pneg %p7691_p7 }
 0x147   : > { %p7699_p1 = pnand %p7698_p6, %p7692_p12 }
 0x149   : > { %7702 = shalt.err (!%p7699_p1)
}
 0x14a   : > { %7098 = dma.hbm_to_vmem [thread:$0]  (!%p8701_p0), %s10092_s12, 256, %s1142_s18, [#allocation31], %s10120_s22, %s10120_s22, %s10119_s15  }
 0x14b   : > { %p6327_p10 = scmp.ge.s32.totalorder %s8277_s28, 4 }
 0x14c   : > { %s1172_s5 = sand.u32 (!%p6327_p10), 1, %s8277_s28   ;;  %s1174_s6 = sand.u32 (!%p6327_p10), 1, %s8257_s16  }
 0x14d   : > { %1160 = sbr.rel (%p6327_p10) target bundleno = 714 (0x2ca), region = 84  ;;  %s6328_s17 = sshll.u32 (!%p6327_p10), %s1174_s6, 2 }
 0x14e   : > { %s6329_s3 = sshll.u32 (!%p6327_p10), %s8273_s26, 6  ;;  %s1176_s15 = scalar_lea.vmem (!%p6327_p10), [#allocation2], %s6328_s17 }
 0x14f   : > { %s8826_s13 = scalar_lea.hbm (!%p6327_p10), %s10093_s9, %s6329_s3  ;;  %s1183_s22 = sshll.u32 (!%p6327_p10), %s1176_s15, 4  ;;  %s8828_s22 = int_to_ptr.vmem [resolvable:$true] %s1183_s22 }
 0x150   : > { %s8831_s8 = sand.u32 (!%p6327_p10), 1, %s8245_s11   ;;  %s8833_s2 = scalar_lea.sflag (!%p6327_p10), [#allocation3], %s1172_s5 }
 0x151   : > { %s7703_s18 = scalar_lea.hbm (!%p6327_p10), %s8826_s13, 64  ;;  %p10121_p5 = scmp.ne.s32.totalorder (!%p6327_p10), %s10103_s24, 0 }
 0x152   : > { %p7704_p0 = scmp.ne.s32.totalorder (!%p6327_p10), %s8826_s13, %s7703_s18  ;;  %s7707_s19 = scalar_lea.hbm (!%p6327_p10), %s10093_s9, 128 }
 0x153   : > { %p7708_p8 = scmp.lt.u32.totalorder (!%p6327_p10), %s8826_s13, %s10093_s9  ;;  %p7709_p2 = scmp.lt.u32.totalorder (!%p6327_p10), %s7707_s19, %s7703_s18 }
 0x154   : > { %p7705_p9 = pnand %p7704_p0, %p10121_p5  ;;  %p7711_p7 = scmp.lt.u32.totalorder %s7703_s18, %s8826_s13 }
 0x155   : > { %p7710_p3 = por %p7709_p2, %p7708_p8 }
 0x156   : > { %p7706_p4 = pneg %p7705_p9 }
 0x157   : > { %p7712_p12 = por %p7711_p7, %p7710_p3 }
 0x159   : > { %p7713_p13 = pnand %p7712_p12, %p7706_p4 }
 0x15b   : > { %7716 = shalt.err (!%p7713_p13)
}
 0x15c   : > { %s7717_s30 = scalar_lea.vmem %s8828_s22, 64  ;;  %s8327_s5 = smov [#allocation2]  }
 0x15d   : > { %p7718_p11 = scmp.ne.s32.totalorder %s8828_s22, %s7717_s30  ;;  %s7721_s6 = sshll.u32 %s8327_s5, 4  ;;  %s7722_s6 = int_to_ptr.vmem [resolvable:$false] %s7721_s6 }
 0x15e   : > { %s7723_s17 = scalar_lea.vmem %s7722_s6, 128  ;;  %p7724_p10 = scmp.lt.s32.totalorder %s8828_s22, %s7722_s6 }
 0x15f   : > { %p7719_p6 = pnand %p7718_p11, %p10121_p5  ;;  %p7725_p0 = scmp.lt.s32.totalorder %s7723_s17, %s7717_s30 }
 0x161   : > { %p7720_p1 = pneg %p7719_p6  ;;  %p7726_p9 = por %p7725_p0, %p7724_p10 }
 0x163   : > { %p7727_p8 = pnand %p7726_p9, %p7720_p1 }
 0x165   : > { %7730 = shalt.err (!%p7727_p8)
}
 0x166   : > { %s10122_s3 = sld [smem:[#allocation84_spill]]  ;;  %s10123_s15 = sld [smem:[#allocation50_spill]] }
 0x167   : > { %7021 = dma.hbm_to_vmem [thread:$0]  (%p10121_p5), %s8826_s13, 64, %s8828_s22, %s8833_s2  }
 0x168   : > { %s1208_s24 = scalar_lea.vmem [#allocation7], %s8831_s8  ;;  %p10125_p2 = scmp.ne.s32.totalorder %s10108_s25, 0 }
 0x169   : > { %s1215_s30 = sshll.u32 %s1208_s24, 4  ;;  %s1216_s30 = int_to_ptr.vmem [resolvable:$true] %s1215_s30 }
 0x16c   : > { %s10124_s19 = smov %s10123_s15  ;;  %s8854_s18 = sshll.u32 %s10122_s3, 4 }
 0x16d   : > { %s8858_s5 = scalar_lea.hbm %s10123_s15, %s8854_s18  ;;  %s7735_s17 = scalar_lea.hbm %s10124_s19, 32 }
 0x16e   : > { %s7731_s6 = scalar_lea.hbm %s8858_s5, 16  ;;  %p7736_p12 = scmp.lt.u32.totalorder %s8858_s5, %s10124_s19 }
 0x16f   : > { %p7732_p4 = scmp.ne.s32.totalorder %s8858_s5, %s7731_s6  ;;  %p7737_p5 = scmp.lt.u32.totalorder %s7735_s17, %s7731_s6 }
 0x170   : > { %p7739_p11 = scmp.lt.u32.totalorder %s7731_s6, %s8858_s5 }
 0x171   : > { %p7733_p3 = pnand %p7732_p4, %p10125_p2  ;;  %p7738_p13 = por %p7737_p5, %p7736_p12 }
 0x173   : > { %p7734_p7 = pneg %p7733_p3  ;;  %p7740_p6 = por %p7739_p11, %p7738_p13 }
 0x175   : > { %p7741_p1 = pnand %p7740_p6, %p7734_p7 }
 0x177   : > { %7744 = shalt.err (!%p7741_p1)
}
 0x178   : > { %s7745_s13 = scalar_lea.vmem %s1216_s30, 16  ;;  %s8328_s22 = smov [#allocation7]  }
 0x179   : > { %p7746_p10 = scmp.ne.s32.totalorder %s1216_s30, %s7745_s13  ;;  %s7749_s15 = sshll.u32 %s8328_s22, 4  ;;  %s7750_s15 = int_to_ptr.vmem [resolvable:$false] %s7749_s15 }
 0x17a   : > { %s7751_s24 = scalar_lea.vmem %s7750_s15, 32  ;;  %p7752_p8 = scmp.lt.s32.totalorder %s1216_s30, %s7750_s15 }
 0x17b   : > { %p7747_p0 = pnand %p7746_p10, %p10125_p2  ;;  %p7753_p4 = scmp.lt.s32.totalorder %s7751_s24, %s7745_s13 }
 0x17d   : > { %p7748_p9 = pneg %p7747_p0  ;;  %p7754_p3 = por %p7753_p4, %p7752_p8 }
 0x17f   : > { %p7755_p5 = pnand %p7754_p3, %p7748_p9 }
 0x181   : > { %7758 = shalt.err (!%p7755_p5)
}
 0x182   : > { %s10126_s6 = sld [smem:[#allocation52_spill]]  ;;  %s1233_s13 = scalar_lea.vmem [#allocation8], %s8831_s8 }
 0x183   : > { %7022 = dma.hbm_to_vmem [thread:$0]  (%p10125_p2), %s8858_s5, 16, %s1216_s30, %s8833_s2  }
 0x184   : > { %s1240_s22 = sshll.u32 %s1233_s13, 4  ;;  %s8881_s15 = sshll.u32 %s8831_s8, 4  ;;  %s1241_s22 = int_to_ptr.vmem [resolvable:$true] %s1240_s22 }
 0x188   : > { %s8877_s17 = scalar_lea.hbm %s10126_s6, %s8854_s18  ;;  %s7763_s4 = scalar_lea.hbm %s10126_s6, 32 }
 0x189   : > { %s7759_s24 = scalar_lea.hbm %s8877_s17, 16  ;;  %p7764_p11 = scmp.lt.u32.totalorder %s8877_s17, %s10126_s6 }
 0x18a   : > { %p7760_p7 = scmp.ne.s32.totalorder %s8877_s17, %s7759_s24  ;;  %p7765_p6 = scmp.lt.u32.totalorder %s7763_s4, %s7759_s24 }
 0x18b   : > { %p7767_p10 = scmp.lt.u32.totalorder %s7759_s24, %s8877_s17 }
 0x18c   : > { %p7761_p12 = pnand %p7760_p7, %p10125_p2  ;;  %p7766_p1 = por %p7765_p6, %p7764_p11 }
 0x18e   : > { %p7762_p13 = pneg %p7761_p12  ;;  %p7768_p0 = por %p7767_p10, %p7766_p1 }
 0x190   : > { %p7769_p9 = pnand %p7768_p0, %p7762_p13 }
 0x192   : > { %7772 = shalt.err (!%p7769_p9)
}
 0x193   : > { %s7773_s5 = scalar_lea.vmem %s1241_s22, 16  ;;  %s8329_s30 = smov [#allocation8]  }
 0x194   : > { %p7774_p8 = scmp.ne.s32.totalorder %s1241_s22, %s7773_s5  ;;  %s7777_s13 = sshll.u32 %s8329_s30, 4  ;;  %s7778_s13 = int_to_ptr.vmem [resolvable:$false] %s7777_s13 }
 0x195   : > { %s7779_s9 = scalar_lea.vmem %s7778_s13, 32  ;;  %p7780_p5 = scmp.lt.s32.totalorder %s1241_s22, %s7778_s13 }
 0x196   : > { %p7775_p4 = pnand %p7774_p8, %p10125_p2  ;;  %p7781_p7 = scmp.lt.s32.totalorder %s7779_s9, %s7773_s5 }
 0x198   : > { %p7776_p3 = pneg %p7775_p4  ;;  %p7782_p12 = por %p7781_p7, %p7780_p5 }
 0x19a   : > { %p7783_p6 = pnand %p7782_p12, %p7776_p3 }
 0x19c   : > { %7786 = shalt.err (!%p7783_p6)
}
 0x19d   : > { %s10127_s4 = sld [smem:[#allocation53_spill]]  ;;  %s8898_s24 = sshll.u32 %s10122_s3, 8 }
 0x19e   : > { %7023 = dma.hbm_to_vmem [thread:$0]  (%p10125_p2), %s8877_s17, 16, %s1241_s22, %s8833_s2  }
 0x19f   : > { %s1251_s9 = scalar_lea.vmem [#allocation9], %s8881_s15 }
 0x1a0   : > { %s1258_s5 = sshll.u32 %s1251_s9, 4  ;;  %s8905_s5 = int_to_ptr.vmem [resolvable:$true] %s1258_s5 }
 0x1a3   : > { %s8902_s30 = scalar_lea.hbm %s10127_s4, %s8898_s24  ;;  %s7791_s6 = scalar_lea.hbm %s10127_s4, 512 }
 0x1a4   : > { %s7787_s13 = scalar_lea.hbm %s8902_s30, 256  ;;  %p7792_p10 = scmp.lt.u32.totalorder %s8902_s30, %s10127_s4 }
 0x1a5   : > { %p7788_p13 = scmp.ne.s32.totalorder %s8902_s30, %s7787_s13  ;;  %p7793_p0 = scmp.lt.u32.totalorder %s7791_s6, %s7787_s13 }
 0x1a6   : > { %p7795_p8 = scmp.lt.u32.totalorder %s7787_s13, %s8902_s30 }
 0x1a7   : > { %p7789_p11 = pnand %p7788_p13, %p10125_p2  ;;  %p7794_p9 = por %p7793_p0, %p7792_p10 }
 0x1a9   : > { %p7790_p1 = pneg %p7789_p11  ;;  %p7796_p4 = por %p7795_p8, %p7794_p9 }
 0x1ab   : > { %p7797_p3 = pnand %p7796_p4, %p7790_p1 }
 0x1ad   : > { %7800 = shalt.err (!%p7797_p3)
}
 0x1ae   : > { %s7801_s3 = scalar_lea.vmem %s8905_s5, 256  ;;  %s8330_s17 = smov [#allocation9]  }
 0x1af   : > { %p7802_p5 = scmp.ne.s32.totalorder %s8905_s5, %s7801_s3  ;;  %s7805_s22 = sshll.u32 %s8330_s17, 4  ;;  %s7806_s22 = int_to_ptr.vmem [resolvable:$false] %s7805_s22 }
 0x1b0   : > { %s7807_s9 = scalar_lea.vmem %s7806_s22, 512  ;;  %p7808_p6 = scmp.lt.s32.totalorder %s8905_s5, %s7806_s22 }
 0x1b1   : > { %p7803_p7 = pnand %p7802_p5, %p10125_p2  ;;  %p7809_p13 = scmp.lt.s32.totalorder %s7807_s9, %s7801_s3 }
 0x1b3   : > { %p7804_p12 = pneg %p7803_p7  ;;  %p7810_p11 = por %p7809_p13, %p7808_p6 }
 0x1b5   : > { %p7811_p10 = pnand %p7810_p11, %p7804_p12 }
 0x1b7   : > { %7814 = shalt.err (!%p7811_p10)
}
 0x1b8   : > { %s10037_s6 = smov 64   ;;  %s10128_s13 = sld [smem:[#allocation54_spill]] }
 0x1b9   : > { %s10039_s4 = smov 4   ;;  %s1271_s17 = scalar_lea.vmem [#allocation10], %s8831_s8 }
 0x1ba   : > { %7024 = dma.hbm_to_vmem [thread:$0]  (%p10125_p2), %s8902_s30, 256, %s8905_s5, %s8833_s2, %s10037_s6, %s10037_s6, %s10039_s4  }
 0x1bb   : > { %s1278_s22 = sshll.u32 %s1271_s17, 4  ;;  %s1279_s22 = int_to_ptr.vmem [resolvable:$true] %s1278_s22 }
 0x1be   : > { %s8930_s3 = scalar_lea.hbm %s10128_s13, %s8854_s18  ;;  %s7819_s12 = scalar_lea.hbm %s10128_s13, 32 }
 0x1bf   : > { %s7815_s9 = scalar_lea.hbm %s8930_s3, 16  ;;  %p7820_p8 = scmp.lt.u32.totalorder %s8930_s3, %s10128_s13 }
 0x1c0   : > { %p7816_p1 = scmp.ne.s32.totalorder %s8930_s3, %s7815_s9  ;;  %p7821_p4 = scmp.lt.u32.totalorder %s7819_s12, %s7815_s9 }
 0x1c1   : > { %p7823_p5 = scmp.lt.u32.totalorder %s7815_s9, %s8930_s3 }
 0x1c2   : > { %p7817_p0 = pnand %p7816_p1, %p10125_p2  ;;  %p7822_p3 = por %p7821_p4, %p7820_p8 }
 0x1c4   : > { %p7818_p9 = pneg %p7817_p0  ;;  %p7824_p7 = por %p7823_p5, %p7822_p3 }
 0x1c6   : > { %p7825_p12 = pnand %p7824_p7, %p7818_p9 }
 0x1c8   : > { %7828 = shalt.err (!%p7825_p12)
}
 0x1c9   : > { %s7829_s30 = scalar_lea.vmem %s1279_s22, 16  ;;  %s8333_s5 = smov [#allocation10]  }
 0x1ca   : > { %p7830_p6 = scmp.ne.s32.totalorder %s1279_s22, %s7829_s30  ;;  %s7833_s17 = sshll.u32 %s8333_s5, 4  ;;  %s7834_s17 = int_to_ptr.vmem [resolvable:$false] %s7833_s17 }
 0x1cb   : > { %s7835_s6 = scalar_lea.vmem %s7834_s17, 32  ;;  %p7836_p10 = scmp.lt.s32.totalorder %s1279_s22, %s7834_s17 }
 0x1cc   : > { %p7831_p13 = pnand %p7830_p6, %p10125_p2  ;;  %p7837_p1 = scmp.lt.s32.totalorder %s7835_s6, %s7829_s30 }
 0x1ce   : > { %p7832_p11 = pneg %p7831_p13  ;;  %p7838_p0 = por %p7837_p1, %p7836_p10 }
 0x1d0   : > { %p7839_p4 = pnand %p7838_p0, %p7832_p11 }
 0x1d2   : > { %7842 = shalt.err (!%p7839_p4)
}
 0x1d3   : > { %s10129_s12 = sld [smem:[#allocation55_spill]]  ;;  %s1289_s6 = scalar_lea.vmem [#allocation11], %s8881_s15 }
 0x1d4   : > { %7025 = dma.hbm_to_vmem [thread:$0]  (%p10125_p2), %s8930_s3, 16, %s1279_s22, %s8833_s2  }
 0x1d5   : > { %s1296_s30 = sshll.u32 %s1289_s6, 4  ;;  %s8952_s30 = int_to_ptr.vmem [resolvable:$true] %s1296_s30 }
 0x1d9   : > { %s8949_s9 = scalar_lea.hbm %s10129_s12, %s8898_s24  ;;  %s7847_s17 = scalar_lea.hbm %s10129_s12, 512 }
 0x1da   : > { %s7843_s5 = scalar_lea.hbm %s8949_s9, 256  ;;  %p7848_p5 = scmp.lt.u32.totalorder %s8949_s9, %s10129_s12 }
 0x1db   : > { %p7844_p9 = scmp.ne.s32.totalorder %s8949_s9, %s7843_s5  ;;  %p7849_p7 = scmp.lt.u32.totalorder %s7847_s17, %s7843_s5 }
 0x1dc   : > { %p7851_p6 = scmp.lt.u32.totalorder %s7843_s5, %s8949_s9 }
 0x1dd   : > { %p7845_p8 = pnand %p7844_p9, %p10125_p2  ;;  %p7850_p12 = por %p7849_p7, %p7848_p5 }
 0x1df   : > { %p7846_p3 = pneg %p7845_p8  ;;  %p7852_p13 = por %p7851_p6, %p7850_p12 }
 0x1e1   : > { %p7853_p11 = pnand %p7852_p13, %p7846_p3 }
 0x1e3   : > { %7856 = shalt.err (!%p7853_p11)
}
 0x1e4   : > { %s7857_s3 = scalar_lea.vmem %s8952_s30, 256  ;;  %s8334_s22 = smov [#allocation11]  }
 0x1e5   : > { %p7858_p10 = scmp.ne.s32.totalorder %s8952_s30, %s7857_s3  ;;  %s7861_s6 = sshll.u32 %s8334_s22, 4  ;;  %s7862_s6 = int_to_ptr.vmem [resolvable:$false] %s7861_s6 }
 0x1e6   : > { %s7863_s4 = scalar_lea.vmem %s7862_s6, 512  ;;  %p7864_p4 = scmp.lt.s32.totalorder %s8952_s30, %s7862_s6 }
 0x1e7   : > { %p7859_p1 = pnand %p7858_p10, %p10125_p2  ;;  %p7865_p9 = scmp.lt.s32.totalorder %s7863_s4, %s7857_s3 }
 0x1e9   : > { %p7860_p0 = pneg %p7859_p1  ;;  %p7866_p8 = por %p7865_p9, %p7864_p4 }
 0x1eb   : > { %p7867_p5 = pnand %p7866_p8, %p7860_p0 }
 0x1ed   : > { %7870 = shalt.err (!%p7867_p5)
}
 0x1ee   : > { %s10130_s5 = smov 4   ;;  %s10131_s17 = smov 64  }
 0x1ef   : > { %s10132_s12 = sld [smem:[#allocation56_spill]]  ;;  %s1309_s4 = scalar_lea.vmem [#allocation12], %s8831_s8 }
 0x1f0   : > { %7026 = dma.hbm_to_vmem [thread:$0]  (%p10125_p2), %s8949_s9, 256, %s8952_s30, %s8833_s2, %s10131_s17, %s10131_s17, %s10130_s5  }
 0x1f1   : > { %s1316_s3 = sshll.u32 %s1309_s4, 4  ;;  %s1317_s3 = int_to_ptr.vmem [resolvable:$true] %s1316_s3 }
 0x1f5   : > { %s8977_s22 = scalar_lea.hbm %s10132_s12, %s8854_s18  ;;  %s7875_s13 = scalar_lea.hbm %s10132_s12, 32 }
 0x1f6   : > { %s7871_s6 = scalar_lea.hbm %s8977_s22, 16  ;;  %p7876_p6 = scmp.lt.u32.totalorder %s8977_s22, %s10132_s12 }
 0x1f7   : > { %p7872_p3 = scmp.ne.s32.totalorder %s8977_s22, %s7871_s6  ;;  %p7877_p13 = scmp.lt.u32.totalorder %s7875_s13, %s7871_s6 }
 0x1f8   : > { %p7879_p10 = scmp.lt.u32.totalorder %s7871_s6, %s8977_s22 }
 0x1f9   : > { %p7873_p7 = pnand %p7872_p3, %p10125_p2  ;;  %p7878_p11 = por %p7877_p13, %p7876_p6 }
 0x1fb   : > { %p7874_p12 = pneg %p7873_p7  ;;  %p7880_p1 = por %p7879_p10, %p7878_p11 }
 0x1fd   : > { %p7881_p0 = pnand %p7880_p1, %p7874_p12 }
 0x1ff   : > { %7884 = shalt.err (!%p7881_p0)
}
 0x200   : > { %s7885_s9 = scalar_lea.vmem %s1317_s3, 16  ;;  %s8335_s30 = smov [#allocation12]  }
 0x201   : > { %p7886_p4 = scmp.ne.s32.totalorder %s1317_s3, %s7885_s9  ;;  %s7889_s4 = sshll.u32 %s8335_s30, 4  ;;  %s7890_s4 = int_to_ptr.vmem [resolvable:$false] %s7889_s4 }
 0x202   : > { %s7891_s19 = scalar_lea.vmem %s7890_s4, 32  ;;  %p7892_p5 = scmp.lt.s32.totalorder %s1317_s3, %s7890_s4 }
 0x203   : > { %p7887_p9 = pnand %p7886_p4, %p10125_p2  ;;  %p7893_p3 = scmp.lt.s32.totalorder %s7891_s19, %s7885_s9 }
 0x205   : > { %p7888_p8 = pneg %p7887_p9  ;;  %p7894_p7 = por %p7893_p3, %p7892_p5 }
 0x207   : > { %p7895_p6 = pnand %p7894_p7, %p7888_p8 }
 0x209   : > { %7898 = shalt.err (!%p7895_p6)
}
 0x20a   : > { %s10133_s13 = sld [smem:[#allocation57_spill]]  ;;  %s1327_s19 = scalar_lea.vmem [#allocation13], %s8881_s15 }
 0x20b   : > { %7027 = dma.hbm_to_vmem [thread:$0]  (%p10125_p2), %s8977_s22, 16, %s1317_s3, %s8833_s2  }
 0x20c   : > { %s1334_s9 = sshll.u32 %s1327_s19, 4  ;;  %s8999_s9 = int_to_ptr.vmem [resolvable:$true] %s1334_s9 }
 0x210   : > { %s8996_s6 = scalar_lea.hbm %s10133_s13, %s8898_s24  ;;  %s7903_s4 = scalar_lea.hbm %s10133_s13, 512 }
 0x211   : > { %s7899_s30 = scalar_lea.hbm %s8996_s6, 256  ;;  %p7904_p10 = scmp.lt.u32.totalorder %s8996_s6, %s10133_s13 }
 0x212   : > { %p7900_p12 = scmp.ne.s32.totalorder %s8996_s6, %s7899_s30  ;;  %p7905_p1 = scmp.lt.u32.totalorder %s7903_s4, %s7899_s30 }
 0x213   : > { %p7907_p4 = scmp.lt.u32.totalorder %s7899_s30, %s8996_s6 }
 0x214   : > { %p7901_p13 = pnand %p7900_p12, %p10125_p2  ;;  %p7906_p0 = por %p7905_p1, %p7904_p10 }
 0x216   : > { %p7902_p11 = pneg %p7901_p13  ;;  %p7908_p9 = por %p7907_p4, %p7906_p0 }
 0x218   : > { %p7909_p8 = pnand %p7908_p9, %p7902_p11 }
 0x21a   : > { %7912 = shalt.err (!%p7909_p8)
}
 0x21b   : > { %s7913_s15 = scalar_lea.vmem %s8999_s9, 256  ;;  %s8336_s24 = smov [#allocation13]  }
 0x21c   : > { %p7914_p5 = scmp.ne.s32.totalorder %s8999_s9, %s7913_s15  ;;  %s7917_s22 = sshll.u32 %s8336_s24, 4  ;;  %s7918_s22 = int_to_ptr.vmem [resolvable:$false] %s7917_s22 }
 0x21d   : > { %s7919_s3 = scalar_lea.vmem %s7918_s22, 512  ;;  %p7920_p6 = scmp.lt.s32.totalorder %s8999_s9, %s7918_s22 }
 0x21e   : > { %p7915_p3 = pnand %p7914_p5, %p10125_p2  ;;  %p7921_p12 = scmp.lt.s32.totalorder %s7919_s3, %s7913_s15 }
 0x220   : > { %p7916_p7 = pneg %p7915_p3  ;;  %p7922_p13 = por %p7921_p12, %p7920_p6 }
 0x222   : > { %p7923_p10 = pnand %p7922_p13, %p7916_p7 }
 0x224   : > { %7926 = shalt.err (!%p7923_p10)
}
 0x225   : > { %s10134_s19 = sld [smem:[#allocation58_spill]]  ;;  %s1347_s4 = scalar_lea.vmem [#allocation14], %s8831_s8 }
 0x226   : > { %7028 = dma.hbm_to_vmem [thread:$0]  (%p10125_p2), %s8996_s6, 256, %s8999_s9, %s8833_s2, %s10131_s17, %s10131_s17, %s10130_s5  }
 0x227   : > { %s1354_s15 = sshll.u32 %s1347_s4, 4  ;;  %s1355_s15 = int_to_ptr.vmem [resolvable:$true] %s1354_s15 }
 0x22b   : > { %s9024_s30 = scalar_lea.hbm %s10134_s19, %s8854_s18  ;;  %s7931_s22 = scalar_lea.hbm %s10134_s19, 32 }
 0x22c   : > { %s7927_s24 = scalar_lea.hbm %s9024_s30, 16  ;;  %p7932_p4 = scmp.lt.u32.totalorder %s9024_s30, %s10134_s19 }
 0x22d   : > { %p7928_p11 = scmp.ne.s32.totalorder %s9024_s30, %s7927_s24  ;;  %p7933_p9 = scmp.lt.u32.totalorder %s7931_s22, %s7927_s24 }
 0x22e   : > { %p7935_p5 = scmp.lt.u32.totalorder %s7927_s24, %s9024_s30 }
 0x22f   : > { %p7929_p1 = pnand %p7928_p11, %p10125_p2  ;;  %p7934_p8 = por %p7933_p9, %p7932_p4 }
 0x231   : > { %p7930_p0 = pneg %p7929_p1  ;;  %p7936_p3 = por %p7935_p5, %p7934_p8 }
 0x233   : > { %p7937_p7 = pnand %p7936_p3, %p7930_p0 }
 0x235   : > { %7940 = shalt.err (!%p7937_p7)
}
 0x236   : > { %s7941_s5 = scalar_lea.vmem %s1355_s15, 16  ;;  %s8337_s17 = smov [#allocation14]  }
 0x237   : > { %p7942_p6 = scmp.ne.s32.totalorder %s1355_s15, %s7941_s5  ;;  %s7945_s6 = sshll.u32 %s8337_s17, 4  ;;  %s7946_s6 = int_to_ptr.vmem [resolvable:$false] %s7945_s6 }
 0x238   : > { %s7947_s9 = scalar_lea.vmem %s7946_s6, 32  ;;  %p7948_p10 = scmp.lt.s32.totalorder %s1355_s15, %s7946_s6 }
 0x239   : > { %p7943_p12 = pnand %p7942_p6, %p10125_p2  ;;  %p7949_p11 = scmp.lt.s32.totalorder %s7947_s9, %s7941_s5 }
 0x23b   : > { %p7944_p13 = pneg %p7943_p12  ;;  %p7950_p1 = por %p7949_p11, %p7948_p10 }
 0x23d   : > { %p7951_p4 = pnand %p7950_p1, %p7944_p13 }
 0x23f   : > { %7954 = shalt.err (!%p7951_p4)
}
 0x240   : > { %s10135_s3 = sld [smem:[#allocation60_spill]]  ;;  %s1372_s24 = scalar_lea.vmem [#allocation15], %s8831_s8 }
 0x241   : > { %7029 = dma.hbm_to_vmem [thread:$0]  (%p10125_p2), %s9024_s30, 16, %s1355_s15, %s8833_s2  }
 0x242   : > { %s1379_s22 = sshll.u32 %s1372_s24, 4  ;;  %s1380_s22 = int_to_ptr.vmem [resolvable:$true] %s1379_s22 }
 0x246   : > { %s9043_s4 = scalar_lea.hbm %s10135_s3, %s8854_s18  ;;  %s7959_s17 = scalar_lea.hbm %s10135_s3, 32 }
 0x247   : > { %s7955_s5 = scalar_lea.hbm %s9043_s4, 16  ;;  %p7960_p5 = scmp.lt.u32.totalorder %s9043_s4, %s10135_s3 }
 0x248   : > { %p7956_p0 = scmp.ne.s32.totalorder %s9043_s4, %s7955_s5  ;;  %p7961_p3 = scmp.lt.u32.totalorder %s7959_s17, %s7955_s5 }
 0x249   : > { %p7963_p6 = scmp.lt.u32.totalorder %s7955_s5, %s9043_s4 }
 0x24a   : > { %p7957_p9 = pnand %p7956_p0, %p10125_p2  ;;  %p7962_p7 = por %p7961_p3, %p7960_p5 }
 0x24c   : > { %p7958_p8 = pneg %p7957_p9  ;;  %p7964_p12 = por %p7963_p6, %p7962_p7 }
 0x24e   : > { %p7965_p13 = pnand %p7964_p12, %p7958_p8 }
 0x250   : > { %7968 = shalt.err (!%p7965_p13)
}
 0x251   : > { %s7969_s30 = scalar_lea.vmem %s1380_s22, 16  ;;  %s8338_s15 = smov [#allocation15]  }
 0x252   : > { %p7970_p10 = scmp.ne.s32.totalorder %s1380_s22, %s7969_s30  ;;  %s7973_s6 = sshll.u32 %s8338_s15, 4  ;;  %s7974_s6 = int_to_ptr.vmem [resolvable:$false] %s7973_s6 }
 0x253   : > { %s7975_s9 = scalar_lea.vmem %s7974_s6, 32  ;;  %p7976_p4 = scmp.lt.s32.totalorder %s1380_s22, %s7974_s6 }
 0x254   : > { %p7971_p11 = pnand %p7970_p10, %p10125_p2  ;;  %p7977_p0 = scmp.lt.s32.totalorder %s7975_s9, %s7969_s30 }
 0x256   : > { %p7972_p1 = pneg %p7971_p11  ;;  %p7978_p9 = por %p7977_p0, %p7976_p4 }
 0x258   : > { %p7979_p3 = pnand %p7978_p9, %p7972_p1 }
 0x25a   : > { %7982 = shalt.err (!%p7979_p3)
}
 0x25b   : > { %s10136_s24 = sld [smem:[#allocation61_spill]]  ;;  %s1389_s17 = scalar_lea.vmem [#allocation16], %s8831_s8 }
 0x25c   : > { %7030 = dma.hbm_to_vmem [thread:$0]  (%p10125_p2), %s9043_s4, 16, %s1380_s22, %s8833_s2  }
 0x25d   : > { %s1396_s30 = sshll.u32 %s1389_s17, 4  ;;  %s1397_s30 = int_to_ptr.vmem [resolvable:$true] %s1396_s30 }
 0x261   : > { %s9062_s5 = scalar_lea.hbm %s10136_s24, %s8854_s18  ;;  %s7987_s6 = scalar_lea.hbm %s10136_s24, 32 }
 0x262   : > { %s7983_s15 = scalar_lea.hbm %s9062_s5, 16  ;;  %p7988_p6 = scmp.lt.u32.totalorder %s9062_s5, %s10136_s24 }
 0x263   : > { %p7984_p8 = scmp.ne.s32.totalorder %s9062_s5, %s7983_s15  ;;  %p7989_p12 = scmp.lt.u32.totalorder %s7987_s6, %s7983_s15 }
 0x264   : > { %p7991_p10 = scmp.lt.u32.totalorder %s7983_s15, %s9062_s5 }
 0x265   : > { %p7985_p5 = pnand %p7984_p8, %p10125_p2  ;;  %p7990_p13 = por %p7989_p12, %p7988_p6 }
 0x267   : > { %p7986_p7 = pneg %p7985_p5  ;;  %p7992_p11 = por %p7991_p10, %p7990_p13 }
 0x269   : > { %p7993_p1 = pnand %p7992_p11, %p7986_p7 }
 0x26b   : > { %7996 = shalt.err (!%p7993_p1)
}
 0x26c   : > { %s7997_s4 = scalar_lea.vmem %s1397_s30, 16  ;;  %s8339_s22 = smov [#allocation16]  }
 0x26d   : > { %p7998_p4 = scmp.ne.s32.totalorder %s1397_s30, %s7997_s4  ;;  %s8001_s9 = sshll.u32 %s8339_s22, 4  ;;  %s8002_s9 = int_to_ptr.vmem [resolvable:$false] %s8001_s9 }
 0x26e   : > { %s8003_s17 = scalar_lea.vmem %s8002_s9, 32  ;;  %p8004_p3 = scmp.lt.s32.totalorder %s1397_s30, %s8002_s9 }
 0x26f   : > { %p7999_p0 = pnand %p7998_p4, %p10125_p2  ;;  %p8005_p8 = scmp.lt.s32.totalorder %s8003_s17, %s7997_s4 }
 0x271   : > { %p8000_p9 = pneg %p7999_p0  ;;  %p8006_p5 = por %p8005_p8, %p8004_p3 }
 0x273   : > { %p8007_p6 = pnand %p8006_p5, %p8000_p9 }
 0x275   : > { %8010 = shalt.err (!%p8007_p6)
}
 0x276   : > { %s10137_s15 = sld [smem:[#allocation62_spill]]  ;;  %s1406_s4 = scalar_lea.vmem [#allocation17], %s8831_s8 }
 0x277   : > { %7031 = dma.hbm_to_vmem [thread:$0]  (%p10125_p2), %s9062_s5, 16, %s1397_s30, %s8833_s2  }
 0x278   : > { %s1413_s22 = sshll.u32 %s1406_s4, 4  ;;  %s1414_s22 = int_to_ptr.vmem [resolvable:$true] %s1413_s22 }
 0x27c   : > { %s10138_s6 = smov %s10137_s15  ;;  %s9081_s3 = scalar_lea.hbm %s10137_s15, %s8854_s18 }
 0x27d   : > { %s8011_s9 = scalar_lea.hbm %s9081_s3, 16  ;;  %s8015_s17 = scalar_lea.hbm %s10138_s6, 32 }
 0x27e   : > { %p8012_p7 = scmp.ne.s32.totalorder %s9081_s3, %s8011_s9  ;;  %p8016_p10 = scmp.lt.u32.totalorder %s9081_s3, %s10138_s6 }
 0x27f   : > { %p8017_p11 = scmp.lt.u32.totalorder %s8015_s17, %s8011_s9  ;;  %p8019_p4 = scmp.lt.u32.totalorder %s8011_s9, %s9081_s3 }
 0x280   : > { %p8013_p12 = pnand %p8012_p7, %p10125_p2 }
 0x281   : > { %p8018_p1 = por %p8017_p11, %p8016_p10 }
 0x282   : > { %p8014_p13 = pneg %p8013_p12 }
 0x283   : > { %p8020_p0 = por %p8019_p4, %p8018_p1 }
 0x285   : > { %p8021_p9 = pnand %p8020_p0, %p8014_p13 }
 0x287   : > { %8024 = shalt.err (!%p8021_p9)
}
 0x288   : > { %s8025_s5 = scalar_lea.vmem %s1414_s22, 16  ;;  %s8340_s30 = smov [#allocation17]  }
 0x289   : > { %p8026_p3 = scmp.ne.s32.totalorder %s1414_s22, %s8025_s5  ;;  %s8029_s15 = sshll.u32 %s8340_s30, 4  ;;  %s8030_s15 = int_to_ptr.vmem [resolvable:$false] %s8029_s15 }
 0x28a   : > { %s8031_s4 = scalar_lea.vmem %s8030_s15, 32  ;;  %p8032_p6 = scmp.lt.s32.totalorder %s1414_s22, %s8030_s15 }
 0x28b   : > { %p8027_p8 = pnand %p8026_p3, %p10125_p2  ;;  %p8033_p7 = scmp.lt.s32.totalorder %s8031_s4, %s8025_s5 }
 0x28d   : > { %p8028_p5 = pneg %p8027_p8  ;;  %p8034_p12 = por %p8033_p7, %p8032_p6 }
 0x28f   : > { %p8035_p10 = pnand %p8034_p12, %p8028_p5 }
 0x291   : > { %8038 = shalt.err (!%p8035_p10)
}
 0x292   : > { %s10139_s9 = sld [smem:[#allocation63_spill]]  ;;  %s1423_s5 = scalar_lea.vmem [#allocation18], %s8831_s8 }
 0x293   : > { %7032 = dma.hbm_to_vmem [thread:$0]  (%p10125_p2), %s9081_s3, 16, %s1414_s22, %s8833_s2  }
 0x294   : > { %s1430_s30 = sshll.u32 %s1423_s5, 4  ;;  %s1431_s30 = int_to_ptr.vmem [resolvable:$true] %s1430_s30 }
 0x298   : > { %s9100_s17 = scalar_lea.hbm %s10139_s9, %s8854_s18  ;;  %s8043_s4 = scalar_lea.hbm %s10139_s9, 32 }
 0x299   : > { %s8039_s15 = scalar_lea.hbm %s9100_s17, 16  ;;  %p8044_p4 = scmp.lt.u32.totalorder %s9100_s17, %s10139_s9 }
 0x29a   : > { %p8040_p13 = scmp.ne.s32.totalorder %s9100_s17, %s8039_s15  ;;  %p8045_p0 = scmp.lt.u32.totalorder %s8043_s4, %s8039_s15 }
 0x29b   : > { %p8047_p3 = scmp.lt.u32.totalorder %s8039_s15, %s9100_s17 }
 0x29c   : > { %p8041_p11 = pnand %p8040_p13, %p10125_p2  ;;  %p8046_p9 = por %p8045_p0, %p8044_p4 }
 0x29e   : > { %p8042_p1 = pneg %p8041_p11  ;;  %p8048_p8 = por %p8047_p3, %p8046_p9 }
 0x2a0   : > { %p8049_p5 = pnand %p8048_p8, %p8042_p1 }
 0x2a2   : > { %8052 = shalt.err (!%p8049_p5)
}
 0x2a3   : > { %s8053_s3 = scalar_lea.vmem %s1431_s30, 16  ;;  %s8341_s22 = smov [#allocation18]  }
 0x2a4   : > { %p8054_p6 = scmp.ne.s32.totalorder %s1431_s30, %s8053_s3  ;;  %s8057_s5 = sshll.u32 %s8341_s22, 4  ;;  %s8058_s5 = int_to_ptr.vmem [resolvable:$false] %s8057_s5 }
 0x2a5   : > { %s8059_s6 = scalar_lea.vmem %s8058_s5, 32  ;;  %p8060_p10 = scmp.lt.s32.totalorder %s1431_s30, %s8058_s5 }
 0x2a6   : > { %p8055_p7 = pnand %p8054_p6, %p10125_p2  ;;  %p8061_p13 = scmp.lt.s32.totalorder %s8059_s6, %s8053_s3 }
 0x2a8   : > { %p8056_p12 = pneg %p8055_p7  ;;  %p8062_p11 = por %p8061_p13, %p8060_p10 }
 0x2aa   : > { %p8063_p0 = pnand %p8062_p11, %p8056_p12 }
 0x2ac   : > { %8066 = shalt.err (!%p8063_p0)
}
 0x2ad   : > { %s10140_s15 = sld [smem:[#allocation64_spill]]  ;;  %s1440_s6 = scalar_lea.vmem [#allocation19], %s8831_s8 }
 0x2ae   : > { %7033 = dma.hbm_to_vmem [thread:$0]  (%p10125_p2), %s9100_s17, 16, %s1431_s30, %s8833_s2  }
 0x2af   : > { %s1447_s3 = sshll.u32 %s1440_s6, 4  ;;  %s1448_s3 = int_to_ptr.vmem [resolvable:$true] %s1447_s3 }
 0x2b3   : > { %s10141_s4 = smov %s10140_s15  ;;  %s9119_s9 = scalar_lea.hbm %s10140_s15, %s8854_s18 }
 0x2b4   : > { %s8067_s22 = scalar_lea.hbm %s9119_s9, 16  ;;  %s8071_s5 = scalar_lea.hbm %s10141_s4, 32 }
 0x2b5   : > { %p8068_p1 = scmp.ne.s32.totalorder %s9119_s9, %s8067_s22  ;;  %p8072_p3 = scmp.lt.u32.totalorder %s9119_s9, %s10141_s4 }
 0x2b6   : > { %p8073_p8 = scmp.lt.u32.totalorder %s8071_s5, %s8067_s22  ;;  %p8075_p6 = scmp.lt.u32.totalorder %s8067_s22, %s9119_s9 }
 0x2b7   : > { %p8069_p4 = pnand %p8068_p1, %p10125_p2 }
 0x2b8   : > { %p8074_p5 = por %p8073_p8, %p8072_p3 }
 0x2b9   : > { %p8070_p9 = pneg %p8069_p4 }
 0x2ba   : > { %p8076_p7 = por %p8075_p6, %p8074_p5 }
 0x2bc   : > { %p8077_p12 = pnand %p8076_p7, %p8070_p9 }
 0x2be   : > { %8080 = shalt.err (!%p8077_p12)
}
 0x2bf   : > { %s8081_s18 = scalar_lea.vmem %s1448_s3, 16  ;;  %s8342_s8 = smov [#allocation19]  }
 0x2c0   : > { %p8082_p10 = scmp.ne.s32.totalorder %s1448_s3, %s8081_s18  ;;  %s8085_s17 = sshll.u32 %s8342_s8, 4  ;;  %s8086_s17 = int_to_ptr.vmem [resolvable:$false] %s8085_s17 }
 0x2c1   : > { %s8087_s30 = scalar_lea.vmem %s8086_s17, 32  ;;  %p8088_p0 = scmp.lt.s32.totalorder %s1448_s3, %s8086_s17 }
 0x2c2   : > { %p8083_p13 = pnand %p8082_p10, %p10125_p2  ;;  %p8089_p1 = scmp.lt.s32.totalorder %s8087_s30, %s8081_s18 }
 0x2c4   : > { %p8084_p11 = pneg %p8083_p13  ;;  %p8090_p4 = por %p8089_p1, %p8088_p0 }
 0x2c6   : > { %p8091_p3 = pnand %p8090_p4, %p8084_p11 }
 0x2c8   : > { %8094 = shalt.err (!%p8091_p3)
}
 0x2c9   : > { %7034 = dma.hbm_to_vmem [thread:$0]  (%p10125_p2), %s9119_s9, 16, %s1448_s3, %s8833_s2  }
 0x2ca PF: > { %p10142_p9 = scmp.ne.s32.totalorder %s10115_s7, 0 }
 0x2cb   : > { %s1458_s15 = sand.u32 (!%p10142_p9), 1, %s8614_s1   ;;  %s9140_s6 = sand.u32 (!%p10142_p9), 1, %s8253_s0  }
 0x2cc   : > { %1456 = sbr.rel (%p10142_p9) target bundleno = 8167 (0x1fe7), region = 164  ;;  %s6350_s22 = sshll.u32 (!%p10142_p9), %s9140_s6, 2 }
 0x2cd   : > { %s1459_s5 = scalar_lea.sflag (!%p10142_p9), [#allocation3], %s1458_s15  ;;  %s9143_s18 = scalar_lea.vmem (!%p10142_p9), [#allocation2], %s6350_s22 }
 0x2ce   : > { %p10143_p8 = scmp.ne.s32.totalorder (!%p10142_p9), %s10105_s14, 0 }
 0x2d3   : > { %8196 = dma.done.wait (%p10143_p8), %s1459_s5, 64  }
 0x2d4   : > { %8198 = vsyncadd (%p10143_p8), %s1459_s5, 4294967232  ;;  %p10144_p2 = scmp.eq.s32.totalorder %s8614_s1, 0 }
 0x2d6   : > { %8200 = dma.done.wait (%p10144_p2), [#allocation6], 32   ;;  %p10145_p5 = pmov %p10144_p2 }
 0x2d7   : > { %s9154_s25 = sand.u32 1, %s8241_s10   ;;  %p10146_p6 = scmp.ne.s32.totalorder %s10109_s23, 0 }
 0x2d8   : > { %8202 = vsyncadd (%p10145_p5), [#allocation6], 4294967264 }
 0x2d9   : > { %8204 = dma.done.wait (%p10146_p6), %s1459_s5, 928  }
 0x2da   : > { %8206 = vsyncadd (%p10146_p6), %s1459_s5, 4294966368  ;;  %s9162_s14 = sshll.u32 %s9154_s25, 4  ;;  %p10147_p7 = pmov %p10144_p2 }
 0x2db   : > { %p10148_p12 = pmov %p10144_p2 }
 0x2dc   : > { %8208 = dma.done.wait (%p10147_p7), [#allocation6], 256  }
 0x2dd   : > { %8210 = vsyncadd (%p10148_p12), [#allocation6], 4294967040  ;;  %p10149_p10 = pmov %p10144_p2 }
 0x2de   : > { %p10150_p13 = pmov %p10144_p2 }
 0x2df   : > { %8212 = dma.done.wait (%p10149_p10), [#allocation22], 32  }
 0x2e0   : > { %8214 = vsyncadd (%p10150_p13), [#allocation22], 4294967264  ;;  %p10151_p11 = pmov %p10144_p2 }
 0x2e1   : > { %p10152_p0 = pmov %p10144_p2 }
 0x2e2   : > { %8216 = dma.done.wait (%p10151_p11), [#allocation25], 272  }
 0x2e3   : > { %8218 = vsyncadd (%p10152_p0), [#allocation25], 4294967024  ;;  %p10153_p1 = pmov %p10152_p0 }
 0x2e4   : > { %p10154_p4 = pmov %p10152_p0 }
 0x2e5   : > { %8220 = dma.done.wait (%p10153_p1), [#allocation28], 272  }
 0x2e6   : > { %8222 = vsyncadd (%p10154_p4), [#allocation28], 4294967024  ;;  %p10155_p3 = pmov %p10152_p0 }
 0x2e7   : > { %p10156_p9 = pmov %p10152_p0 }
 0x2e8   : > { %8224 = dma.done.wait (%p10155_p3), [#allocation31], 256  }
 0x2e9   : > { %8226 = vsyncadd (%p10156_p9), [#allocation31], 4294967040  ;;  %s10157_s4 = sld [smem:[#allocation82_spill]]  ;;  %s10158_s7 = sld [smem:[#allocation83_spill]]  ;;  %v8343_v0 = vmov 0.0   ;;  %vm8344_vm0 = vmmov 0  }
 0x2ea   : > { %s10159_s15 = sld [smem:[#allocation49_spill]]  ;;  %s10160_s30 = sld [smem:[#allocation51_spill]]  ;;  %6637 = vmatprep.subr.mxu1 %v8343_v0  ;;  %6639 = vmatprep.mubr.msk.f32.mxu1 %vm8344_vm0, %v8343_v0  ;;  %vm1811_vm1 = vcmask 1041408   ;;  %v9209_v1 = vld [vmem:[#allocation5] sm:$0x3]  ;;  %vm1807_vm2 = vcmask 15360  }
 0x2eb   : > { %s6363_s5 = sshll.u32 %s9140_s6, 5  ;;  %s10161_s22 = sld [smem:[#allocation59_spill]]  ;;  %6638 = vmatpush3.msk.msra.mxu1 %vm1811_vm1, %v9209_v1 }
 0x2ec   : > { %s6364_s17 = sshll.u32 %s9140_s6, 1  ;;  %s10162_s8 = sld [smem:[#allocation45_spill]] }
 0x2ed   : > { %s10163_s1 = sld [smem:[#allocation47_spill]] }
 0x2ef   : > { %p1789_p8 = scmp.lt.s32.totalorder %s10157_s4, 1  ;;  %p1780_p2 = scmp.lt.s32.totalorder %s10158_s7, 1 }
 0x2f0   : > { %p6376_p5 = scmp.ne.s32.totalorder %s10157_s4, 0 }
 0x2f1   : > { %s1790_s3 = scalar_select %p1789_p8, %s10157_s4, 1 }
 0x2f2   : > { %s10219_s7 = smov (!%p1780_p2, %s10158_s7), 1  ;;  %vm1893_vm3 = vcmask (!%p6376_p5), 261120  }
 0x2f3   : > { %s6499_s23 = sshll.u32 %s1790_s3, 4  ;;  %s6501_s2 = sshll.u32 %s1790_s3, 5 }
 0x2f4   : > { %s9206_s9 = scalar_lea.vmem %s10159_s15, %s6499_s23  ;;  %s1798_s12 = scalar_lea.vmem %s10160_s30, %s6499_s23 }
 0x2f5   : > { %s9212_s13 = scalar_lea.vmem %s10161_s22, %s6501_s2  ;;  %s6498_s19 = sshll.u32 %s10219_s7, 5 }
 0x2f6   : > { %s1784_s20 = scalar_lea.vmem %s10162_s8, %s6498_s19  ;;  %s6367_s21 = sshll.u32 %s10219_s7, 2 }
 0x2f7   : > { %s1788_s24 = scalar_lea.vmem %s10163_s1, %s6367_s21  ;;  %s9223_s23 = scalar_lea.vmem [#allocation32], %s6363_s5  ;;  %v1889_v5 = vld [vmem:[%s1784_s20] sm:$0xff] (!%p6376_p5)  ;;  %v1890_v6 = vld [vmem:[%s1784_s20 + $0x8] sm:$0xff] (!%p6376_p5)  ;;  %v1891_v7 = vld [vmem:[%s1784_s20 + $0x10] sm:$0xff] (!%p6376_p5) }
 0x2f8   : > { %v9217_v2 = vld [vmem:[%s1788_s24] sm:$0xf]  ;;  %s9225_s3 = scalar_lea.vmem [#allocation33], %s6364_s17  ;;  %1894 = vst.msk [vmem:[%s9223_s23] sm:$0xff] (!%p6376_p5), %vm1893_vm3, %v1889_v5  ;;  %1895 = vst.msk [vmem:[%s9223_s23 + $0x8] sm:$0xff] (!%p6376_p5), %vm1893_vm3, %v1890_v6  ;;  %v1892_v8 = vld [vmem:[%s1784_s20 + $0x18] sm:$0xff] (!%p6376_p5) }
 0x2f9   : > { %6640 = vmatmul.mubr.msk.f32.vlgmr.msra.gmra.mrb[0].mxu1 %vm1807_vm2, %v9217_v2  ;;  %1896 = vst.msk [vmem:[%s9223_s23 + $0x10] sm:$0xff] (!%p6376_p5), %vm1893_vm3, %v1891_v7  ;;  %1897 = vst.msk [vmem:[%s9223_s23 + $0x18] sm:$0xff] (!%p6376_p5), %vm1893_vm3, %v1892_v8 }
 0x3c7   : > { %1888 = sbr.rel (%p6376_p5) target bundleno = 974 (0x3ce), region = 260 }
 0x3cc   : > { %v9221_v3 = vpop.f32.mrb[0].mxu1 }
 0x3cd   : > { %v6641_v4 = vpop.f32.mrb[1].mxu1 }
 0x3ce PF: > { %v7311_v9 = vld [vmem:[%s1798_s12] sm:$0xff]   ;;  %v1906_v10 = vlaneseq  ;;  %v7312_v11 = vld [vmem:[%s1798_s12 + $0x8] sm:$0xff]   ;;  %v8345_v13 = vmov 1966171168   ;;  %s10164_s21 = scalar_lea.vmem [#allocation9], %s9162_s14  ;;  %v1900_v29 = vld [vmem:[%s9223_s23 + $0x10] sm:$0xff] }
 0x3cf   : > { %6650 = vmatprep.subr.bf16.mxu0 %v7311_v9  ;;  %v7313_v12 = vld [vmem:[%s9206_s9] sm:$0xff]   ;;  %v1904_v14 = vunpack.c.l.s4 %v8345_v13  ;;  %v7314_v16 = vld [vmem:[%s9206_s9 + $0x8] sm:$0xff]   ;;  %vm1976_vm4 = vcmask 261120   ;;  %s10165_s20 = smov %s10164_s21  ;;  %s10166_s12 = scalar_lea.vmem [#allocation8], %s9154_s25  ;;  %vm2184_vm5 = vcmask 64512   ;;  %vm2428_vm6 = vcmask 1043456  }
 0x3d0   : > { %6651 = vmatpush3.bf16.msra.mxu0 %v7311_v9  ;;  %6642 = vmatprep.subr.bf16.mxu1 %v7313_v12  ;;  %v9234_v15 = vshrl.u32 %v1906_v10, 7  ;;  %v7315_v18 = vld [vmem:[%s10164_s21] sm:$0xff]   ;;  %v1898_v24 = vld [vmem:[%s9223_s23] sm:$0xff]  ;;  %s10167_s19 = scalar_lea.vmem [#allocation7], %s9154_s25  ;;  %s10168_s24 = scalar_lea.vmem [#allocation10], %s9154_s25  ;;  %vm4006_vm7 = vcmask 130048  }
 0x3d1   : > { %6652 = vmatprep.subr.bf16.mxu0 %v7312_v11  ;;  %6643 = vmatpush3.bf16.msra.mxu1 %v7313_v12  ;;  %v1905_v17 = vunpack.c.0.s8 %v1904_v14  ;;  %v1899_v28 = vld [vmem:[%s9223_s23 + $0x8] sm:$0xff]  ;;  %v1901_v34 = vld [vmem:[%s9223_s23 + $0x18] sm:$0xff]  ;;  %s8346_s4 = smov 120   ;;  %s8347_s7 = smov 112   ;;  %vm4011_vm8 = vcmask 195584   ;;  %vm4317_vm9 = vcmask 523264  }
 0x3d2   : > { %v9240_v19 = vsub.s32 0, %v9234_v15  ;;  %6644 = vmatprep.subr.bf16.mxu1 %v7314_v16  ;;  %v7316_v41 = vld [vmem:[%s10165_s20 + $0x8] sm:$0xff]   ;;  %v6382_v42 = vld [vmem:[%s10166_s12] ss:$0 sm:$0xff]  ;;  %s8348_s2 = smov 104   ;;  %s8349_s9 = smov 8  }
 0x3d3   : > { %v9243_v20 = vsub.s32 %v1905_v17, %v9234_v15  ;;  %v6377_v51 = vld [vmem:[%s10167_s19] ss:$0 sm:$0xff]  ;;  %s8350_s8 = smov 16   ;;  %s10169_s17 = scalar_lea.vmem [#allocation11], %s9162_s14 }
 0x3d4   : > { %6653 = vmatpush3.bf16.msra.mxu0 %v7312_v11  ;;  %v6387_v59 = vld [vmem:[%s10168_s24] ss:$0 sm:$0xff]  ;;  %s8351_s30 = smov 24   ;;  %s10170_s15 = smov %s10169_s17 }
 0x3d5   : > { %6666 = vmatprep.subr.bf16.mxu0 %v8343_v0  ;;  %6645 = vmatpush3.bf16.msra.mxu1 %v7314_v16  ;;  %v1909_v21 = vrot.slane %v9221_v3, %v9243_v20  ;;  %s10171_s22 = scalar_lea.vmem [#allocation12], %s9154_s25  ;;  %s10172_s5 = scalar_lea.vmem [#allocation13], %s9162_s14 }
 0x3d6   : > { %6658 = vmatprep.subr.bf16.mxu1 %v7315_v18  ;;  %s10173_s1 = smov %s10172_s5  ;;  %s10174_s14 = scalar_lea.vmem [#allocation16], %s9154_s25 }
 0x3d7   : > { %v1910_v22 = vcombine.high %v1909_v21, %v1909_v21  ;;  %v1917_v23 = vrot.slane %v1909_v21, %v9243_v20  ;;  %s10175_s21 = scalar_lea.vmem [#allocation17], %s9154_s25  ;;  %s10176_s20 = scalar_lea.vmem [#allocation14], %s9154_s25 }
 0x3d8   : > { %s10178_s12 = scalar_lea.vmem [#allocation18], %s9154_s25  ;;  %s10179_s19 = scalar_lea.vmem [#allocation19], %s9154_s25 }
 0x3d9   : > { %v1924_v25 = vrot.slane %v1910_v22, %v9243_v20  ;;  %v1925_v26 = vcombine.high %v1917_v23, %v1917_v23  ;;  %v1930_v27 = vrot.slane %v1917_v23, %v9240_v19 }
 0x3db   : > { %v1926_v30 = vcombine.high %v1924_v25, %v1924_v25  ;;  %v1934_v31 = vrot.slane %v1924_v25, %v9240_v19  ;;  %v9255_v32 = vadd.f32 %v1930_v27, %v1898_v24  ;;  %v1938_v33 = vrot.slane %v1925_v26, %v9240_v19 }
 0x3dd   : > { %v9259_v35 = vadd.f32 %v1934_v31, %v1899_v28  ;;  %v1942_v36 = vrot.slane %v1926_v30, %v9240_v19  ;;  %v9262_v37 = vadd.f32 %v1938_v33, %v1900_v29 }
 0x3df   : > { %v1951_v38 = vpack.c.bf16 %v9259_v35, %v9255_v32  ;;  %v9266_v39 = vadd.f32 %v1942_v36, %v1901_v34 }
 0x3e1   : > { %6654 = vmatprep.mubr.msk.bf16.mxu0 %vm1976_vm4, %v1951_v38  ;;  %v1952_v40 = vpack.c.bf16 %v9266_v39, %v9262_v37  ;;  %6646 = vmatprep.mubr.msk.bf16.mxu1 %vm1976_vm4, %v1951_v38 }
 0x3e3   : > { %6655 = vmatmul.mubr.msk.bf16.vlgmr.msra.gmra.mrb[0].mxu0 %vm1976_vm4, %v1952_v40  ;;  %6647 = vmatmul.mubr.msk.bf16.vlgmr.msra.gmra.mrb[4].mxu1 %vm1976_vm4, %v1952_v40 }
 0x3e4   : > { %6659 = vmatpush3.bf16.msra.mxu1 %v7315_v18  ;;  %6662 = vmatprep.mubr.msk.bf16.mxu1 %vm1976_vm4, %v1951_v38 }
 0x3e5   : > { %6660 = vmatprep.subr.bf16.mxu1 %v7316_v41  ;;  %6668 = vmatprep.mubr.msk.bf16.mxu0 %vm8344_vm0, %v8343_v0 }
 0x3e8   : > { %6661 = vmatpush3.bf16.msra.mxu1 %v7316_v41 }
 0x3e9   : > { %6672 = vmatprep.subr.bf16.mxu1 %v8343_v0 }
 0x3eb   : > { %6663 = vmatmul.mubr.msk.bf16.vlgmr.msra.gmra.mrb[8].mxu1 %vm1976_vm4, %v1952_v40 }
 0x3ec   : > { %6674 = vmatprep.mubr.msk.bf16.mxu1 %vm8344_vm0, %v8343_v0 }
 0x4b6   : > { %v6656_v43 = vpop.f32.mrb[0].mxu0  ;;  %v6648_v44 = vpop.f32.mrb[4].mxu1 }
 0x4b7   : > { %v2089_v45 = vpop.f32.mrb[1].mxu0  ;;  %v2017_v46 = vpop.f32.mrb[5].mxu1  ;;  %v2098_v55 = vadd.f32 %v6656_v43, %v6382_v42  ;;  %v2026_v16 = vadd.f32 %v6648_v44, %v6377_v51 }
 0x4b8   : > { %v2090_v47 = vadd.f32 %v6382_v42, %v2089_v45  ;;  %v6657_v48 = vpop.f32.mrb[2].mxu0  ;;  %v6649_v49 = vpop.f32.mrb[6].mxu1  ;;  %v2018_v57 = vadd.f32 %v6377_v51, %v2017_v46 }
 0x4b9   : > { %v2092_v50 = vpop.f32.mrb[3].mxu0  ;;  %v2020_v52 = vpop.f32.mrb[7].mxu1  ;;  %v2101_v60 = vadd.f32 %v6657_v48, %v6382_v42  ;;  %v9300_v5 = vpack.c.bf16 %v2098_v55, %v2098_v55  ;;  %v2029_v18 = vadd.f32 %v6649_v49, %v6377_v51  ;;  %v9325_v21 = vpack.c.bf16 %v2026_v16, %v2026_v16 }
 0x4ba   : > { %v9287_v53 = vpack.c.bf16 %v2090_v47, %v2090_v47  ;;  %v2093_v54 = vadd.f32 %v6382_v42, %v2092_v50  ;;  %v9302_v6 = vpack.c.bf16 %v2018_v57, %v2018_v57  ;;  %v2021_v7 = vadd.f32 %v6377_v51, %v2020_v52 }
 0x4bb   : > { %v9307_v12 = vpack.c.bf16 %v2101_v60, %v2101_v60  ;;  %v2281_v14 = vsel %vm2184_vm5, %v9300_v5, 0  ;;  %v9327_v22 = vpack.c.bf16 %v2029_v18, %v2029_v18 }
 0x4bc   : > { %v9289_v56 = vpack.c.bf16 %v2093_v54, %v2093_v54  ;;  %v2189_v58 = vsel %vm2184_vm5, %v9287_v53, 0  ;;  %v9309_v13 = vpack.c.bf16 %v2021_v7, %v2021_v7 }
 0x4bd   : > { %6667 = vmatpush3.bf16.xpose.msra.mxu0 %v2189_v58  ;;  %v2327_v17 = vsel %vm2184_vm5, %v9307_v12, 0 }
 0x4be   : > { %v2235_v61 = vsel %vm2184_vm5, %v9289_v56, 0  ;;  %6678 = vmatprep.subr.bf16.mxu0 %v8343_v0  ;;  %v6664_v62 = vpop.f32.mrb[8].mxu1 }
 0x4bf   : > { %6673 = vmatpush3.bf16.xpose.msra.mxu1 %v2235_v61  ;;  %v9298_v63 = vadd.f32 %v6664_v62, %v6387_v59  ;;  %v2161_v4 = vpop.f32.mrb[9].mxu1 }
 0x4c0   : > { %6684 = vmatprep.subr.bf16.mxu1 %v8343_v0  ;;  %v6665_v8 = vpop.f32.mrb[10].mxu1  ;;  %v2162_v23 = vadd.f32 %v6387_v59, %v2161_v4 }
 0x4c1   : > { %v9305_v9 = vadd.f32 %v6665_v8, %v6387_v59  ;;  %v2164_v11 = vpop.f32.mrb[11].mxu1 }
 0x4c2   : > { %v2165_v24 = vadd.f32 %v6387_v59, %v2164_v11  ;;  %v9337_v25 = vpack.c.bf16 %v2162_v23, %v2162_v23 }
 0x4c4   : > { %6669 = vmatmul.mubr.msk.bf16.vlgmr.msra.gmra.mrb[4].mxu0 %vm2184_vm5, %v9302_v6  ;;  %v9339_v26 = vpack.c.bf16 %v2165_v24, %v2165_v24  ;;  %v2430_v27 = vsel %vm2428_vm6, %v9337_v25, 0 }
 0x4c5   : > { %6679 = vmatpush3.bf16.xpose.msra.mxu0 %v2281_v14  ;;  %6680 = vmatprep.mubr.msk.bf16.mxu0 %vm8344_vm0, %v8343_v0 }
 0x4c6   : > { %6675 = vmatmul.mubr.msk.bf16.vlgmr.msra.gmra.mrb[12].mxu1 %vm2184_vm5, %v9309_v13  ;;  %6690 = vmatprep.subr.bf16.mxu0 %v8343_v0  ;;  %v2476_v28 = vsel %vm2428_vm6, %v9339_v26, 0 }
 0x4c7   : > { %6685 = vmatpush3.bf16.xpose.msra.mxu1 %v2327_v17  ;;  %6686 = vmatprep.mubr.msk.bf16.mxu1 %vm8344_vm0, %v8343_v0 }
 0x4c8   : > { %6696 = vmatprep.subr.bf16.mxu1 %v8343_v0 }
 0x4cc   : > { %6681 = vmatmul.mubr.msk.bf16.vlgmr.msra.gmra.mrb[8].mxu0 %vm2184_vm5, %v9325_v21 }
 0x4cd   : > { %6692 = vmatprep.mubr.msk.bf16.mxu0 %vm8344_vm0, %v8343_v0  ;;  %6691 = vmatpush3.bf16.msra.mxu0 %v2430_v27 }
 0x4ce   : > { %6687 = vmatmul.mubr.msk.bf16.vlgmr.msra.gmra.mrb[16].mxu1 %vm2184_vm5, %v9327_v22  ;;  %6702 = vmatprep.subr.bf16.mxu0 %v8343_v0 }
 0x4cf   : > { %6698 = vmatprep.mubr.msk.bf16.mxu1 %vm8344_vm0, %v8343_v0  ;;  %6697 = vmatpush3.bf16.msra.mxu1 %v2476_v28 }
 0x4d0   : > { %6708 = vmatprep.subr.bf16.mxu1 %v8343_v0 }
 0x597   : > { %v2225_v29 = vpop.f32.mrb[4].mxu0 }
 0x598   : > { %v2369_v30 = vmul.f32 0.35355338, %v2225_v29  ;;  %v6670_v31 = vpop.f32.mrb[5].mxu0 }
 0x599   : > { %v2228_v33 = vpop.f32.mrb[6].mxu0  ;;  %v2271_v34 = vpop.f32.mrb[12].mxu1 }
 0x59a   : > { %v2370_v36 = vmul.f32 0.35355338, %v2271_v34  ;;  %v6671_v38 = vpop.f32.mrb[7].mxu0  ;;  %v6676_v40 = vpop.f32.mrb[13].mxu1  ;;  %v2373_v41 = vsel %vm2184_vm5, %v2369_v30, -inf }
 0x59b   : > { %v2274_v42 = vpop.f32.mrb[14].mxu1  ;;  %2374 = vmax.xlane.f32.xlu0 %v2373_v41  ;;  %v9373_v41 = vpack.c.bf16 %v9298_v63, %v9298_v63 }
 0x59c   : > { %v6677_v43 = vpop.f32.mrb[15].mxu1  ;;  %v2376_v44 = vsel %vm2184_vm5, %v2370_v36, -inf }
 0x59f   : > { %2377 = vmax.xlane.f32.xlu0 %v2376_v44  ;;  %v2317_v45 = vpop.f32.mrb[8].mxu0 }
 0x5a0   : > { %v2371_v46 = vmul.f32 0.35355338, %v2317_v45  ;;  %v6682_v47 = vpop.f32.mrb[9].mxu0  ;;  %v9377_v45 = vpack.c.bf16 %v9305_v9, %v9305_v9 }
 0x5a1   : > { %v2320_v48 = vpop.f32.mrb[10].mxu0  ;;  %v2363_v49 = vpop.f32.mrb[16].mxu1  ;;  %v2522_v47 = vsel %vm2428_vm6, %v9373_v41, 0 }
 0x5a2   : > { %v2372_v50 = vmul.f32 0.35355338, %v2363_v49  ;;  %v6683_v51 = vpop.f32.mrb[11].mxu0  ;;  %v6688_v52 = vpop.f32.mrb[17].mxu1  ;;  %v2379_v54 = vsel %vm2184_vm5, %v2371_v46, -inf  ;;  %v2568_v9 = vsel %vm2428_vm6, %v9377_v45, 0 }
 0x5a3   : > { %v2366_v55 = vpop.f32.mrb[18].mxu1  ;;  %2380 = vmax.xlane.f32.xlu1 %v2379_v54 }
 0x5a4   : > { %v6689_v57 = vpop.f32.mrb[19].mxu1  ;;  %v2382_v58 = vsel %vm2184_vm5, %v2372_v50, -inf }
 0x5a7   : > { %2383 = vmax.xlane.f32.xlu1 %v2382_v58 }
 0x628   : > { %v2375_v59 = vpop.xlane.xlu0 %2374 }
 0x629   : > { %v2385_v60 = vsub.f32 %v2369_v30, %v2375_v59 }
 0x62b   : > { %v2389_v61 = vmul.f32 1.442695, %v2385_v60 }
 0x62c   : > { %v2378_v62 = vpop.xlane.xlu0 %2377 }
 0x62d   : > { %7325 = vpow2.f32 %v2389_v61  ;;  %v2386_v4 = vsub.f32 %v2370_v36, %v2378_v62 }
 0x62f   : > { %v2391_v7 = vmul.f32 1.442695, %v2386_v4 }
 0x630   : > { %v2381_v8 = vpop.xlane.xlu1 %2380 }
 0x631   : > { %7327 = vpow2.f32 %v2391_v7  ;;  %v2387_v11 = vsub.f32 %v2371_v46, %v2381_v8 }
 0x633   : > { %v2393_v14 = vmul.f32 1.442695, %v2387_v11 }
 0x634   : > { %v2384_v28 = vpop.xlane.xlu1 %2383 }
 0x635   : > { %7329 = vpow2.f32 %v2393_v14  ;;  %v2388_v29 = vsub.f32 %v2372_v50, %v2384_v28 }
 0x637   : > { %v7326_v16 = vpop.eup %7325  ;;  %v2395_v30 = vmul.f32 1.442695, %v2388_v29 }
 0x638   : > { %v2397_v17 = vsel %vm2184_vm5, %v7326_v16, 0.0 }
 0x639   : > { %2398 = vadd.xlane.f32.xlu0 %v2397_v17  ;;  %7331 = vpow2.f32 %v2395_v30 }
 0x63b   : > { %v7328_v18 = vpop.eup %7327 }
 0x63c   : > { %v2400_v23 = vsel %vm2184_vm5, %v7328_v18, 0.0 }
 0x63d   : > { %2401 = vadd.xlane.f32.xlu1 %v2400_v23 }
 0x63f   : > { %v7330_v24 = vpop.eup %7329 }
 0x640   : > { %v2403_v27 = vsel %vm2184_vm5, %v7330_v24, 0.0 }
 0x641   : > { %2404 = vadd.xlane.f32.xlu0 %v2403_v27 }
 0x643   : > { %v7332_v31 = vpop.eup %7331 }
 0x644   : > { %v2406_v33 = vsel %vm2184_vm5, %v7332_v31, 0.0 }
 0x64e   : > { %2666 = vrot.lane.b32.xlu1 %v9289_v56, %s8346_s4 }
 0x652   : > { %2611 = vrot.lane.b32.xlu1 %v9302_v6, %s8346_s4 }
 0x657   : > { %2614 = vrot.lane.b32.xlu0 %v9287_v53, %s8346_s4 }
 0x65b   : > { %2718 = vrot.lane.b32.xlu0 %v9300_v5, %s8346_s4 }
 0x65f   : > { %2715 = vrot.lane.b32.xlu0 %v9325_v21, %s8346_s4 }
 0x676   : > { %2407 = vadd.xlane.f32.xlu1 %v2406_v33 }
 0x687   : > { %2663 = vrot.lane.b32.xlu1 %v9309_v13, %s8346_s4 }
 0x68b   : > { %2770 = vrot.lane.b32.xlu1 %v9307_v12, %s8346_s4 }
 0x68f   : > { %2767 = vrot.lane.b32.xlu1 %v9327_v22, %s8346_s4 }
 0x6c6   : > { %v2399_v34 = vpop.xlane.xlu0 %2398 }
 0x6c7   : > { %7333 = vrcp.f32 %v2399_v34 }
 0x6ca   : > { %v2402_v36 = vpop.xlane.xlu1 %2401 }
 0x6cb   : > { %7335 = vrcp.f32 %v2402_v36 }
 0x6ce   : > { %v2405_v38 = vpop.xlane.xlu0 %2404  ;;  %v2667_v54 = vpop.permute.xlu1 %2666 }
 0x6cf   : > { %7337 = vrcp.f32 %v2405_v38  ;;  %v2672_v8 = vsel %vm2184_vm5, %v2667_v54, 0 }
 0x6d1   : > { %v7334_v40 = vpop.eup %7333 }
 0x6d2   : > { %v2410_v42 = vmul.f32 %v7334_v40, %v7326_v16  ;;  %v2615_v50 = vpop.permute.xlu0 %2614  ;;  %v2612_v57 = vpop.permute.xlu1 %2611 }
 0x6d3   : > { %v2620_v52 = vsel %vm2184_vm5, %v2615_v50, 0 }
 0x6d4   : > { %v2417_v43 = vpack.c.bf16 %v2410_v42, %v2410_v42 }
 0x6d5   : > { %v7336_v44 = vpop.eup %7335 }
 0x6d6   : > { %v2412_v46 = vmul.f32 %v7336_v44, %v7328_v18  ;;  %6693 = vmatmul.mubr.msk.bf16.vlgmr.msra.gmra.mrb[12].mxu0 %vm2184_vm5, %v2417_v43  ;;  %v2719_v55 = vpop.permute.xlu0 %2718 }
 0x6d7   : > { %6703 = vmatpush3.bf16.msra.mxu0 %v2522_v47  ;;  %6704 = vmatprep.mubr.msk.bf16.mxu0 %vm8344_vm0, %v8343_v0  ;;  %v2724_v58 = vsel %vm2184_vm5, %v2719_v55, 0 }
 0x6d8   : > { %v2418_v48 = vpack.c.bf16 %v2412_v46, %v2412_v46  ;;  %6714 = vmatprep.subr.bf16.mxu0 %v8343_v0 }
 0x6d9   : > { %v7338_v63 = vpop.eup %7337 }
 0x6da   : > { %v2414_v49 = vmul.f32 %v7338_v63, %v7330_v24  ;;  %6699 = vmatmul.mubr.msk.bf16.vlgmr.msra.gmra.mrb[20].mxu1 %vm2184_vm5, %v2418_v48  ;;  %v2716_v59 = vpop.permute.xlu0 %2715 }
 0x6db   : > { %6709 = vmatpush3.bf16.msra.mxu1 %v2568_v9  ;;  %6710 = vmatprep.mubr.msk.bf16.mxu1 %vm8344_vm0, %v8343_v0 }
 0x6dc   : > { %v2419_v51 = vpack.c.bf16 %v2414_v49, %v2414_v49  ;;  %6720 = vmatprep.subr.bf16.mxu1 %v8343_v0 }
 0x6de   : > { %6705 = vmatmul.mubr.msk.bf16.vlgmr.msra.gmra.mrb[16].mxu0 %vm2184_vm5, %v2419_v51 }
 0x6df   : > { %6716 = vmatprep.mubr.msk.bf16.mxu0 %vm8344_vm0, %v8343_v0 }
 0x6e0   : > { %6715 = vmatpush3.bf16.xpose.msra.mxu0 %v2620_v52 }
 0x6e1   : > { %6726 = vmatprep.subr.bf16.mxu0 %v8343_v0 }
 0x6e7   : > { %6717 = vmatmul.mubr.msk.bf16.vlgmr.msra.gmra.mrb[20].mxu0 %vm2184_vm5, %v2612_v57 }
 0x6e8   : > { %6727 = vmatpush3.bf16.xpose.msra.mxu0 %v2724_v58  ;;  %6728 = vmatprep.mubr.msk.bf16.mxu0 %vm8344_vm0, %v8343_v0 }
 0x6e9   : > { %6738 = vmatprep.subr.bf16.mxu0 %v8343_v0 }
 0x6ef   : > { %6729 = vmatmul.mubr.msk.bf16.vlgmr.msra.gmra.mrb[24].mxu0 %vm2184_vm5, %v2716_v59 }
 0x6f0   : > { %6740 = vmatprep.mubr.msk.bf16.mxu0 %vm8344_vm0, %v8343_v0 }
 0x703   : > { %v2408_v60 = vpop.xlane.xlu1 %2407 }
 0x704   : > { %7339 = vrcp.f32 %v2408_v60 }
 0x707   : > { %v2664_v7 = vpop.permute.xlu1 %2663 }
 0x70b   : > { %v2771_v11 = vpop.permute.xlu1 %2770 }
 0x70c   : > { %v2776_v14 = vsel %vm2184_vm5, %v2771_v11, 0 }
 0x70e   : > { %v7340_v61 = vpop.eup %7339 }
 0x70f   : > { %v2416_v62 = vmul.f32 %v7340_v61, %v7332_v31  ;;  %v2768_v16 = vpop.permute.xlu1 %2767 }
 0x711   : > { %v2420_v4 = vpack.c.bf16 %v2416_v62, %v2416_v62 }
 0x713   : > { %6711 = vmatmul.mubr.msk.bf16.vlgmr.msra.gmra.mrb[24].mxu1 %vm2184_vm5, %v2420_v4 }
 0x714   : > { %6721 = vmatpush3.bf16.xpose.msra.mxu1 %v2672_v8  ;;  %6722 = vmatprep.mubr.msk.bf16.mxu1 %vm8344_vm0, %v8343_v0 }
 0x715   : > { %6732 = vmatprep.subr.bf16.mxu1 %v8343_v0 }
 0x71b   : > { %6723 = vmatmul.mubr.msk.bf16.vlgmr.msra.gmra.mrb[28].mxu1 %vm2184_vm5, %v2664_v7 }
 0x71c   : > { %6733 = vmatpush3.bf16.xpose.msra.mxu1 %v2776_v14  ;;  %6734 = vmatprep.mubr.msk.bf16.mxu1 %vm8344_vm0, %v8343_v0 }
 0x71d   : > { %6744 = vmatprep.subr.bf16.mxu1 %v8343_v0 }
 0x723   : > { %6735 = vmatmul.mubr.msk.bf16.vlgmr.msra.gmra.mrb[32].mxu1 %vm2184_vm5, %v2768_v16 }
 0x724   : > { %6746 = vmatprep.mubr.msk.bf16.mxu1 %vm8344_vm0, %v8343_v0 }
 0x7a9   : > { %v9417_v17 = vpop.f32.mrb[12].mxu0 }
 0x7aa   : > { %v6694_v18 = vpop.f32.mrb[13].mxu0 }
 0x7ab   : > { %v2469_v23 = vpop.f32.mrb[14].mxu0 }
 0x7ac   : > { %v6695_v24 = vpop.f32.mrb[15].mxu0 }
 0x7ad   : > { %v9419_v27 = vpop.f32.mrb[20].mxu1 }
 0x7ae   : > { %v6700_v28 = vpop.f32.mrb[21].mxu1 }
 0x7af   : > { %v2515_v29 = vpop.f32.mrb[22].mxu1 }
 0x7b0   : > { %v6701_v30 = vpop.f32.mrb[23].mxu1 }
 0x7b1   : > { %v9421_v31 = vpop.f32.mrb[16].mxu0 }
 0x7b2   : > { %v6706_v33 = vpop.f32.mrb[17].mxu0 }
 0x7b3   : > { %v2561_v34 = vpop.f32.mrb[18].mxu0 }
 0x7b4   : > { %v6707_v36 = vpop.f32.mrb[19].mxu0 }
 0x7ba   : > { %v2656_v38 = vpop.f32.mrb[20].mxu0 }
 0x7bb   : > { %v2818_v40 = vmul.f32 0.35355338, %v2656_v38  ;;  %v6718_v42 = vpop.f32.mrb[21].mxu0 }
 0x7bc   : > { %v2659_v43 = vpop.f32.mrb[22].mxu0 }
 0x7bd   : > { %v6719_v44 = vpop.f32.mrb[23].mxu0  ;;  %v2822_v46 = vsel %vm2184_vm5, %v2818_v40, -inf }
 0x7be   : > { %2823 = vmax.xlane.f32.xlu0 %v2822_v46 }
 0x7c2   : > { %v2760_v47 = vpop.f32.mrb[24].mxu0 }
 0x7c3   : > { %v2820_v48 = vmul.f32 0.35355338, %v2760_v47  ;;  %v6730_v63 = vpop.f32.mrb[25].mxu0 }
 0x7c4   : > { %v2763_v49 = vpop.f32.mrb[26].mxu0 }
 0x7c5   : > { %v6731_v9 = vpop.f32.mrb[27].mxu0  ;;  %v2828_v50 = vsel %vm2184_vm5, %v2820_v48, -inf }
 0x7c6   : > { %2829 = vmax.xlane.f32.xlu0 %v2828_v50 }
 0x7e6   : > { %v9425_v51 = vpop.f32.mrb[24].mxu1 }
 0x7e7   : > { %v6712_v52 = vpop.f32.mrb[25].mxu1 }
 0x7e8   : > { %v2607_v54 = vpop.f32.mrb[26].mxu1 }
 0x7e9   : > { %v6713_v55 = vpop.f32.mrb[27].mxu1 }
 0x7ee   : > { %v2708_v57 = vpop.f32.mrb[28].mxu1 }
 0x7ef   : > { %v2819_v58 = vmul.f32 0.35355338, %v2708_v57  ;;  %v6724_v59 = vpop.f32.mrb[29].mxu1 }
 0x7f0   : > { %v2711_v60 = vpop.f32.mrb[30].mxu1 }
 0x7f1   : > { %v6725_v61 = vpop.f32.mrb[31].mxu1  ;;  %v2825_v62 = vsel %vm2184_vm5, %v2819_v58, -inf }
 0x7f2   : > { %2826 = vmax.xlane.f32.xlu1 %v2825_v62 }
 0x7f6   : > { %v2812_v4 = vpop.f32.mrb[32].mxu1 }
 0x7f7   : > { %v2821_v7 = vmul.f32 0.35355338, %v2812_v4  ;;  %v6736_v8 = vpop.f32.mrb[33].mxu1 }
 0x7f8   : > { %v2815_v11 = vpop.f32.mrb[34].mxu1 }
 0x7f9   : > { %v6737_v14 = vpop.f32.mrb[35].mxu1  ;;  %v2831_v16 = vsel %vm2184_vm5, %v2821_v7, -inf }
 0x7fa   : > { %2832 = vmax.xlane.f32.xlu0 %v2831_v16 }
 0x803   : > { %2920 = vrot.lane.b32.xlu1 %v9339_v26, %s8346_s4 }
 0x807   : > { %2969 = vrot.lane.b32.xlu1 %v9373_v41, %s8346_s4 }
 0x80b   : > { %3018 = vrot.lane.b32.xlu1 %v9377_v45, %s8346_s4 }
 0x84b   : > { %v2824_v18 = vpop.xlane.xlu0 %2823 }
 0x84c   : > { %v2834_v23 = vsub.f32 %v2818_v40, %v2824_v18 }
 0x84e   : > { %v2838_v24 = vmul.f32 1.442695, %v2834_v23 }
 0x850   : > { %7341 = vpow2.f32 %v2838_v24 }
 0x853   : > { %v2830_v30 = vpop.xlane.xlu0 %2829 }
 0x854   : > { %v2836_v33 = vsub.f32 %v2820_v48, %v2830_v30 }
 0x856   : > { %v2842_v34 = vmul.f32 1.442695, %v2836_v33 }
 0x858   : > { %7343 = vpow2.f32 %v2842_v34 }
 0x85a   : > { %v7342_v28 = vpop.eup %7341 }
 0x85b   : > { %v2846_v29 = vsel %vm2184_vm5, %v7342_v28, 0.0 }
 0x85c   : > { %2847 = vadd.xlane.f32.xlu0 %v2846_v29 }
 0x862   : > { %v7344_v44 = vpop.eup %7343 }
 0x863   : > { %v2852_v63 = vsel %vm2184_vm5, %v7344_v44, 0.0 }
 0x872   : > { %2871 = vrot.lane.b32.xlu0 %v9337_v25, %s8346_s4 }
 0x87f   : > { %v2827_v36 = vpop.xlane.xlu1 %2826 }
 0x880   : > { %v2835_v38 = vsub.f32 %v2819_v58, %v2827_v36 }
 0x882   : > { %v2840_v42 = vmul.f32 1.442695, %v2835_v38 }
 0x883   : > { %v2921_v43 = vpop.permute.xlu1 %2920 }
 0x884   : > { %7345 = vpow2.f32 %v2840_v42  ;;  %v2926_v40 = vsel %vm2428_vm6, %v2921_v43, 0 }
 0x885   : > { %6745 = vmatpush3.bf16.msra.mxu1 %v2926_v40 }
 0x886   : > { %6756 = vmatprep.subr.bf16.mxu1 %v8343_v0 }
 0x887   : > { %v2833_v48 = vpop.xlane.xlu0 %2832  ;;  %v2970_v60 = vpop.permute.xlu1 %2969 }
 0x888   : > { %v2837_v49 = vsub.f32 %v2821_v7, %v2833_v48  ;;  %v2975_v62 = vsel %vm2428_vm6, %v2970_v60, 0 }
 0x88a   : > { %v2844_v9 = vmul.f32 1.442695, %v2837_v49 }
 0x88b   : > { %v3019_v4 = vpop.permute.xlu1 %3018 }
 0x88c   : > { %7347 = vpow2.f32 %v2844_v9  ;;  %v3024_v29 = vsel %vm2428_vm6, %v3019_v4, 0 }
 0x88e   : > { %v7346_v46 = vpop.eup %7345 }
 0x88f   : > { %v2849_v47 = vsel %vm2184_vm5, %v7346_v46, 0.0 }
 0x890   : > { %2850 = vadd.xlane.f32.xlu1 %v2849_v47 }
 0x891   : > { %2853 = vadd.xlane.f32.xlu0 %v2852_v63 }
 0x896   : > { %v7348_v50 = vpop.eup %7347 }
 0x897   : > { %v2855_v52 = vsel %vm2184_vm5, %v7348_v50, 0.0 }
 0x8a1   : > { %3118 = vrot.lane.b32.xlu1 %v9289_v56, %s8347_s7 }
 0x8a7   : > { %3068 = vrot.lane.b32.xlu0 %v9287_v53, %s8347_s7 }
 0x8ab   : > { %3066 = vrot.lane.b32.xlu0 %v9302_v6, %s8347_s7 }
 0x8af   : > { %3168 = vrot.lane.b32.xlu0 %v9300_v5, %s8347_s7 }
 0x8b3   : > { %3166 = vrot.lane.b32.xlu0 %v9325_v21, %s8347_s7 }
 0x8c5   : > { %2856 = vadd.xlane.f32.xlu1 %v2855_v52 }
 0x8d6   : > { %3116 = vrot.lane.b32.xlu1 %v9309_v13, %s8347_s7 }
 0x8da   : > { %3218 = vrot.lane.b32.xlu1 %v9307_v12, %s8347_s7 }
 0x8de   : > { %3216 = vrot.lane.b32.xlu1 %v9327_v22, %s8347_s7 }
 0x8e9   : > { %v2848_v54 = vpop.xlane.xlu0 %2847 }
 0x8ea   : > { %7349 = vrcp.f32 %v2848_v54 }
 0x8ed   : > { %v2872_v55 = vpop.permute.xlu0 %2871 }
 0x8ee   : > { %v2877_v57 = vsel %vm2428_vm6, %v2872_v55, 0 }
 0x8ef   : > { %6739 = vmatpush3.bf16.msra.mxu0 %v2877_v57 }
 0x8f0   : > { %6750 = vmatprep.subr.bf16.mxu0 %v8343_v0 }
 0x8f4   : > { %v7350_v58 = vpop.eup %7349 }
 0x8f5   : > { %v2859_v59 = vmul.f32 %v7350_v58, %v7342_v28 }
 0x8f7   : > { %v2866_v61 = vpack.c.bf16 %v2859_v59, %v2859_v59 }
 0x8f9   : > { %6741 = vmatmul.mubr.msk.bf16.vlgmr.msra.gmra.mrb[28].mxu0 %vm2184_vm5, %v2866_v61 }
 0x8fa   : > { %6751 = vmatpush3.bf16.msra.mxu0 %v2975_v62  ;;  %6752 = vmatprep.mubr.msk.bf16.mxu0 %vm8344_vm0, %v8343_v0 }
 0x8fb   : > { %6762 = vmatprep.subr.bf16.mxu0 %v8343_v0 }
 0x91d   : > { %v2851_v7 = vpop.xlane.xlu1 %2850 }
 0x91e   : > { %7351 = vrcp.f32 %v2851_v7  ;;  %v2854_v8 = vpop.xlane.xlu0 %2853 }
 0x91f   : > { %7353 = vrcp.f32 %v2854_v8 }
 0x921   : > { %v3119_v42 = vpop.permute.xlu1 %3118 }
 0x922   : > { %v3069_v11 = vpop.permute.xlu0 %3068  ;;  %v3124_v63 = vsel %vm2184_vm5, %v3119_v42, 0 }
 0x923   : > { %v3074_v33 = vsel %vm2184_vm5, %v3069_v11, 0 }
 0x926   : > { %v3067_v30 = vpop.permute.xlu0 %3066 }
 0x928   : > { %v7352_v14 = vpop.eup %7351 }
 0x929   : > { %v7354_v16 = vpop.eup %7353  ;;  %v2861_v18 = vmul.f32 %v7352_v14, %v7346_v46 }
 0x92a   : > { %v2863_v23 = vmul.f32 %v7354_v16, %v7344_v44  ;;  %v3169_v34 = vpop.permute.xlu0 %3168 }
 0x92b   : > { %v2867_v24 = vpack.c.bf16 %v2861_v18, %v2861_v18  ;;  %v3174_v36 = vsel %vm2184_vm5, %v3169_v34, 0 }
 0x92c   : > { %v2868_v28 = vpack.c.bf16 %v2863_v23, %v2863_v23 }
 0x92d   : > { %6747 = vmatmul.mubr.msk.bf16.vlgmr.msra.gmra.mrb[36].mxu1 %vm2184_vm5, %v2867_v24 }
 0x92e   : > { %6753 = vmatmul.mubr.msk.bf16.vlgmr.msra.gmra.mrb[32].mxu0 %vm2184_vm5, %v2868_v28  ;;  %6757 = vmatpush3.bf16.msra.mxu1 %v3024_v29  ;;  %v3167_v38 = vpop.permute.xlu0 %3166 }
 0x92f   : > { %6763 = vmatpush3.bf16.xpose.msra.mxu0 %v3074_v33  ;;  %6764 = vmatprep.mubr.msk.bf16.mxu0 %vm8344_vm0, %v8343_v0 }
 0x930   : > { %6774 = vmatprep.subr.bf16.mxu0 %v8343_v0  ;;  %6758 = vmatprep.mubr.msk.bf16.mxu1 %vm8344_vm0, %v8343_v0 }
 0x931   : > { %6768 = vmatprep.subr.bf16.mxu1 %v8343_v0 }
 0x936   : > { %6765 = vmatmul.mubr.msk.bf16.vlgmr.msra.gmra.mrb[36].mxu0 %vm2184_vm5, %v3067_v30 }
 0x937   : > { %6775 = vmatpush3.bf16.xpose.msra.mxu0 %v3174_v36  ;;  %6776 = vmatprep.mubr.msk.bf16.mxu0 %vm8344_vm0, %v8343_v0 }
 0x938   : > { %6786 = vmatprep.subr.bf16.mxu0 %v8343_v0 }
 0x93e   : > { %6777 = vmatmul.mubr.msk.bf16.vlgmr.msra.gmra.mrb[40].mxu0 %vm2184_vm5, %v3167_v38 }
 0x93f   : > { %6788 = vmatprep.mubr.msk.bf16.mxu0 %vm8344_vm0, %v8343_v0 }
 0x952   : > { %v2857_v43 = vpop.xlane.xlu1 %2856 }
 0x953   : > { %7355 = vrcp.f32 %v2857_v43 }
 0x956   : > { %v3117_v47 = vpop.permute.xlu1 %3116 }
 0x95a   : > { %v3219_v48 = vpop.permute.xlu1 %3218 }
 0x95b   : > { %v3224_v49 = vsel %vm2184_vm5, %v3219_v48, 0 }
 0x95d   : > { %v7356_v40 = vpop.eup %7355 }
 0x95e   : > { %v2865_v44 = vmul.f32 %v7356_v40, %v7348_v50  ;;  %v3217_v9 = vpop.permute.xlu1 %3216 }
 0x960   : > { %v2869_v46 = vpack.c.bf16 %v2865_v44, %v2865_v44 }
 0x962   : > { %6759 = vmatmul.mubr.msk.bf16.vlgmr.msra.gmra.mrb[40].mxu1 %vm2184_vm5, %v2869_v46 }
 0x963   : > { %6769 = vmatpush3.bf16.xpose.msra.mxu1 %v3124_v63  ;;  %6770 = vmatprep.mubr.msk.bf16.mxu1 %vm8344_vm0, %v8343_v0 }
 0x964   : > { %6780 = vmatprep.subr.bf16.mxu1 %v8343_v0 }
 0x96a   : > { %6771 = vmatmul.mubr.msk.bf16.vlgmr.msra.gmra.mrb[44].mxu1 %vm2184_vm5, %v3117_v47 }
 0x96b   : > { %6781 = vmatpush3.bf16.xpose.msra.mxu1 %v3224_v49  ;;  %6782 = vmatprep.mubr.msk.bf16.mxu1 %vm8344_vm0, %v8343_v0 }
 0x96c   : > { %6792 = vmatprep.subr.bf16.mxu1 %v8343_v0 }
 0x972   : > { %6783 = vmatmul.mubr.msk.bf16.vlgmr.msra.gmra.mrb[48].mxu1 %vm2184_vm5, %v3217_v9 }
 0x973   : > { %6794 = vmatprep.mubr.msk.bf16.mxu1 %vm8344_vm0, %v8343_v0 }
 0x9cc   : > { %v9497_v50 = vpop.f32.mrb[28].mxu0 }
 0x9cd   : > { %v6742_v52 = vpop.f32.mrb[29].mxu0 }
 0x9ce   : > { %v2916_v54 = vpop.f32.mrb[30].mxu0 }
 0x9cf   : > { %v6743_v55 = vpop.f32.mrb[31].mxu0 }
 0xa00   : > { %v9499_v57 = vpop.f32.mrb[36].mxu1 }
 0xa01   : > { %v7281_v58 = vpack.i.bf16 %v9499_v57, %v9497_v50  ;;  %v9503_v59 = vpop.f32.mrb[32].mxu0  ;;  %v6748_v60 = vpop.f32.mrb[37].mxu1 }
 0xa02   : > { %v6754_v61 = vpop.f32.mrb[33].mxu0  ;;  %v2965_v62 = vpop.f32.mrb[38].mxu1 }
 0xa03   : > { %v3014_v4 = vpop.f32.mrb[34].mxu0  ;;  %v6749_v7 = vpop.f32.mrb[39].mxu1 }
 0xa04   : > { %v6755_v8 = vpop.f32.mrb[35].mxu0 }
 0xa09   : > { %v3110_v11 = vpop.f32.mrb[36].mxu0 }
 0xa0a   : > { %v3266_v14 = vmul.f32 0.35355338, %v3110_v11  ;;  %v6766_v16 = vpop.f32.mrb[37].mxu0 }
 0xa0b   : > { %v3113_v18 = vpop.f32.mrb[38].mxu0 }
 0xa0c   : > { %v6767_v23 = vpop.f32.mrb[39].mxu0  ;;  %v3270_v24 = vsel %vm2184_vm5, %v3266_v14, -inf }
 0xa0d   : > { %3271 = vmax.xlane.f32.xlu0 %v3270_v24 }
 0xa11   : > { %v3210_v28 = vpop.f32.mrb[40].mxu0 }
 0xa12   : > { %v3268_v29 = vmul.f32 0.35355338, %v3210_v28  ;;  %v6778_v30 = vpop.f32.mrb[41].mxu0 }
 0xa13   : > { %v3213_v33 = vpop.f32.mrb[42].mxu0 }
 0xa14   : > { %v6779_v34 = vpop.f32.mrb[43].mxu0  ;;  %v3276_v36 = vsel %vm2184_vm5, %v3268_v29, -inf }
 0xa15   : > { %3277 = vmax.xlane.f32.xlu0 %v3276_v36 }
 0xa35   : > { %v9507_v38 = vpop.f32.mrb[40].mxu1 }
 0xa36   : > { %v7286_v42 = vpack.i.bf16 %v9507_v38, %v9503_v59  ;;  %v6760_v43 = vpop.f32.mrb[41].mxu1 }
 0xa37   : > { %v3063_v40 = vpop.f32.mrb[42].mxu1 }
 0xa38   : > { %v6761_v44 = vpop.f32.mrb[43].mxu1 }
 0xa3d   : > { %v3160_v46 = vpop.f32.mrb[44].mxu1 }
 0xa3e   : > { %v3267_v47 = vmul.f32 0.35355338, %v3160_v46  ;;  %v6772_v63 = vpop.f32.mrb[45].mxu1 }
 0xa3f   : > { %v3163_v48 = vpop.f32.mrb[46].mxu1 }
 0xa40   : > { %v6773_v49 = vpop.f32.mrb[47].mxu1  ;;  %v3273_v9 = vsel %vm2184_vm5, %v3267_v47, -inf }
 0xa41   : > { %3274 = vmax.xlane.f32.xlu1 %v3273_v9 }
 0xa45   : > { %v3260_v52 = vpop.f32.mrb[48].mxu1 }
 0xa46   : > { %v3269_v54 = vmul.f32 0.35355338, %v3260_v52  ;;  %v6784_v55 = vpop.f32.mrb[49].mxu1 }
 0xa47   : > { %v3263_v60 = vpop.f32.mrb[50].mxu1 }
 0xa48   : > { %v6785_v61 = vpop.f32.mrb[51].mxu1  ;;  %v3279_v62 = vsel %vm2184_vm5, %v3269_v54, -inf }
 0xa49   : > { %3280 = vmax.xlane.f32.xlu0 %v3279_v62 }
 0xa52   : > { %3366 = vrot.lane.b32.xlu1 %v9339_v26, %s8347_s7 }
 0xa56   : > { %3414 = vrot.lane.b32.xlu1 %v9373_v41, %s8347_s7 }
 0xa5a   : > { %3462 = vrot.lane.b32.xlu1 %v9377_v45, %s8347_s7 }
 0xa9a   : > { %v3272_v4 = vpop.xlane.xlu0 %3271 }
 0xa9b   : > { %v3282_v7 = vsub.f32 %v3266_v14, %v3272_v4 }
 0xa9d   : > { %v3286_v8 = vmul.f32 1.442695, %v3282_v7 }
 0xa9f   : > { %7357 = vpow2.f32 %v3286_v8 }
 0xaa2   : > { %v3278_v18 = vpop.xlane.xlu0 %3277 }
 0xaa3   : > { %v3284_v23 = vsub.f32 %v3268_v29, %v3278_v18 }
 0xaa5   : > { %v3290_v24 = vmul.f32 1.442695, %v3284_v23 }
 0xaa7   : > { %7359 = vpow2.f32 %v3290_v24 }
 0xaa9   : > { %v7358_v11 = vpop.eup %7357 }
 0xaaa   : > { %v3294_v16 = vsel %vm2184_vm5, %v7358_v11, 0.0 }
 0xaab   : > { %3295 = vadd.xlane.f32.xlu0 %v3294_v16 }
 0xab1   : > { %v7360_v36 = vpop.eup %7359 }
 0xab2   : > { %v3300_v44 = vsel %vm2184_vm5, %v7360_v36, 0.0 }
 0xac1   : > { %3318 = vrot.lane.b32.xlu0 %v9337_v25, %s8347_s7 }
 0xace   : > { %v3275_v28 = vpop.xlane.xlu1 %3274 }
 0xacf   : > { %v3283_v30 = vsub.f32 %v3267_v47, %v3275_v28 }
 0xad1   : > { %v3288_v33 = vmul.f32 1.442695, %v3283_v30 }
 0xad2   : > { %v3367_v34 = vpop.permute.xlu1 %3366 }
 0xad3   : > { %7361 = vpow2.f32 %v3288_v33  ;;  %v3372_v14 = vsel %vm2428_vm6, %v3367_v34, 0 }
 0xad4   : > { %6793 = vmatpush3.bf16.msra.mxu1 %v3372_v14 }
 0xad5   : > { %6804 = vmatprep.subr.bf16.mxu1 %v8343_v0 }
 0xad6   : > { %v3281_v29 = vpop.xlane.xlu0 %3280  ;;  %v3415_v49 = vpop.permute.xlu1 %3414 }
 0xad7   : > { %v3285_v46 = vsub.f32 %v3269_v54, %v3281_v29 }
 0xad9   : > { %v3292_v47 = vmul.f32 1.442695, %v3285_v46 }
 0xadb   : > { %7363 = vpow2.f32 %v3292_v47 }
 0xadd   : > { %v7362_v43 = vpop.eup %7361 }
 0xade   : > { %v3297_v40 = vsel %vm2184_vm5, %v7362_v43, 0.0 }
 0xadf   : > { %3298 = vadd.xlane.f32.xlu1 %v3297_v40 }
 0xae0   : > { %3301 = vadd.xlane.f32.xlu0 %v3300_v44 }
 0xae5   : > { %v7364_v63 = vpop.eup %7363 }
 0xae6   : > { %v3303_v48 = vsel %vm2184_vm5, %v7364_v63, 0.0 }
 0xaf0   : > { %3562 = vrot.lane.b32.xlu1 %v9289_v56, %s8348_s2 }
 0xaf6   : > { %3512 = vrot.lane.b32.xlu0 %v9287_v53, %s8348_s2 }
 0xafa   : > { %3510 = vrot.lane.b32.xlu0 %v9302_v6, %s8348_s2 }
 0xafe   : > { %3612 = vrot.lane.b32.xlu0 %v9300_v5, %s8348_s2 }
 0xb02   : > { %3610 = vrot.lane.b32.xlu0 %v9325_v21, %s8348_s2 }
 0xb14   : > { %3304 = vadd.xlane.f32.xlu1 %v3303_v48 }
 0xb25   : > { %3560 = vrot.lane.b32.xlu1 %v9309_v13, %s8348_s2  ;;  %v3420_v13 = vsel %vm2428_vm6, %v3415_v49, 0 }
 0xb29   : > { %3662 = vrot.lane.b32.xlu1 %v9307_v12, %s8348_s2  ;;  %v3463_v12 = vpop.permute.xlu1 %3462 }
 0xb2a   : > { %v3468_v8 = vsel %vm2428_vm6, %v3463_v12, 0 }
 0xb2d   : > { %3660 = vrot.lane.b32.xlu1 %v9327_v22, %s8348_s2 }
 0xb38   : > { %v3296_v53 = vpop.xlane.xlu0 %3295 }
 0xb39   : > { %7365 = vrcp.f32 %v3296_v53 }
 0xb3c   : > { %v3319_v56 = vpop.permute.xlu0 %3318 }
 0xb3d   : > { %v3324_v5 = vsel %vm2428_vm6, %v3319_v56, 0 }
 0xb3e   : > { %6787 = vmatpush3.bf16.msra.mxu0 %v3324_v5 }
 0xb3f   : > { %6798 = vmatprep.subr.bf16.mxu0 %v8343_v0 }
 0xb43   : > { %v7366_v6 = vpop.eup %7365 }
 0xb44   : > { %v3307_v21 = vmul.f32 %v7366_v6, %v7358_v11 }
 0xb46   : > { %v3314_v9 = vpack.c.bf16 %v3307_v21, %v3307_v21 }
 0xb48   : > { %6789 = vmatmul.mubr.msk.bf16.vlgmr.msra.gmra.mrb[44].mxu0 %vm2184_vm5, %v3314_v9 }
 0xb49   : > { %6799 = vmatpush3.bf16.msra.mxu0 %v3420_v13  ;;  %6800 = vmatprep.mubr.msk.bf16.mxu0 %vm8344_vm0, %v8343_v0 }
 0xb4a   : > { %6810 = vmatprep.subr.bf16.mxu0 %v8343_v0 }
 0xb6c   : > { %v3299_v22 = vpop.xlane.xlu1 %3298 }
 0xb6d   : > { %7367 = vrcp.f32 %v3299_v22  ;;  %v3302_v52 = vpop.xlane.xlu0 %3301 }
 0xb6e   : > { %7369 = vrcp.f32 %v3302_v52 }
 0xb70   : > { %v3563_v28 = vpop.permute.xlu1 %3562 }
 0xb71   : > { %v3513_v54 = vpop.permute.xlu0 %3512 }
 0xb72   : > { %v3518_v16 = vsel %vm2184_vm5, %v3513_v54, 0 }
 0xb75   : > { %v3511_v11 = vpop.permute.xlu0 %3510 }
 0xb77   : > { %v7368_v55 = vpop.eup %7367 }
 0xb78   : > { %v7370_v60 = vpop.eup %7369  ;;  %v3309_v61 = vmul.f32 %v7368_v55, %v7362_v43  ;;  %v3568_v43 = vsel %vm2184_vm5, %v3563_v28, 0 }
 0xb79   : > { %v3311_v62 = vmul.f32 %v7370_v60, %v7360_v36  ;;  %v3613_v18 = vpop.permute.xlu0 %3612 }
 0xb7a   : > { %v3315_v4 = vpack.c.bf16 %v3309_v61, %v3309_v61  ;;  %v3618_v23 = vsel %vm2184_vm5, %v3613_v18, 0 }
 0xb7b   : > { %v3316_v7 = vpack.c.bf16 %v3311_v62, %v3311_v62 }
 0xb7c   : > { %6795 = vmatmul.mubr.msk.bf16.vlgmr.msra.gmra.mrb[52].mxu1 %vm2184_vm5, %v3315_v4 }
 0xb7d   : > { %6801 = vmatmul.mubr.msk.bf16.vlgmr.msra.gmra.mrb[48].mxu0 %vm2184_vm5, %v3316_v7  ;;  %6805 = vmatpush3.bf16.msra.mxu1 %v3468_v8  ;;  %v3611_v24 = vpop.permute.xlu0 %3610 }
 0xb7e   : > { %6811 = vmatpush3.bf16.xpose.msra.mxu0 %v3518_v16  ;;  %6812 = vmatprep.mubr.msk.bf16.mxu0 %vm8344_vm0, %v8343_v0 }
 0xb7f   : > { %6822 = vmatprep.subr.bf16.mxu0 %v8343_v0  ;;  %6806 = vmatprep.mubr.msk.bf16.mxu1 %vm8344_vm0, %v8343_v0 }
 0xb80   : > { %6816 = vmatprep.subr.bf16.mxu1 %v8343_v0 }
 0xb85   : > { %6813 = vmatmul.mubr.msk.bf16.vlgmr.msra.gmra.mrb[52].mxu0 %vm2184_vm5, %v3511_v11 }
 0xb86   : > { %6823 = vmatpush3.bf16.xpose.msra.mxu0 %v3618_v23  ;;  %6824 = vmatprep.mubr.msk.bf16.mxu0 %vm8344_vm0, %v8343_v0 }
 0xb87   : > { %6834 = vmatprep.subr.bf16.mxu0 %v8343_v0 }
 0xb8d   : > { %6825 = vmatmul.mubr.msk.bf16.vlgmr.msra.gmra.mrb[56].mxu0 %vm2184_vm5, %v3611_v24 }
 0xb8e   : > { %6836 = vmatprep.mubr.msk.bf16.mxu0 %vm8344_vm0, %v8343_v0 }
 0xba1   : > { %v3305_v30 = vpop.xlane.xlu1 %3304 }
 0xba2   : > { %7371 = vrcp.f32 %v3305_v30 }
 0xba5   : > { %v3561_v36 = vpop.permute.xlu1 %3560 }
 0xba9   : > { %v3663_v40 = vpop.permute.xlu1 %3662 }
 0xbaa   : > { %v3668_v44 = vsel %vm2184_vm5, %v3663_v40, 0 }
 0xbac   : > { %v7372_v33 = vpop.eup %7371 }
 0xbad   : > { %v3313_v34 = vmul.f32 %v7372_v33, %v7364_v63  ;;  %v3661_v29 = vpop.permute.xlu1 %3660 }
 0xbaf   : > { %v3317_v14 = vpack.c.bf16 %v3313_v34, %v3313_v34 }
 0xbb1   : > { %6807 = vmatmul.mubr.msk.bf16.vlgmr.msra.gmra.mrb[56].mxu1 %vm2184_vm5, %v3317_v14 }
 0xbb2   : > { %6817 = vmatpush3.bf16.xpose.msra.mxu1 %v3568_v43  ;;  %6818 = vmatprep.mubr.msk.bf16.mxu1 %vm8344_vm0, %v8343_v0 }
 0xbb3   : > { %6828 = vmatprep.subr.bf16.mxu1 %v8343_v0 }
 0xbb9   : > { %6819 = vmatmul.mubr.msk.bf16.vlgmr.msra.gmra.mrb[60].mxu1 %vm2184_vm5, %v3561_v36 }
 0xbba   : > { %6829 = vmatpush3.bf16.xpose.msra.mxu1 %v3668_v44  ;;  %6830 = vmatprep.mubr.msk.bf16.mxu1 %vm8344_vm0, %v8343_v0 }
 0xbbb   : > { %6840 = vmatprep.subr.bf16.mxu1 %v8343_v0 }
 0xbc1   : > { %6831 = vmatmul.mubr.msk.bf16.vlgmr.msra.gmra.mrb[64].mxu1 %vm2184_vm5, %v3661_v29 }
 0xbc2   : > { %6842 = vmatprep.mubr.msk.bf16.mxu1 %vm8344_vm0, %v8343_v0 }
 0xc1b   : > { %v9581_v46 = vpop.f32.mrb[44].mxu0 }
 0xc1c   : > { %v6790_v47 = vpop.f32.mrb[45].mxu0 }
 0xc1d   : > { %v3363_v63 = vpop.f32.mrb[46].mxu0 }
 0xc1e   : > { %v6791_v48 = vpop.f32.mrb[47].mxu0 }
 0xc4f   : > { %v9583_v53 = vpop.f32.mrb[52].mxu1 }
 0xc50   : > { %v7291_v56 = vpack.i.bf16 %v9583_v53, %v9581_v46  ;;  %v9587_v5 = vpop.f32.mrb[48].mxu0  ;;  %v6796_v6 = vpop.f32.mrb[53].mxu1 }
 0xc51   : > { %v6802_v21 = vpop.f32.mrb[49].mxu0  ;;  %v3411_v49 = vpop.f32.mrb[54].mxu1 }
 0xc52   : > { %v3459_v9 = vpop.f32.mrb[50].mxu0  ;;  %v6797_v13 = vpop.f32.mrb[55].mxu1 }
 0xc53   : > { %v6803_v12 = vpop.f32.mrb[51].mxu0 }
 0xc58   : > { %v3554_v22 = vpop.f32.mrb[52].mxu0 }
 0xc59   : > { %v3710_v52 = vmul.f32 0.35355338, %v3554_v22  ;;  %v6814_v54 = vpop.f32.mrb[53].mxu0 }
 0xc5a   : > { %v3557_v55 = vpop.f32.mrb[54].mxu0 }
 0xc5b   : > { %v6815_v60 = vpop.f32.mrb[55].mxu0  ;;  %v3714_v61 = vsel %vm2184_vm5, %v3710_v52, -inf }
 0xc5c   : > { %3715 = vmax.xlane.f32.xlu0 %v3714_v61 }
 0xc60   : > { %v3654_v62 = vpop.f32.mrb[56].mxu0 }
 0xc61   : > { %v3712_v4 = vmul.f32 0.35355338, %v3654_v62  ;;  %v6826_v7 = vpop.f32.mrb[57].mxu0 }
 0xc62   : > { %v3657_v8 = vpop.f32.mrb[58].mxu0 }
 0xc63   : > { %v6827_v11 = vpop.f32.mrb[59].mxu0  ;;  %v3720_v16 = vsel %vm2184_vm5, %v3712_v4, -inf }
 0xc64   : > { %3721 = vmax.xlane.f32.xlu0 %v3720_v16 }
 0xc84   : > { %v3504_v18 = vpop.f32.mrb[56].mxu1 }
 0xc85   : > { %v7296_v23 = vpack.i.bf16 %v3504_v18, %v9587_v5  ;;  %v6808_v24 = vpop.f32.mrb[57].mxu1 }
 0xc86   : > { %v3507_v28 = vpop.f32.mrb[58].mxu1 }
 0xc87   : > { %v6809_v30 = vpop.f32.mrb[59].mxu1 }
 0xc8c   : > { %v3604_v33 = vpop.f32.mrb[60].mxu1 }
 0xc8d   : > { %v3711_v34 = vmul.f32 0.35355338, %v3604_v33  ;;  %v6820_v14 = vpop.f32.mrb[61].mxu1 }
 0xc8e   : > { %v3607_v36 = vpop.f32.mrb[62].mxu1 }
 0xc8f   : > { %v6821_v43 = vpop.f32.mrb[63].mxu1  ;;  %v3717_v40 = vsel %vm2184_vm5, %v3711_v34, -inf }
 0xc90   : > { %3718 = vmax.xlane.f32.xlu1 %v3717_v40 }
 0xc94   : > { %v3704_v44 = vpop.f32.mrb[64].mxu1 }
 0xc95   : > { %v3713_v29 = vmul.f32 0.35355338, %v3704_v44  ;;  %v6832_v46 = vpop.f32.mrb[65].mxu1 }
 0xc96   : > { %v3707_v47 = vpop.f32.mrb[66].mxu1 }
 0xc97   : > { %v6833_v63 = vpop.f32.mrb[67].mxu1  ;;  %v3723_v48 = vsel %vm2184_vm5, %v3713_v29, -inf }
 0xc98   : > { %3724 = vmax.xlane.f32.xlu0 %v3723_v48 }
 0xce9   : > { %v3716_v53 = vpop.xlane.xlu0 %3715 }
 0xcea   : > { %v3726_v5 = vsub.f32 %v3710_v52, %v3716_v53  ;;  %v7317_v53 = vld [vmem:[%s10169_s17] sm:$0xff]  }
 0xcec   : > { %v3730_v6 = vmul.f32 1.442695, %v3726_v5 }
 0xcee   : > { %7373 = vpow2.f32 %v3730_v6 }
 0xcf1   : > { %v3722_v21 = vpop.xlane.xlu0 %3721 }
 0xcf2   : > { %v3728_v49 = vsub.f32 %v3712_v4, %v3722_v21 }
 0xcf4   : > { %v3734_v9 = vmul.f32 1.442695, %v3728_v49 }
 0xcf6   : > { %7375 = vpow2.f32 %v3734_v9 }
 0xcf8   : > { %v7374_v13 = vpop.eup %7373 }
 0xcf9   : > { %v3738_v12 = vsel %vm2184_vm5, %v7374_v13, 0.0 }
 0xcfa   : > { %3739 = vadd.xlane.f32.xlu0 %v3738_v12 }
 0xd00   : > { %v7376_v22 = vpop.eup %7375 }
 0xd01   : > { %v3744_v54 = vsel %vm2184_vm5, %v7376_v22, 0.0 }
 0xd02   : > { %3745 = vadd.xlane.f32.xlu0 %v3744_v54  ;;  %v7318_v54 = vld [vmem:[%s10170_s15 + $0x8] sm:$0xff]  }
 0xd18   : > { %3762 = vrot.lane.b32.xlu0 %v9337_v25, %s8348_s2 }
 0xd1c   : > { %7282 = vrot.lane.b32.xlu0 %v7281_v58, %s8349_s9 }
 0xd1d   : > { %v3719_v52 = vpop.xlane.xlu1 %3718 }
 0xd1e   : > { %v3727_v55 = vsub.f32 %v3711_v34, %v3719_v52 }
 0xd20   : > { %v3732_v60 = vmul.f32 1.442695, %v3727_v55  ;;  %7292 = vrot.lane.b32.xlu0 %v7291_v56, %s8350_s8 }
 0xd22   : > { %7377 = vpow2.f32 %v3732_v60 }
 0xd25   : > { %v3725_v25 = vpop.xlane.xlu0 %3724 }
 0xd26   : > { %v3729_v4 = vsub.f32 %v3713_v29, %v3725_v25 }
 0xd28   : > { %v3736_v50 = vmul.f32 1.442695, %v3729_v4 }
 0xd2a   : > { %7379 = vpow2.f32 %v3736_v50 }
 0xd2c   : > { %v7378_v61 = vpop.eup %7377 }
 0xd2d   : > { %v3741_v62 = vsel %vm2184_vm5, %v7378_v61, 0.0 }
 0xd2e   : > { %3742 = vadd.xlane.f32.xlu1 %v3741_v62 }
 0xd34   : > { %v7380_v57 = vpop.eup %7379 }
 0xd35   : > { %v3747_v58 = vsel %vm2184_vm5, %v7380_v57, 0.0 }
 0xd3f   : > { %3810 = vrot.lane.b32.xlu1 %v9339_v26, %s8348_s2 }
 0xd43   : > { %3858 = vrot.lane.b32.xlu1 %v9373_v41, %s8348_s2 }
 0xd67   : > { %3748 = vadd.xlane.f32.xlu1 %v3747_v58 }
 0xd78   : > { %3906 = vrot.lane.b32.xlu1 %v9377_v45, %s8348_s2 }
 0xd7c   : > { %7287 = vrot.lane.b32.xlu1 %v7286_v42, %s8349_s9 }
 0xd80   : > { %7297 = vrot.lane.b32.xlu1 %v7296_v23, %s8350_s8 }
 0xd87   : > { %v3740_v26 = vpop.xlane.xlu0 %3739 }
 0xd88   : > { %7381 = vrcp.f32 %v3740_v26 }
 0xd8f   : > { %v3746_v41 = vpop.xlane.xlu0 %3745 }
 0xd90   : > { %7383 = vrcp.f32 %v3746_v41 }
 0xd92   : > { %v7382_v56 = vpop.eup %7381 }
 0xd93   : > { %v3751_v7 = vmul.f32 %v7382_v56, %v7374_v13  ;;  %v3763_v8 = vpop.permute.xlu0 %3762 }
 0xd94   : > { %v3768_v11 = vsel %vm2428_vm6, %v3763_v8, 0 }
 0xd95   : > { %6835 = vmatpush3.bf16.msra.mxu0 %v3768_v11  ;;  %v3758_v16 = vpack.c.bf16 %v3751_v7, %v3751_v7 }
 0xd96   : > { %6846 = vmatprep.subr.bf16.mxu0 %v8343_v0 }
 0xd97   : > { %v7283_v25 = vpop.permute.xlu0 %7282 }
 0xd98   : > { %6837 = vmatmul.mubr.msk.bf16.vlgmr.msra.gmra.mrb[60].mxu0 %vm2184_vm5, %v3758_v16  ;;  %v7285_v50 = vunpack.i.h.bf16 %v7283_v25 }
 0xd99   : > { %6848 = vmatprep.mubr.msk.bf16.mxu0 %vm8344_vm0, %v8343_v0 }
 0xd9a   : > { %v7384_v59 = vpop.eup %7383  ;;  %v4003_v56 = vsel %vm2184_vm5, %v9419_v27, %v7285_v50 }
 0xd9b   : > { %v3755_v18 = vmul.f32 %v7384_v59, %v7376_v22  ;;  %v7293_v4 = vpop.permute.xlu0 %7292 }
 0xd9c   : > { %v7295_v58 = vunpack.i.h.bf16 %v7293_v4  ;;  %v7294_v26 = vunpack.i.l.bf16 %v7293_v4 }
 0xd9d   : > { %v3760_v30 = vpack.c.bf16 %v3755_v18, %v3755_v18 }
 0xdbb   : > { %v3743_v45 = vpop.xlane.xlu1 %3742 }
 0xdbc   : > { %7385 = vrcp.f32 %v3743_v45  ;;  %v4008_v45 = vsel %vm4006_vm7, %v4003_v56, %v7295_v58 }
 0xdbf   : > { %v3811_v38 = vpop.permute.xlu1 %3810 }
 0xdc0   : > { %v3816_v42 = vsel %vm2428_vm6, %v3811_v38, 0 }
 0xdc1   : > { %6841 = vmatpush3.bf16.msra.mxu1 %v3816_v42 }
 0xdc2   : > { %6852 = vmatprep.subr.bf16.mxu1 %v8343_v0 }
 0xdc3   : > { %v3859_v23 = vpop.permute.xlu1 %3858 }
 0xdc4   : > { %v3864_v24 = vsel %vm2428_vm6, %v3859_v23, 0 }
 0xdc5   : > { %6847 = vmatpush3.bf16.msra.mxu0 %v3864_v24 }
 0xdc6   : > { %v7386_v28 = vpop.eup %7385  ;;  %6858 = vmatprep.subr.bf16.mxu0 %v7317_v53 }
 0xdc7   : > { %v3753_v33 = vmul.f32 %v7386_v28, %v7378_v61 }
 0xdc8   : > { %6849 = vmatmul.mubr.msk.bf16.vlgmr.msra.gmra.mrb[64].mxu0 %vm2184_vm5, %v3760_v30 }
 0xdc9   : > { %v3759_v34 = vpack.c.bf16 %v3753_v33, %v3753_v33  ;;  %6859 = vmatpush3.bf16.msra.mxu0 %v7317_v53 }
 0xdca   : > { %6860 = vmatprep.subr.bf16.mxu0 %v7318_v54 }
 0xdcb   : > { %6843 = vmatmul.mubr.msk.bf16.vlgmr.msra.gmra.mrb[68].mxu1 %vm2184_vm5, %v3759_v34 }
 0xdcc   : > { %6854 = vmatprep.mubr.msk.bf16.mxu1 %vm8344_vm0, %v8343_v0 }
 0xdcd   : > { %6861 = vmatpush3.bf16.msra.mxu0 %v7318_v54 }
 0xdf4   : > { %v3749_v14 = vpop.xlane.xlu1 %3748 }
 0xdf5   : > { %7387 = vrcp.f32 %v3749_v14 }
 0xdf8   : > { %v3907_v36 = vpop.permute.xlu1 %3906 }
 0xdf9   : > { %v3912_v43 = vsel %vm2428_vm6, %v3907_v36, 0 }
 0xdfa   : > { %6853 = vmatpush3.bf16.msra.mxu1 %v3912_v43 }
 0xdfc   : > { %v7288_v18 = vpop.permute.xlu1 %7287 }
 0xdfd   : > { %v7290_v27 = vunpack.i.h.bf16 %v7288_v18  ;;  %v7289_v24 = vunpack.i.l.bf16 %v7288_v18 }
 0xdff   : > { %v7388_v40 = vpop.eup %7387  ;;  %v4005_v33 = vsel %vm2184_vm5, %v9425_v51, %v7290_v27  ;;  %v4004_v34 = vsel %vm2184_vm5, %v9421_v31, %v7289_v24 }
 0xe00   : > { %v3757_v44 = vmul.f32 %v7388_v40, %v7380_v57  ;;  %v7284_v57 = vunpack.i.l.bf16 %v7283_v25  ;;  %v7298_v23 = vpop.permute.xlu1 %7297 }
 0xe01   : > { %v7300_v28 = vunpack.i.h.bf16 %v7298_v23 }
 0xe02   : > { %v3761_v29 = vpack.c.bf16 %v3757_v44, %v3757_v44  ;;  %v4002_v7 = vsel %vm2184_vm5, %v9417_v17, %v7284_v57  ;;  %v7299_v17 = vunpack.i.l.bf16 %v7298_v23 }
 0xe03   : > { %v4007_v16 = vsel %vm4006_vm7, %v4002_v7, %v7294_v26  ;;  %v4010_v40 = vsel %vm4006_vm7, %v4005_v33, %v7300_v28 }
 0xe04   : > { %6855 = vmatmul.mubr.msk.bf16.vlgmr.msra.gmra.mrb[72].mxu1 %vm2184_vm5, %v3761_v29  ;;  %v4009_v43 = vsel %vm4006_vm7, %v4004_v34, %v7299_v17 }
 0xe6b   : > { %v3804_v46 = vpop.f32.mrb[60].mxu0 }
 0xe6c   : > { %v6838_v47 = vpop.f32.mrb[61].mxu0 }
 0xe6d   : > { %v3807_v63 = vpop.f32.mrb[62].mxu0  ;;  %v6424_v47 = vld [vmem:[%s10171_s22] ss:$0 sm:$0xff] }
 0xe6e   : > { %v6839_v48 = vpop.f32.mrb[63].mxu0 }
 0xe9b   : > { %v3900_v5 = vpop.f32.mrb[64].mxu0 }
 0xe9c   : > { %v6850_v0 = vpop.f32.mrb[65].mxu0 }
 0xe9d   : > { %v3903_v6 = vpop.f32.mrb[66].mxu0 }
 0xe9e   : > { %v3852_v21 = vpop.f32.mrb[68].mxu1  ;;  %v6851_v49 = vpop.f32.mrb[67].mxu0 }
 0xe9f   : > { %v7301_v9 = vpack.i.bf16 %v3852_v21, %v3804_v46  ;;  %v6844_v13 = vpop.f32.mrb[69].mxu1 }
 0xea0   : > { %v3855_v12 = vpop.f32.mrb[70].mxu1 }
 0xea1   : > { %v6845_v22 = vpop.f32.mrb[71].mxu1  ;;  %7302 = vrot.lane.b32.xlu0 %v7301_v9, %s8351_s30 }
 0xed7   : > { %v3948_v52 = vpop.f32.mrb[72].mxu1 }
 0xed8   : > { %v7306_v55 = vpack.i.bf16 %v3948_v52, %v3900_v5  ;;  %v6856_v60 = vpop.f32.mrb[73].mxu1 }
 0xed9   : > { %v3951_v61 = vpop.f32.mrb[74].mxu1 }
 0xeda   : > { %v6857_v62 = vpop.f32.mrb[75].mxu1  ;;  %7307 = vrot.lane.b32.xlu1 %v7306_v55, %s8351_s30 }
 0xf13   : > { %v7303_v41 = vpop.permute.xlu0 %7302 }
 0xf14   : > { %v7305_v8 = vunpack.i.h.bf16 %v7303_v41  ;;  %v7304_v11 = vunpack.i.l.bf16 %v7303_v41 }
 0xf16   : > { %v4013_v59 = vsel %vm4011_vm8, %v4008_v45, %v7305_v8  ;;  %v4012_v38 = vsel %vm4011_vm8, %v4007_v16, %v7304_v11  ;;  %v7319_v45 = vld [vmem:[%s10172_s5] sm:$0xff]  }
 0xf17   : > { %v4020_v42 = vpack.c.bf16 %v4013_v59, %v4012_v38  ;;  %6866 = vmatprep.subr.bf16.mxu1 %v7319_v45  ;;  %v7320_v59 = vld [vmem:[%s10173_s1 + $0x8] sm:$0xff]  }
 0xf18   : > { %6867 = vmatpush3.bf16.msra.mxu1 %v7319_v45 }
 0xf19   : > { %6862 = vmatprep.mubr.msk.bf16.mxu0 %vm1976_vm4, %v4020_v42  ;;  %6868 = vmatprep.subr.bf16.mxu1 %v7320_v59 }
 0xf1c   : > { %6869 = vmatpush3.bf16.msra.mxu1 %v7320_v59 }
 0xf4c   : > { %v7308_v30 = vpop.permute.xlu1 %7307 }
 0xf4d   : > { %v7310_v14 = vunpack.i.h.bf16 %v7308_v30  ;;  %v7309_v36 = vunpack.i.l.bf16 %v7308_v30 }
 0xf4f   : > { %v4015_v44 = vsel %vm4011_vm8, %v4010_v40, %v7310_v14  ;;  %v4014_v29 = vsel %vm4011_vm8, %v4009_v43, %v7309_v36  ;;  %v6429_v43 = vld [vmem:[%s10174_s14] ss:$0 sm:$0xff] }
 0xf50   : > { %v4021_v46 = vpack.c.bf16 %v4015_v44, %v4014_v29 }
 0xf52   : > { %6863 = vmatmul.mubr.msk.bf16.vlgmr.msra.gmra.mrb[68].mxu0 %vm1976_vm4, %v4021_v46 }
0x1025   : > { %v6864_v63 = vpop.f32.mrb[68].mxu0 }
0x1026   : > { %v4081_v51 = vpop.f32.mrb[69].mxu0  ;;  %v4090_v48 = vadd.f32 %v6864_v63, %v6424_v47  ;;  %v6430_v63 = vld [vmem:[%s10175_s21] ss:$0 sm:$0xff] }
0x1027   : > { %v4082_v53 = vadd.f32 %v6424_v47, %v4081_v51  ;;  %v6865_v31 = vpop.f32.mrb[70].mxu0 }
0x1028   : > { %v4084_v5 = vpop.f32.mrb[71].mxu0  ;;  %v4093_v21 = vadd.f32 %v6865_v31, %v6424_v47  ;;  %v4098_v13 = vadd.f32 %v4090_v48, %v9262_v37 }
0x1029   : > { %v4085_v0 = vadd.f32 %v6424_v47, %v4084_v5  ;;  %v4096_v6 = vadd.f32 %v4082_v53, %v9255_v32 }
0x102a   : > { %v4108_v22 = vsel %vm1976_vm4, %v4098_v13, 0.0  ;;  %v4099_v54 = vadd.f32 %v4093_v21, %v9266_v39 }
0x102b   : > { %v4102_v49 = vsel %vm1976_vm4, %v4096_v6, 0.0  ;;  %v4097_v9 = vadd.f32 %v4085_v0, %v9259_v35 }
0x102c   : > { %4103 = vadd.xlane.f32.xlu0 %v4102_v49  ;;  %v4111_v52 = vsel %vm1976_vm4, %v4099_v54, 0.0 }
0x102d   : > { %v4105_v12 = vsel %vm1976_vm4, %v4097_v9, 0.0 }
0x102e   : > { %4106 = vadd.xlane.f32.xlu1 %v4105_v12 }
0x1030   : > { %4109 = vadd.xlane.f32.xlu0 %v4108_v22  ;;  %v7321_v22 = vld [vmem:[%s9212_s13] sm:$0xff]  }
0x1031   : > { %6874 = vmatprep.subr.bf16.mxu0 %v7321_v22 }
0x1032   : > { %6875 = vmatpush3.bf16.msra.mxu0 %v7321_v22 }
0x1034   : > { %4112 = vadd.xlane.f32.xlu0 %v4111_v52  ;;  %v7323_v52 = vld [vmem:[%s9212_s13 + $0x10] sm:$0xff]  }
0x10b9   : > { %v4104_v32 = vpop.xlane.xlu0 %4103 }
0x10ba   : > { %v4115_v55 = vmul.f32 0.03125, %v4104_v32  ;;  %v7324_v32 = vld [vmem:[%s9212_s13 + $0x18] sm:$0xff]  }
0x10bb   : > { %v4107_v60 = vpop.xlane.xlu1 %4106 }
0x10bc   : > { %v4119_v61 = vsub.f32 %v4096_v6, %v4115_v55  ;;  %v4116_v62 = vmul.f32 0.03125, %v4107_v60  ;;  %v6431_v55 = vld [vmem:[%s10176_s20] ss:$0 sm:$0xff] }
0x10bd   : > { %v4110_v35 = vpop.xlane.xlu0 %4109 }
0x10be   : > { %v4120_v25 = vsub.f32 %v4097_v9, %v4116_v62  ;;  %v4117_v37 = vmul.f32 0.03125, %v4110_v35  ;;  %v4123_v4 = vmul.f32 %v4119_v61, %v4119_v61 }
0x10c0   : > { %v4121_v50 = vsub.f32 %v4098_v13, %v4117_v37  ;;  %v4127_v57 = vsel %vm1976_vm4, %v4123_v4, 0.0  ;;  %v4124_v58 = vmul.f32 %v4120_v25, %v4120_v25 }
0x10c1   : > { %4128 = vadd.xlane.f32.xlu0 %v4127_v57  ;;  %v4113_v39 = vpop.xlane.xlu0 %4112 }
0x10c2   : > { %v4118_v26 = vmul.f32 0.03125, %v4113_v39  ;;  %v4130_v41 = vsel %vm1976_vm4, %v4124_v58, 0.0  ;;  %v4125_v56 = vmul.f32 %v4121_v50, %v4121_v50 }
0x10c3   : > { %4131 = vadd.xlane.f32.xlu1 %v4130_v41 }
0x10c4   : > { %v4122_v7 = vsub.f32 %v4099_v54, %v4118_v26  ;;  %v4133_v8 = vsel %vm1976_vm4, %v4125_v56, 0.0  ;;  %v7322_v54 = vld [vmem:[%s9212_s13 + $0x8] sm:$0xff]   ;;  %s10177_s13 = scalar_lea.vmem [#allocation15], %s9154_s25  ;;  %s10180_s25 = sld [smem:[#allocation82_spill]] }
0x10c5   : > { %4134 = vadd.xlane.f32.xlu0 %v4133_v8  ;;  %6876 = vmatprep.subr.bf16.mxu0 %v7322_v54 }
0x10c6   : > { %v4126_v11 = vmul.f32 %v4122_v7, %v4122_v7  ;;  %6877 = vmatpush3.bf16.msra.mxu0 %v7322_v54 }
0x10c7   : > { %6878 = vmatprep.subr.bf16.mxu0 %v7323_v52 }
0x10c8   : > { %v4136_v16 = vsel %vm1976_vm4, %v4126_v11, 0.0 }
0x10c9   : > { %4137 = vadd.xlane.f32.xlu1 %v4136_v16 }
0x10ca   : > { %6879 = vmatpush3.bf16.msra.mxu0 %v7323_v52  ;;  %p6445_p6 = scmp.ne.s32.totalorder %s10180_s25, 1 }
0x10cb   : > { %6880 = vmatprep.subr.bf16.mxu0 %v7324_v32  ;;  %s10181_s24 = sld [smem:[#allocation65_spill]] (!%p6445_p6)  ;;  %s10182_s4 = sld [smem:[#allocation66_spill]] (!%p6445_p6)  ;;  %vm8353_vm10 = vmmov (!%p6445_p6), 0   ;;  %vm4611_vm11 = vcmask (!%p6445_p6), 1041409   ;;  %vm4613_vm12 = vcmask (!%p6445_p6), 1042434   ;;  %vm4615_vm13 = vcmask (!%p6445_p6), 1043459  }
0x10cc   : > { %s10183_s7 = sld [smem:[#allocation69_spill]] (!%p6445_p6)  ;;  %vm4619_vm15 = vcmask (!%p6445_p6), 60416   ;;  %s8355_s8 = smov (!%p6445_p6), 112   ;;  %vm4952_vm0 = vcmask (!%p6445_p6), 11264   ;;  %vm4969_vm1 = vcmask (!%p6445_p6), 1040384   ;;  %vm5675_vm3 = vcmask (!%p6445_p6), 31744  }
0x10cd   : > { %s8356_s17 = smov (!%p6445_p6), 104   ;;  %s10185_s30 = sld [smem:[#allocation72_spill]] (!%p6445_p6) }
0x10ce   : > { %6881 = vmatpush3.bf16.msra.mxu0 %v7324_v32  ;;  %s10186_s15 = sld [smem:[#allocation74_spill]] (!%p6445_p6)  ;;  %s8357_s22 = smov (!%p6445_p6), 8  }
0x10cf   : > { %s8358_s1 = smov (!%p6445_p6), 16   ;;  %s8359_s14 = smov (!%p6445_p6), 24  }
0x10d0   : > { %s10188_s21 = sld [smem:[#allocation76_spill]] (!%p6445_p6)  ;;  %s10189_s20 = sld [smem:[#allocation77_spill]] (!%p6445_p6) }
0x10d2   : > { %s10184_s2 = smov (!%p6445_p6), %s10183_s7 }
0x10d4   : > { %s10187_s5 = smov (!%p6445_p6), %s10186_s15 }
0x114e   : > { %v4129_v38 = vpop.xlane.xlu0 %4128 }
0x114f   : > { %v4139_v42 = vmul.f32 0.03125, %v4129_v38 }
0x1150   : > { %v4132_v18 = vpop.xlane.xlu1 %4131 }
0x1151   : > { %v4143_v23 = vadd.f32 1e-05, %v4139_v42  ;;  %v4140_v27 = vmul.f32 0.03125, %v4132_v18 }
0x1152   : > { %v4135_v24 = vpop.xlane.xlu0 %4134 }
0x1153   : > { %7389 = vrsqrt.f32 %v4143_v23  ;;  %v4144_v28 = vadd.f32 1e-05, %v4140_v27  ;;  %v4141_v17 = vmul.f32 0.03125, %v4135_v24 }
0x1155   : > { %7391 = vrsqrt.f32 %v4144_v28  ;;  %v4145_v30 = vadd.f32 1e-05, %v4141_v17 }
0x1156   : > { %v4138_v33 = vpop.xlane.xlu1 %4137 }
0x1157   : > { %7393 = vrsqrt.f32 %v4145_v30  ;;  %v4142_v34 = vmul.f32 0.03125, %v4138_v33 }
0x1159   : > { %v4146_v14 = vadd.f32 1e-05, %v4142_v34  ;;  %v6436_v34 = vld [vmem:[%s10177_s13] ss:$0 sm:$0xff]  ;;  %s10190_s13 = sld [smem:[#allocation78_spill]] (!%p6445_p6) }
0x115b   : > { %7395 = vrsqrt.f32 %v4146_v14 }
0x115d   : > { %v7390_v36 = vpop.eup %7389 }
0x115e   : > { %v4151_v40 = vmul.f32 %v7390_v36, %v4119_v61 }
0x115f   : > { %v7392_v44 = vpop.eup %7391 }
0x1160   : > { %v4152_v29 = vmul.f32 %v7392_v44, %v4120_v25  ;;  %v4161_v46 = vmul.f32 %v6429_v43, %v4151_v40 }
0x1161   : > { %v7394_v47 = vpop.eup %7393 }
0x1162   : > { %v4153_v51 = vmul.f32 %v7394_v47, %v4121_v50  ;;  %v4162_v48 = vmul.f32 %v6429_v43, %v4152_v29  ;;  %v9672_v53 = vadd.f32 %v6430_v63, %v4161_v46 }
0x1164   : > { %v9674_v31 = vadd.f32 %v6430_v63, %v4162_v48  ;;  %v4163_v0 = vmul.f32 %v6429_v43, %v4153_v51 }
0x1165   : > { %v7396_v5 = vpop.eup %7395 }
0x1166   : > { %v4154_v6 = vmul.f32 %v7396_v5, %v4122_v7  ;;  %v4179_v21 = vpack.c.bf16 %v9674_v31, %v9672_v53  ;;  %v9679_v9 = vadd.f32 %v6430_v63, %v4163_v0 }
0x1168   : > { %v4164_v49 = vmul.f32 %v6429_v43, %v4154_v6  ;;  %6870 = vmatprep.mubr.msk.bf16.mxu1 %vm1976_vm4, %v4179_v21 }
0x116a   : > { %v9681_v13 = vadd.f32 %v6430_v63, %v4164_v49 }
0x116c   : > { %v4180_v12 = vpack.c.bf16 %v9681_v13, %v9679_v9 }
0x116e   : > { %6871 = vmatmul.mubr.msk.bf16.vlgmr.msra.gmra.mrb[76].mxu1 %vm1976_vm4, %v4180_v12 }
0x1241   : > { %v6872_v60 = vpop.f32.mrb[76].mxu1 }
0x1242   : > { %v4249_v61 = vadd.f32 %v6872_v60, %v6431_v55  ;;  %v4240_v62 = vpop.f32.mrb[77].mxu1 }
0x1243   : > { %v4241_v35 = vadd.f32 %v6431_v55, %v4240_v62  ;;  %v6873_v25 = vpop.f32.mrb[78].mxu1 }
0x1244   : > { %v4262_v37 = vmul.f32 0.70710677, %v4249_v61  ;;  %v4252_v4 = vadd.f32 %v6873_v25, %v6431_v55  ;;  %v4243_v50 = vpop.f32.mrb[79].mxu1  ;;  %v4257_v45 = vmul.f32 0.5, %v4249_v61 }
0x1245   : > { %v4260_v57 = vmul.f32 0.70710677, %v4241_v35  ;;  %v4244_v58 = vadd.f32 %v6431_v55, %v4243_v50  ;;  %v4255_v42 = vmul.f32 0.5, %v4241_v35 }
0x1246   : > { %7397 = verf.f32 %v4262_v37  ;;  %v4263_v39 = vmul.f32 0.70710677, %v4252_v4  ;;  %v4258_v59 = vmul.f32 0.5, %v4252_v4 }
0x1247   : > { %7399 = verf.f32 %v4260_v57  ;;  %v4261_v26 = vmul.f32 0.70710677, %v4244_v58  ;;  %v4256_v18 = vmul.f32 0.5, %v4244_v58 }
0x1248   : > { %7401 = verf.f32 %v4263_v39 }
0x1249   : > { %7403 = verf.f32 %v4261_v26 }
0x1250   : > { %v7398_v41 = vpop.eup %7397 }
0x1251   : > { %v7400_v56 = vpop.eup %7399  ;;  %v4270_v7 = vadd.f32 1.0, %v7398_v41 }
0x1252   : > { %v7402_v8 = vpop.eup %7401  ;;  %v4268_v11 = vadd.f32 1.0, %v7400_v56 }
0x1253   : > { %v7404_v16 = vpop.eup %7403  ;;  %v4271_v38 = vadd.f32 1.0, %v7402_v8  ;;  %v4274_v27 = vmul.f32 %v4270_v7, %v4257_v45 }
0x1254   : > { %v4269_v23 = vadd.f32 1.0, %v7404_v16  ;;  %v4272_v28 = vmul.f32 %v4268_v11, %v4255_v42 }
0x1255   : > { %v4275_v24 = vmul.f32 %v4271_v38, %v4258_v59 }
0x1256   : > { %v4273_v17 = vmul.f32 %v4269_v23, %v4256_v18  ;;  %v6443_v23 = vld [vmem:[%s10178_s12] ss:$0 sm:$0xff] }
0x1257   : > { %v4285_v30 = vpack.c.bf16 %v4275_v24, %v4274_v27 }
0x1258   : > { %v4284_v33 = vpack.c.bf16 %v4273_v17, %v4272_v28  ;;  %v6444_v28 = vld [vmem:[%s10179_s19] ss:$0 sm:$0xff] }
0x125a   : > { %6882 = vmatprep.mubr.msk.bf16.mxu0 %vm4317_vm9, %v4284_v33 }
0x125b   : > { %6883 = vmatmul.mubr.msk.bf16.vlgmr.msra.gmra.mrb[72].mxu0 %vm4317_vm9, %v4285_v30 }
0x132e   : > { %v6884_v14 = vpop.f32.mrb[72].mxu0 }
0x132f   : > { %v4358_v36 = vpop.f32.mrb[73].mxu0  ;;  %v4367_v43 = vadd.f32 %v6884_v14, %v6436_v34 }
0x1330   : > { %v4359_v40 = vadd.f32 %v6436_v34, %v4358_v36  ;;  %v6885_v44 = vpop.f32.mrb[74].mxu0 }
0x1331   : > { %v4361_v29 = vpop.f32.mrb[75].mxu0  ;;  %v4370_v46 = vadd.f32 %v6885_v44, %v6436_v34  ;;  %v4375_v5 = vadd.f32 %v4367_v43, %v9679_v9 }
0x1332   : > { %v4362_v47 = vadd.f32 %v6436_v34, %v4361_v29  ;;  %v4373_v63 = vadd.f32 %v4359_v40, %v9672_v53 }
0x1333   : > { %v4376_v6 = vadd.f32 %v4370_v46, %v9681_v13  ;;  %v4385_v21 = vsel %vm1976_vm4, %v4375_v5, 0.0 }
0x1334   : > { %v4379_v51 = vsel %vm1976_vm4, %v4373_v63, 0.0  ;;  %v4374_v48 = vadd.f32 %v4362_v47, %v9674_v31 }
0x1335   : > { %4380 = vadd.xlane.f32.xlu0 %v4379_v51  ;;  %v4388_v49 = vsel %vm1976_vm4, %v4376_v6, 0.0  ;;  %v7413_v51 = vld [vmem:[%s10181_s24] sm:$0xff] (!%p6445_p6)  }
0x1336   : > { %v4382_v0 = vsel %vm1976_vm4, %v4374_v48, 0.0 }
0x1337   : > { %4383 = vadd.xlane.f32.xlu1 %v4382_v0  ;;  %v9742_v0 = vpack.c.bf16 (!%p6445_p6), %v9221_v3, %v9221_v3 }
0x1339   : > { %4386 = vadd.xlane.f32.xlu0 %v4385_v21 }
0x133b   : > { %4389 = vadd.xlane.f32.xlu1 %v4388_v49 }
0x13c2   : > { %v4381_v12 = vpop.xlane.xlu0 %4380 }
0x13c3   : > { %v4391_v53 = vmul.f32 0.03125, %v4381_v12 }
0x13c4   : > { %v4384_v22 = vpop.xlane.xlu1 %4383 }
0x13c5   : > { %v4395_v54 = vsub.f32 %v4373_v63, %v4391_v53  ;;  %v4392_v52 = vmul.f32 0.03125, %v4384_v22 }
0x13c6   : > { %v4387_v31 = vpop.xlane.xlu0 %4386 }
0x13c7   : > { %v4396_v32 = vsub.f32 %v4374_v48, %v4392_v52  ;;  %v4393_v9 = vmul.f32 0.03125, %v4387_v31  ;;  %v4399_v55 = vmul.f32 %v4395_v54, %v4395_v54  ;;  %v8352_v48 = vmov (!%p6445_p6), 0.0  }
0x13c8   : > { %v4390_v60 = vpop.xlane.xlu1 %4389  ;;  %6886 = vmatprep.subr.bf16.mxu0 (!%p6445_p6), %v8352_v48  ;;  %6894 = vmatprep.subr.bf16.mxu1 (!%p6445_p6), %v8352_v48 }
0x13c9   : > { %v4397_v61 = vsub.f32 %v4375_v5, %v4393_v9  ;;  %v4394_v62 = vmul.f32 0.03125, %v4390_v60  ;;  %v4403_v13 = vsel %vm1976_vm4, %v4399_v55, 0.0  ;;  %v4400_v35 = vmul.f32 %v4396_v32, %v4396_v32  ;;  %6887 = vmatpush3.bf16.msra.mxu0 (!%p6445_p6), %v7413_v51  ;;  %v7414_v5 = vld [vmem:[%s10181_s24 + $0x8] sm:$0xff] (!%p6445_p6)   ;;  %6890 = vmatprep.mubr.msk.bf16.mxu0 (!%p6445_p6), %vm8353_vm10, %v8352_v48 }
0x13ca   : > { %4404 = vadd.xlane.f32.xlu0 %v4403_v13  ;;  %6888 = vmatprep.subr.bf16.mxu0 (!%p6445_p6), %v8352_v48 }
0x13cb   : > { %v4398_v25 = vsub.f32 %v4376_v6, %v4394_v62  ;;  %v4406_v37 = vsel %vm1976_vm4, %v4400_v35, 0.0  ;;  %v4401_v4 = vmul.f32 %v4397_v61, %v4397_v61  ;;  %6898 = vmatprep.mubr.msk.bf16.mxu1 (!%p6445_p6), %vm8353_vm10, %v8352_v48  ;;  %v6446_v6 = vld [vmem:[%s10182_s4] ss:$0 sm:$0xff] (!%p6445_p6) }
0x13cc   : > { %4407 = vadd.xlane.f32.xlu1 %v4406_v37 }
0x13cd   : > { %v4409_v50 = vsel %vm1976_vm4, %v4401_v4, 0.0  ;;  %v4402_v57 = vmul.f32 %v4398_v25, %v4398_v25  ;;  %6889 = vmatpush3.bf16.msra.mxu0 (!%p6445_p6), %v7414_v5 }
0x13ce   : > { %4410 = vadd.xlane.f32.xlu0 %v4409_v50  ;;  %6902 = vmatprep.subr.bf16.mxu0 (!%p6445_p6), %v8352_v48 }
0x13cf   : > { %v4412_v58 = vsel %vm1976_vm4, %v4402_v57, 0.0 }
0x13d0   : > { %4413 = vadd.xlane.f32.xlu1 %v4412_v58  ;;  %6891 = vmatmul.mubr.msk.bf16.vlgmr.msra.gmra.mrb[0].mxu0 (!%p6445_p6), %vm1976_vm4, %v9742_v0 }
0x13d1   : > { %6906 = vmatprep.mubr.msk.bf16.mxu0 (!%p6445_p6), %vm8353_vm10, %v8352_v48 }
0x1457   : > { %v4405_v39 = vpop.xlane.xlu0 %4404 }
0x1458   : > { %v4415_v26 = vmul.f32 0.03125, %v4405_v39  ;;  %v4594_v39 = vand.u32 (!%p6445_p6), 127, %v1906_v10 }
0x1459   : > { %v4408_v41 = vpop.xlane.xlu1 %4407 }
0x145a   : > { %v4419_v56 = vadd.f32 1e-05, %v4415_v26  ;;  %v4416_v7 = vmul.f32 0.03125, %v4408_v41  ;;  %v4597_v41 = vsub.s32 (!%p6445_p6), %v4594_v39, %v9234_v15 }
0x145b   : > { %v4411_v8 = vpop.xlane.xlu0 %4410 }
0x145c   : > { %7405 = vrsqrt.f32 %v4419_v56  ;;  %v4420_v11 = vadd.f32 1e-05, %v4416_v7  ;;  %v4417_v16 = vmul.f32 0.03125, %v4411_v8  ;;  %v4459_v8 = vld [vmem:[%s9143_s18] sm:$0xf] (!%p6445_p6)  ;;  %s8354_s18 = smov (!%p6445_p6), 120  }
0x145d   : > { %v4414_v45 = vpop.xlane.xlu1 %4413  ;;  %vm4588_vm14 = vcmp.gt.f32.partialorder (!%p6445_p6), %v4459_v8, 0.0 }
0x145e   : > { %7407 = vrsqrt.f32 %v4420_v11  ;;  %v4421_v59 = vadd.f32 1e-05, %v4417_v16  ;;  %v4418_v38 = vmul.f32 0.03125, %v4414_v45 }
0x1460   : > { %7409 = vrsqrt.f32 %v4421_v59  ;;  %v4422_v42 = vadd.f32 1e-05, %v4418_v38 }
0x1462   : > { %7411 = vrsqrt.f32 %v4422_v42 }
0x1466   : > { %v7406_v18 = vpop.eup %7405 }
0x1467   : > { %v4427_v27 = vmul.f32 %v7406_v18, %v4395_v54 }
0x1468   : > { %v7408_v24 = vpop.eup %7407 }
0x1469   : > { %v4437_v17 = vmul.f32 %v6443_v23, %v4427_v27  ;;  %v4428_v30 = vmul.f32 %v7408_v24, %v4396_v32 }
0x146a   : > { %v7410_v33 = vpop.eup %7409 }
0x146b   : > { %v9710_v34 = vadd.f32 %v6444_v28, %v4437_v17  ;;  %v4438_v14 = vmul.f32 %v6443_v23, %v4428_v30  ;;  %v4429_v36 = vmul.f32 %v7410_v33, %v4397_v61 }
0x146c   : > { %v7412_v43 = vpop.eup %7411 }
0x146d   : > { %4451 = vst.msk [vmem:[%s9223_s23] sm:$0xff] %vm1976_vm4, %v9710_v34  ;;  %v9715_v40 = vadd.f32 %v6444_v28, %v4438_v14  ;;  %v4439_v44 = vmul.f32 %v6443_v23, %v4429_v36  ;;  %v4430_v29 = vmul.f32 %v7412_v43, %v4398_v25  ;;  %4458 = sbr.rel (%p6445_p6) target bundleno = 8113 (0x1fb1), region = 264  ;;  %v7415_v36 = vld [vmem:[%s10183_s7] sm:$0xff] (!%p6445_p6)   ;;  %v4640_v43 = vsub.s32 (!%p6445_p6), 1, %v9234_v15 }
0x146e   : > { %6903 = vmatpush3.bf16.msra.mxu0 (!%p6445_p6), %v7415_v36 }
0x146f   : > { %4452 = vst.msk [vmem:[%s9223_s23 + $0x8] sm:$0xff] %vm1976_vm4, %v9715_v40  ;;  %v9720_v46 = vadd.f32 %v6444_v28, %v4439_v44  ;;  %v4440_v47 = vmul.f32 %v6443_v23, %v4430_v29  ;;  %6904 = vmatprep.subr.bf16.mxu0 (!%p6445_p6), %v8352_v48 }
0x1471   : > { %4453 = vst.msk [vmem:[%s9223_s23 + $0x10] sm:$0xff] %vm1976_vm4, %v9720_v46  ;;  %v9725_v63 = vadd.f32 %v6444_v28, %v4440_v47  ;;  %v7416_v47 = vld [vmem:[%s10184_s2 + $0x8] sm:$0xff] (!%p6445_p6)  }
0x1472   : > { %6905 = vmatpush3.bf16.msra.mxu0 (!%p6445_p6), %v7416_v47 }
0x1473   : > { %4454 = vst.msk [vmem:[%s9223_s23 + $0x18] sm:$0xff] %vm1976_vm4, %v9725_v63  ;;  %6918 = vmatprep.subr.bf16.mxu0 (!%p6445_p6), %v8352_v48 }
0x14a3   : > { %v4521_v21 = vpop.f32.mrb[0].mxu0 }
0x14a4   : > { %v4522_v49 = vadd.f32 %v6446_v6, %v4521_v21  ;;  %v6892_v12 = vpop.f32.mrb[1].mxu0  ;;  %v4647_v6 = vsub.s32 2, %v9234_v15  ;;  %v9779_v21 = vpack.c.bf16 %v9209_v1, %v9209_v1  ;;  %v7418_v1 = vld [vmem:[#allocation20 + $0x8] sm:$0xff]  }
0x14a5   : > { %v4524_v53 = vpop.f32.mrb[2].mxu0  ;;  %v4654_v12 = vsub.s32 3, %v9234_v15 }
0x14a6   : > { %v4534_v22 = vrot.slane %v4522_v49, %v9243_v20  ;;  %v6893_v54 = vpop.f32.mrb[3].mxu0  ;;  %6907 = vmatmul.mubr.msk.bf16.vlgmr.msra.gmra.mrb[4].mxu0 %vm1976_vm4, %v9779_v21  ;;  %v7417_v53 = vld [vmem:[#allocation20] sm:$0xff]  }
0x14a7   : > { %6920 = vmatprep.mubr.msk.bf16.mxu0 %vm8353_vm10, %v8352_v48  ;;  %6895 = vmatpush3.bf16.msra.mxu1 %v7417_v53 }
0x14a8   : > { %v4535_v52 = vcombine.high %v4534_v22, %v4534_v22  ;;  %v4542_v31 = vrot.slane %v4534_v22, %v9243_v20  ;;  %6896 = vmatprep.subr.bf16.mxu1 %v8352_v48 }
0x14aa   : > { %v4555_v32 = vrot.slane %v4542_v31, %v9240_v19  ;;  %v4550_v9 = vcombine.high %v4542_v31, %v4542_v31  ;;  %v4549_v55 = vrot.slane %v4535_v52, %v9243_v20 }
0x14ab   : > { %6897 = vmatpush3.bf16.msra.mxu1 %v7418_v1 }
0x14ac   : > { %v4572_v60 = vmul.f32 %v4555_v32, %v9710_v34  ;;  %v4563_v61 = vrot.slane %v4550_v9, %v9240_v19  ;;  %v4559_v62 = vrot.slane %v4549_v55, %v9240_v19  ;;  %v4551_v13 = vcombine.high %v4549_v55, %v4549_v55  ;;  %6910 = vmatprep.subr.bf16.mxu1 %v8352_v48 }
0x14ae   : > { %v4576_v35 = vsel %vm1976_vm4, %v4572_v60, 0.0  ;;  %v4574_v25 = vmul.f32 %v4563_v61, %v9720_v46  ;;  %v4573_v37 = vmul.f32 %v4559_v62, %v9715_v40  ;;  %v4567_v4 = vrot.slane %v4551_v13, %v9240_v19 }
0x14af   : > { %4577 = vadd.xlane.f32.xlu0 %v4576_v35 }
0x14b0   : > { %v4582_v50 = vsel %vm1976_vm4, %v4574_v25, 0.0  ;;  %v4575_v20 = vmul.f32 %v4567_v4, %v9725_v63  ;;  %v4579_v57 = vsel %vm1976_vm4, %v4573_v37, 0.0 }
0x14b1   : > { %4583 = vadd.xlane.f32.xlu1 %v4582_v50 }
0x14b2   : > { %v4585_v58 = vsel %vm1976_vm4, %v4575_v20, 0.0 }
0x14b3   : > { %4580 = vadd.xlane.f32.xlu0 %v4579_v57 }
0x14b5   : > { %4586 = vadd.xlane.f32.xlu1 %v4585_v58 }
0x153c   : > { %v4578_v26 = vpop.xlane.xlu0 %4577 }
0x153d   : > { %v4598_v11 = vrot.slane %v4578_v26, %v4597_v41 }
0x153e   : > { %v4584_v56 = vpop.xlane.xlu1 %4583 }
0x153f   : > { %v4606_v45 = vrot.slane %v4584_v56, %v4597_v41 }
0x1540   : > { %v4581_v7 = vpop.xlane.xlu0 %4580 }
0x1541   : > { %v4602_v16 = vrot.slane %v4581_v7, %v4597_v41 }
0x1542   : > { %v4587_v59 = vpop.xlane.xlu1 %4586 }
0x1543   : > { %v4612_v38 = vsel %vm4611_vm11, %v4602_v16, %v4598_v11  ;;  %v4610_v42 = vrot.slane %v4587_v59, %v4597_v41 }
0x1544   : > { %v4614_v10 = vsel %vm4613_vm12, %v4606_v45, %v4612_v38 }
0x1545   : > { %v4616_v18 = vsel %vm4615_vm13, %v4610_v42, %v4614_v10 }
0x1546   : > { %v4618_v23 = vsel %vm4588_vm14, %v4616_v18, -1e+30 }
0x1547   : > { %v4620_v27 = vsel %vm4619_vm15, %v4618_v23, -inf }
0x1548   : > { %4621 = vmax.xlane.f32.xlu0 %v4620_v27 }
0x15d5   : > { %v4622_v24 = vpop.xlane.xlu0 %4621 }
0x15d6   : > { %v4623_v28 = vsub.f32 %v4618_v23, %v4622_v24 }
0x15d8   : > { %v4624_v17 = vmul.f32 1.442695, %v4623_v28 }
0x15da   : > { %7429 = vpow2.f32 %v4624_v17 }
0x15e4   : > { %v7430_v30 = vpop.eup %7429 }
0x15e5   : > { %v4626_v33 = vsel %vm4619_vm15, %v7430_v30, 0.0 }
0x15e6   : > { %4627 = vadd.xlane.f32.xlu1 %v4626_v33 }
0x1673   : > { %v4628_v14 = vpop.xlane.xlu1 %4627 }
0x1674   : > { %7431 = vrcp.f32 %v4628_v14 }
0x167e   : > { %v7432_v44 = vpop.eup %7431 }
0x167f   : > { %v4630_v29 = vmul.f32 %v7432_v44, %v7430_v30  ;;  %v6454_v44 = vld [vmem:[#allocation23] ss:$0 sm:$0xff] }
0x1681   : > { %v4641_v51 = vrot.slane %v4630_v29, %v4640_v43  ;;  %v4634_v5 = vrot.slane %v4630_v29, %v9240_v19  ;;  %v4648_v49 = vrot.slane %v4630_v29, %v4647_v6  ;;  %v4655_v19 = vrot.slane %v4630_v29, %v4654_v12  ;;  %v4834_v29 = vpop.f32.mrb[4].mxu0 }
0x1682   : > { %v4835_v47 = vadd.f32 %v6454_v44, %v4834_v29 }
0x1683   : > { %4643 = vbcast.lane.b32.xlu1 %v4641_v51, 256  ;;  %4636 = vbcast.lane.b32.xlu0 %v4634_v5, 256  ;;  %v6908_v51 = vpop.f32.mrb[5].mxu0 }
0x1684   : > { %v4837_v5 = vpop.f32.mrb[6].mxu0  ;;  %v4904_v6 = vpack.c.bf16 %v4835_v47, %v4835_v47 }
0x1686   : > { %v4909_v12 = vsel %vm2184_vm5, %v4904_v6, 0 }
0x1687   : > { %4650 = vbcast.lane.b32.xlu1 %v4648_v49, 256  ;;  %v6909_v49 = vpop.f32.mrb[7].mxu0  ;;  %5017 = vrot.lane.b32.xlu0 %v4904_v6, %s8354_s18 }
0x1688   : > { %6919 = vmatpush3.bf16.xpose.msra.mxu0 %v4909_v12 }
0x1689   : > { %6930 = vmatprep.subr.bf16.mxu0 %v8352_v48 }
0x168b   : > { %4657 = vbcast.lane.b32.xlu1 %v4655_v19, 256  ;;  %5129 = vrot.lane.b32.xlu0 %v4904_v6, %s8355_s8  ;;  %v6450_v19 = vld [vmem:[#allocation21] ss:$0 sm:$0xff] }
0x168f   : > { %5240 = vrot.lane.b32.xlu0 %v4904_v6, %s8356_s17 }
0x16f5   : > { %v4644_v22 = vpop.permute.xlu1 %4643  ;;  %v4637_v54 = vpop.permute.xlu0 %4636 }
0x16f6   : > { %v4660_v52 = vmul.f32 %v4644_v22, %v9715_v40  ;;  %v4659_v15 = vmul.f32 %v4637_v54, %v9710_v34 }
0x16f8   : > { %v4670_v31 = vsel %vm1976_vm4, %v4660_v52, 0.0  ;;  %v4663_v32 = vsel %vm1976_vm4, %v4659_v15, 0.0 }
0x16f9   : > { %v4671_v9 = vrot.slane %v4670_v31, 4  ;;  %v4664_v55 = vrot.slane %v4663_v32, 4  ;;  %v4651_v60 = vpop.permute.xlu1 %4650  ;;  %v5018_v52 = vpop.permute.xlu0 %5017 }
0x16fa   : > { %v4661_v61 = vmul.f32 %v4651_v60, %v9720_v46 }
0x16fb   : > { %v4672_v62 = vadd.f32 %v4671_v9, %v4670_v31  ;;  %v4665_v13 = vadd.f32 %v4664_v55, %v4663_v32  ;;  %v5023_v32 = vsel %vm2184_vm5, %v5018_v52, 0  ;;  %v7419_v9 = vld [vmem:[#allocation24] sm:$0xff]   ;;  %v7420_v55 = vld [vmem:[#allocation24 + $0x8] sm:$0xff]  }
0x16fc   : > { %v4677_v35 = vsel %vm1976_vm4, %v4661_v61, 0.0 }
0x16fd   : > { %v4673_v25 = vrot.slane %v4672_v62, 2  ;;  %v4666_v37 = vrot.slane %v4665_v13, 2  ;;  %v4678_v4 = vrot.slane %v4677_v35, 4  ;;  %v4658_v50 = vpop.permute.xlu1 %4657  ;;  %v5130_v60 = vpop.permute.xlu0 %5129 }
0x16fe   : > { %v4662_v40 = vmul.f32 %v4658_v50, %v9725_v63 }
0x16ff   : > { %v4674_v34 = vadd.f32 %v4673_v25, %v4672_v62  ;;  %v4667_v20 = vadd.f32 %v4666_v37, %v4665_v13  ;;  %v4679_v57 = vadd.f32 %v4678_v4, %v4677_v35  ;;  %v5135_v62 = vsel %vm2184_vm5, %v5130_v60, 0 }
0x1700   : > { %v4684_v58 = vsel %vm1976_vm4, %v4662_v40, 0.0 }
0x1701   : > { %v4675_v39 = vrot.slane %v4674_v34, 1  ;;  %v4668_v26 = vrot.slane %v4667_v20, 1  ;;  %v4680_v41 = vrot.slane %v4679_v57, 2  ;;  %v4685_v56 = vrot.slane %v4684_v58, 4  ;;  %v5241_v13 = vpop.permute.xlu0 %5240 }
0x1702   : > { %v5246_v25 = vsel %vm2184_vm5, %v5241_v13, 0 }
0x1703   : > { %v4676_v46 = vadd.f32 %v4675_v39, %v4674_v34  ;;  %v4669_v7 = vadd.f32 %v4668_v26, %v4667_v20  ;;  %v4681_v8 = vadd.f32 %v4680_v41, %v4679_v57  ;;  %v4686_v11 = vadd.f32 %v4685_v56, %v4684_v58 }
0x1705   : > { %v4682_v16 = vrot.slane %v4681_v8, 1  ;;  %v4687_v45 = vrot.slane %v4686_v11, 2  ;;  %v4696_v59 = vpack.c.bf16 %v4676_v46, %v4676_v46  ;;  %v4695_v38 = vpack.c.bf16 %v4669_v7, %v4669_v7 }
0x1707   : > { %v4683_v42 = vadd.f32 %v4682_v16, %v4681_v8  ;;  %v4688_v10 = vadd.f32 %v4687_v45, %v4686_v11  ;;  %v4711_v23 = vunpack.c.l.b16 %v4696_v59  ;;  %v4710_v27 = vunpack.c.l.b16 %v4695_v38 }
0x1709   : > { %v4697_v63 = vpack.c.bf16 %v4683_v42, %v4683_v42  ;;  %v4689_v18 = vrot.slane %v4688_v10, 1  ;;  %v4714_v33 = vsel %vm4611_vm11, %v4711_v23, %v4710_v27 }
0x170b   : > { %v4690_v24 = vadd.f32 %v4689_v18, %v4688_v10  ;;  %v4712_v28 = vunpack.c.l.b16 %v4697_v63 }
0x170d   : > { %v4698_v17 = vpack.c.bf16 %v4690_v24, %v4690_v24  ;;  %v4715_v14 = vsel %vm4613_vm12, %v4712_v28, %v4714_v33  ;;  %v6458_v28 = vld [vmem:[#allocation26] ss:$0 sm:$0xff] }
0x170f   : > { %v4713_v30 = vunpack.c.l.b16 %v4698_v17 }
0x1711   : > { %v4716_v36 = vsel %vm4615_vm13, %v4713_v30, %v4715_v14 }
0x1712   : > { %v9800_v43 = vpack.c.b16 %v4716_v36, %v4716_v36 }
0x1714   : > { %6899 = vmatmul.mubr.msk.bf16.vlgmr.msra.gmra.mrb[0].mxu1 %vm1976_vm4, %v9800_v43 }
0x1715   : > { %6914 = vmatprep.mubr.msk.bf16.mxu1 %vm8353_vm10, %v8352_v48  ;;  %6911 = vmatpush3.bf16.msra.mxu1 %v7419_v9 }
0x1716   : > { %6912 = vmatprep.subr.bf16.mxu1 %v8352_v48 }
0x1719   : > { %6913 = vmatpush3.bf16.msra.mxu1 %v7420_v55 }
0x171a   : > { %6924 = vmatprep.subr.bf16.mxu1 %v8352_v48 }
0x171c   : > { %6915 = vmatmul.mubr.msk.bf16.vlgmr.msra.gmra.mrb[4].mxu1 %vm1976_vm4, %v9779_v21 }
0x171d   : > { %6926 = vmatprep.mubr.msk.bf16.mxu1 %vm8353_vm10, %v8352_v48 }
0x17e7   : > { %v4767_v53 = vpop.f32.mrb[0].mxu1 }
0x17e8   : > { %v4768_v1 = vadd.f32 %v6450_v19, %v4767_v53  ;;  %v6900_v22 = vpop.f32.mrb[1].mxu1 }
0x17e9   : > { %v4770_v54 = vpop.f32.mrb[2].mxu1 }
0x17ea   : > { %v4903_v15 = vpack.c.bf16 %v4768_v1, %v4768_v1  ;;  %v6901_v31 = vpop.f32.mrb[3].mxu1 }
0x17ec   : > { %5014 = vrot.lane.b32.xlu1 %v4903_v15, %s8354_s18  ;;  %6921 = vmatmul.mubr.msk.bf16.vlgmr.msra.gmra.mrb[8].mxu0 %vm2184_vm5, %v4903_v15 }
0x17ed   : > { %6931 = vmatpush3.bf16.xpose.msra.mxu0 %v5023_v32  ;;  %6932 = vmatprep.mubr.msk.bf16.mxu0 %vm8353_vm10, %v8352_v48 }
0x17ee   : > { %6942 = vmatprep.subr.bf16.mxu0 %v8352_v48 }
0x17ef   : > { %v4897_v17 = vpop.f32.mrb[4].mxu1 }
0x17f0   : > { %5127 = vrot.lane.b32.xlu1 %v4903_v15, %s8355_s8  ;;  %v6916_v30 = vpop.f32.mrb[5].mxu1  ;;  %v4898_v33 = vadd.f32 %v6458_v28, %v4897_v17  ;;  %v7422_v17 = vld [vmem:[%s10185_s30 + $0x8] sm:$0xff]  }
0x17f1   : > { %v4900_v14 = vpop.f32.mrb[6].mxu1  ;;  %v7423_v30 = vld [vmem:[%s10186_s15] sm:$0xff]  }
0x17f2   : > { %v6917_v44 = vpop.f32.mrb[7].mxu1  ;;  %v4965_v47 = vpack.c.bf16 %v4898_v33, %v4898_v33  ;;  %v7425_v33 = vld [vmem:[%s10187_s5 + $0x8] sm:$0xff]   ;;  %v7427_v14 = vld [vmem:[#allocation30] sm:$0xff]  }
0x17f4   : > { %5238 = vrot.lane.b32.xlu1 %v4903_v15, %s8356_s17  ;;  %v4971_v51 = vsel %vm4969_vm1, %v4965_v47, 0 }
0x17f5   : > { %6925 = vmatpush3.bf16.msra.mxu1 %v4971_v51 }
0x17f6   : > { %6936 = vmatprep.subr.bf16.mxu1 %v8352_v48 }
0x185e   : > { %v5015_v61 = vpop.permute.xlu1 %5014 }
0x185f   : > { %6933 = vmatmul.mubr.msk.bf16.vlgmr.msra.gmra.mrb[12].mxu0 %vm2184_vm5, %v5015_v61 }
0x1860   : > { %6943 = vmatpush3.bf16.xpose.msra.mxu0 %v5135_v62  ;;  %6944 = vmatprep.mubr.msk.bf16.mxu0 %vm8353_vm10, %v8352_v48 }
0x1861   : > { %6954 = vmatprep.subr.bf16.mxu0 %v8352_v48 }
0x1862   : > { %v5128_v35 = vpop.permute.xlu1 %5127 }
0x1866   : > { %v5239_v21 = vpop.permute.xlu1 %5238 }
0x1867   : > { %6945 = vmatmul.mubr.msk.bf16.vlgmr.msra.gmra.mrb[16].mxu0 %vm2184_vm5, %v5128_v35 }
0x1868   : > { %6955 = vmatpush3.bf16.xpose.msra.mxu0 %v5246_v25  ;;  %6956 = vmatprep.mubr.msk.bf16.mxu0 %vm8353_vm10, %v8352_v48 }
0x1869   : > { %6966 = vmatprep.subr.bf16.mxu0 %v8352_v48 }
0x186f   : > { %6957 = vmatmul.mubr.msk.bf16.vlgmr.msra.gmra.mrb[20].mxu0 %vm2184_vm5, %v5239_v21 }
0x1870   : > { %6970 = vmatprep.mubr.msk.bf16.mxu0 %vm8353_vm10, %v8352_v48 }
0x18bf   : > { %v4945_v37 = vpop.f32.mrb[8].mxu0 }
0x18c0   : > { %v4951_v4 = vmul.f32 0.35355338, %v4945_v37  ;;  %v6922_v50 = vpop.f32.mrb[9].mxu0 }
0x18c1   : > { %v4948_v40 = vpop.f32.mrb[10].mxu0 }
0x18c2   : > { %v6923_v34 = vpop.f32.mrb[11].mxu0  ;;  %v4953_v20 = vsel %vm4952_vm0, %v4951_v4, -inf }
0x18c3   : > { %4954 = vmax.xlane.f32.xlu0 %v4953_v20 }
0x1932   : > { %v5059_v57 = vpop.f32.mrb[12].mxu0 }
0x1933   : > { %v5065_v58 = vmul.f32 0.35355338, %v5059_v57  ;;  %v6934_v39 = vpop.f32.mrb[13].mxu0 }
0x1934   : > { %v5062_v26 = vpop.f32.mrb[14].mxu0 }
0x1935   : > { %v6935_v41 = vpop.f32.mrb[15].mxu0  ;;  %v5066_v56 = vsel %vm4952_vm0, %v5065_v58, -inf }
0x1936   : > { %5067 = vmax.xlane.f32.xlu1 %v5066_v56 }
0x193a   : > { %v5171_v46 = vpop.f32.mrb[16].mxu0 }
0x193b   : > { %v5177_v7 = vmul.f32 0.35355338, %v5171_v46  ;;  %v6946_v8 = vpop.f32.mrb[17].mxu0 }
0x193c   : > { %v5174_v11 = vpop.f32.mrb[18].mxu0 }
0x193d   : > { %v6947_v16 = vpop.f32.mrb[19].mxu0  ;;  %v5178_v45 = vsel %vm4952_vm0, %v5177_v7, -inf }
0x193e   : > { %5179 = vmax.xlane.f32.xlu0 %v5178_v45 }
0x1942   : > { %v5282_v59 = vpop.f32.mrb[20].mxu0 }
0x1943   : > { %v5288_v38 = vmul.f32 0.35355338, %v5282_v59  ;;  %v6958_v42 = vpop.f32.mrb[21].mxu0 }
0x1944   : > { %v5285_v10 = vpop.f32.mrb[22].mxu0 }
0x1945   : > { %v6959_v63 = vpop.f32.mrb[23].mxu0  ;;  %v5289_v18 = vsel %vm4952_vm0, %v5288_v38, -inf }
0x1946   : > { %5290 = vmax.xlane.f32.xlu0 %v5289_v18 }
0x1950   : > { %v4955_v23 = vpop.xlane.xlu0 %4954 }
0x1951   : > { %v4956_v27 = vsub.f32 %v4951_v4, %v4955_v23 }
0x1953   : > { %v4957_v24 = vmul.f32 1.442695, %v4956_v27 }
0x1955   : > { %7433 = vpow2.f32 %v4957_v24 }
0x195f   : > { %v7434_v36 = vpop.eup %7433 }
0x1960   : > { %v4959_v29 = vsel %vm4952_vm0, %v7434_v36, 0.0 }
0x1961   : > { %4960 = vadd.xlane.f32.xlu0 %v4959_v29 }
0x19c3   : > { %v5068_v5 = vpop.xlane.xlu1 %5067 }
0x19c4   : > { %v5069_v6 = vsub.f32 %v5065_v58, %v5068_v5 }
0x19c6   : > { %v5070_v49 = vmul.f32 1.442695, %v5069_v6 }
0x19c8   : > { %7435 = vpow2.f32 %v5070_v49 }
0x19cb   : > { %v5180_v12 = vpop.xlane.xlu0 %5179 }
0x19cc   : > { %v5181_v19 = vsub.f32 %v5177_v7, %v5180_v12 }
0x19ce   : > { %v5182_v53 = vmul.f32 1.442695, %v5181_v19  ;;  %v7424_v19 = vld [vmem:[#allocation29] sm:$0xff]  }
0x19d0   : > { %7437 = vpow2.f32 %v5182_v53 }
0x19d2   : > { %v7436_v1 = vpop.eup %7435 }
0x19d3   : > { %v5072_v22 = vsel %vm4952_vm0, %v7436_v1, 0.0  ;;  %v5291_v15 = vpop.xlane.xlu0 %5290 }
0x19d4   : > { %5073 = vadd.xlane.f32.xlu1 %v5072_v22  ;;  %v5292_v32 = vsub.f32 %v5288_v38, %v5291_v15  ;;  %v7421_v38 = vld [vmem:[%s10185_s30] sm:$0xff]  }
0x19d5   : > { %6967 = vmatpush3.bf16.msra.mxu0 %v7421_v38  ;;  %v7428_v22 = vld [vmem:[#allocation30 + $0x8] sm:$0xff]  }
0x19d6   : > { %v5293_v9 = vmul.f32 1.442695, %v5292_v32  ;;  %6968 = vmatprep.subr.bf16.mxu0 %v8352_v48  ;;  %v6470_v32 = vld [vmem:[#allocation27] ss:$0 sm:$0xff] }
0x19d9   : > { %6969 = vmatpush3.bf16.msra.mxu0 %v7422_v17 }
0x19da   : > { %v7438_v54 = vpop.eup %7437  ;;  %6982 = vmatprep.subr.bf16.mxu0 %v8352_v48 }
0x19db   : > { %v5184_v52 = vsel %vm4952_vm0, %v7438_v54, 0.0 }
0x19dc   : > { %5185 = vadd.xlane.f32.xlu0 %v5184_v52 }
0x19e5   : > { %5190 = vrot.lane.b32.xlu1 %v4965_v47, %s8355_s8 }
0x19ee   : > { %v4961_v31 = vpop.xlane.xlu0 %4960 }
0x19ef   : > { %7439 = vrcp.f32 %v4961_v31 }
0x19f0   : > { %7441 = vpow2.f32 %v5293_v9 }
0x19f2   : > { %5079 = vrot.lane.b32.xlu0 %v4965_v47, %s8354_s18 }
0x19f9   : > { %v7440_v55 = vpop.eup %7439 }
0x19fa   : > { %v4963_v60 = vmul.f32 %v7440_v55, %v7434_v36  ;;  %v7442_v62 = vpop.eup %7441 }
0x19fb   : > { %v5295_v13 = vsel %vm4952_vm0, %v7442_v62, 0.0 }
0x19fc   : > { %v4964_v61 = vpack.c.bf16 %v4963_v60, %v4963_v60 }
0x19fe   : > { %6927 = vmatmul.mubr.msk.bf16.vlgmr.msra.gmra.mrb[8].mxu1 %vm1807_vm2, %v4964_v61 }
0x19ff   : > { %6938 = vmatprep.mubr.msk.bf16.mxu1 %vm8353_vm10, %v8352_v48 }
0x1a09   : > { %5296 = vadd.xlane.f32.xlu1 %v5295_v13 }
0x1a1a   : > { %5301 = vrot.lane.b32.xlu1 %v4965_v47, %s8356_s17 }
0x1a61   : > { %v5074_v35 = vpop.xlane.xlu1 %5073 }
0x1a62   : > { %7443 = vrcp.f32 %v5074_v35 }
0x1a65   : > { %v5191_v40 = vpop.permute.xlu1 %5190 }
0x1a66   : > { %v5196_v20 = vsel %vm4969_vm1, %v5191_v40, 0 }
0x1a69   : > { %v5186_v25 = vpop.xlane.xlu0 %5185 }
0x1a6a   : > { %7445 = vrcp.f32 %v5186_v25 }
0x1a6c   : > { %v7444_v21 = vpop.eup %7443 }
0x1a6d   : > { %v5080_v37 = vpop.permute.xlu0 %5079  ;;  %v5076_v4 = vmul.f32 %v7444_v21, %v7436_v1  ;;  %v7426_v1 = vld [vmem:[#allocation29 + $0x8] sm:$0xff]  }
0x1a6e   : > { %v5085_v50 = vsel %vm4969_vm1, %v5080_v37, 0 }
0x1a6f   : > { %6937 = vmatpush3.bf16.msra.mxu1 %v5085_v50  ;;  %v5077_v34 = vpack.c.bf16 %v5076_v4, %v5076_v4  ;;  %v6483_v4 = vld [vmem:[%s10188_s21] ss:$0 sm:$0xff] }
0x1a70   : > { %6948 = vmatprep.subr.bf16.mxu1 %v8352_v48 }
0x1a72   : > { %6939 = vmatmul.mubr.msk.bf16.vlgmr.msra.gmra.mrb[12].mxu1 %vm1807_vm2, %v5077_v34 }
0x1a73   : > { %6949 = vmatpush3.bf16.msra.mxu1 %v5196_v20  ;;  %6950 = vmatprep.mubr.msk.bf16.mxu1 %vm8353_vm10, %v8352_v48 }
0x1a74   : > { %v7446_v57 = vpop.eup %7445  ;;  %6960 = vmatprep.subr.bf16.mxu1 %v8352_v48 }
0x1a75   : > { %v5188_v58 = vmul.f32 %v7446_v57, %v7438_v54 }
0x1a77   : > { %v5189_v39 = vpack.c.bf16 %v5188_v58, %v5188_v58 }
0x1a7a   : > { %6951 = vmatmul.mubr.msk.bf16.vlgmr.msra.gmra.mrb[16].mxu1 %vm1807_vm2, %v5189_v39 }
0x1a7b   : > { %6962 = vmatprep.mubr.msk.bf16.mxu1 %vm8353_vm10, %v8352_v48 }
0x1a96   : > { %v5297_v26 = vpop.xlane.xlu1 %5296 }
0x1a97   : > { %7447 = vrcp.f32 %v5297_v26 }
0x1a9a   : > { %v5302_v41 = vpop.permute.xlu1 %5301 }
0x1a9b   : > { %v5307_v56 = vsel %vm4969_vm1, %v5302_v41, 0 }
0x1a9c   : > { %6961 = vmatpush3.bf16.msra.mxu1 %v5307_v56 }
0x1a9d   : > { %6974 = vmatprep.subr.bf16.mxu1 %v8352_v48 }
0x1aa1   : > { %v7448_v46 = vpop.eup %7447 }
0x1aa2   : > { %v5299_v7 = vmul.f32 %v7448_v46, %v7442_v62 }
0x1aa4   : > { %v5300_v8 = vpack.c.bf16 %v5299_v7, %v5299_v7 }
0x1aa6   : > { %6963 = vmatmul.mubr.msk.bf16.vlgmr.msra.gmra.mrb[20].mxu1 %vm1807_vm2, %v5300_v8  ;;  %vm5615_vm2 = vcmask 257024  }
0x1aa7   : > { %6978 = vmatprep.mubr.msk.bf16.mxu1 %vm8353_vm10, %v8352_v48  ;;  %6975 = vmatpush3.bf16.msra.mxu1 %v7423_v30 }
0x1aa8   : > { %6976 = vmatprep.subr.bf16.mxu1 %v8352_v48 }
0x1aab   : > { %6977 = vmatpush3.bf16.msra.mxu1 %v7425_v33 }
0x1aac   : > { %6990 = vmatprep.subr.bf16.mxu1 %v8352_v48 }
0x1aae   : > { %6979 = vmatmul.mubr.msk.bf16.vlgmr.msra.gmra.mrb[24].mxu1 %vm1976_vm4, %v9742_v0 }
0x1aaf   : > { %6991 = vmatpush3.bf16.msra.mxu1 %v7427_v14  ;;  %6994 = vmatprep.mubr.msk.bf16.mxu1 %vm8353_vm10, %v8352_v48 }
0x1ab0   : > { %6992 = vmatprep.subr.bf16.mxu1 %v8352_v48 }
0x1ab3   : > { %6993 = vmatpush3.bf16.msra.mxu1 %v7428_v22 }
0x1ad1   : > { %v5007_v11 = vpop.f32.mrb[8].mxu1 }
0x1ad2   : > { %v6928_v16 = vpop.f32.mrb[9].mxu1 }
0x1ad3   : > { %v5010_v45 = vpop.f32.mrb[10].mxu1 }
0x1ad4   : > { %v6929_v59 = vpop.f32.mrb[11].mxu1 }
0x1ad5   : > { %v6484_v59 = vld [vmem:[%s10189_s20] ss:$0 sm:$0xff] }
0x1b45   : > { %v5121_v42 = vpop.f32.mrb[12].mxu1 }
0x1b46   : > { %5350 = vrot.lane.b32.xlu1 %v5121_v42, %s8357_s22  ;;  %v6940_v10 = vpop.f32.mrb[13].mxu1 }
0x1b47   : > { %v5124_v63 = vpop.f32.mrb[14].mxu1 }
0x1b48   : > { %v6941_v18 = vpop.f32.mrb[15].mxu1 }
0x1b4d   : > { %v5232_v23 = vpop.f32.mrb[16].mxu1 }
0x1b4e   : > { %5354 = vrot.lane.b32.xlu0 %v5232_v23, %s8358_s1  ;;  %v6952_v27 = vpop.f32.mrb[17].mxu1 }
0x1b4f   : > { %v5235_v24 = vpop.f32.mrb[18].mxu1 }
0x1b50   : > { %v6953_v28 = vpop.f32.mrb[19].mxu1 }
0x1b79   : > { %v5343_v36 = vpop.f32.mrb[20].mxu1 }
0x1b7a   : > { %5358 = vrot.lane.b32.xlu1 %v5343_v36, %s8359_s14  ;;  %v6964_v44 = vpop.f32.mrb[21].mxu1 }
0x1b7b   : > { %v5346_v29 = vpop.f32.mrb[22].mxu1 }
0x1b7c   : > { %v6965_v47 = vpop.f32.mrb[23].mxu1 }
0x1b81   : > { %v5485_v54 = vpop.f32.mrb[24].mxu1 }
0x1b82   : > { %v6980_v52 = vpop.f32.mrb[25].mxu1 }
0x1b83   : > { %v5488_v15 = vpop.f32.mrb[26].mxu1 }
0x1b84   : > { %v6981_v31 = vpop.f32.mrb[27].mxu1 }
0x1bb8   : > { %v5351_v51 = vpop.permute.xlu1 %5350 }
0x1bb9   : > { %v5361_v6 = vsel %vm2184_vm5, %v5007_v11, %v5351_v51 }
0x1bc0   : > { %v5355_v5 = vpop.permute.xlu0 %5354 }
0x1bc1   : > { %v5362_v49 = vsel %vm4006_vm7, %v5361_v6, %v5355_v5 }
0x1bec   : > { %v5359_v12 = vpop.permute.xlu1 %5358 }
0x1bed   : > { %v5363_v0 = vsel %vm4011_vm8, %v5362_v49, %v5359_v12 }
0x1bee   : > { %v5368_v53 = vpack.c.bf16 %v5363_v0, %v5363_v0 }
0x1bf0   : > { %6971 = vmatmul.mubr.msk.bf16.vlgmr.msra.gmra.mrb[24].mxu0 %vm1976_vm4, %v5368_v53 }
0x1bf1   : > { %6983 = vmatpush3.bf16.msra.mxu0 %v7424_v19  ;;  %6986 = vmatprep.mubr.msk.bf16.mxu0 %vm8353_vm10, %v8352_v48 }
0x1bf2   : > { %6984 = vmatprep.subr.bf16.mxu0 %v8352_v48 }
0x1bf5   : > { %6985 = vmatpush3.bf16.msra.mxu0 %v7426_v1 }
0x1bf6   : > { %6998 = vmatprep.subr.mxu0 %v8352_v48 }
0x1bf8   : > { %6987 = vmatmul.mubr.msk.bf16.vlgmr.msra.gmra.mrb[28].mxu0 %vm1976_vm4, %v9800_v43 }
0x1bf9   : > { %7000 = vmatprep.mubr.msk.f32.mxu0 %vm8353_vm10, %v8352_v48 }
0x1cc3   : > { %v5425_v9 = vpop.f32.mrb[24].mxu0 }
0x1cc4   : > { %v5426_v55 = vadd.f32 %v6470_v32, %v5425_v9  ;;  %v6972_v60 = vpop.f32.mrb[25].mxu0 }
0x1cc5   : > { %v5428_v61 = vpop.f32.mrb[26].mxu0 }
0x1cc6   : > { %v5547_v62 = vpack.c.bf16 %v5426_v55, %v5426_v55  ;;  %v6973_v13 = vpop.f32.mrb[27].mxu0 }
0x1cc8   : > { %6995 = vmatmul.mubr.msk.bf16.vlgmr.msra.gmra.mrb[28].mxu1 %vm1976_vm4, %v5547_v62  ;;  %vm5752_vm4 = vcmask 254976  }
0x1ccb   : > { %v5537_v43 = vpop.f32.mrb[28].mxu0 }
0x1ccc   : > { %v5538_v35 = vadd.f32 %v5537_v43, %v5485_v54  ;;  %v6988_v25 = vpop.f32.mrb[29].mxu0 }
0x1ccd   : > { %v5540_v48 = vpop.f32.mrb[30].mxu0 }
0x1cce   : > { %v6989_v21 = vpop.f32.mrb[31].mxu0 }
0x1d9b   : > { %v5597_v37 = vpop.f32.mrb[28].mxu1 }
0x1d9c   : > { %v5603_v50 = vadd.f32 %v5597_v37, %v5538_v35  ;;  %v6996_v40 = vpop.f32.mrb[29].mxu1 }
0x1d9d   : > { %v5600_v34 = vpop.f32.mrb[30].mxu1 }
0x1d9e   : > { %v5611_v20 = vadd.f32 %v6483_v4, %v5603_v50  ;;  %v6997_v57 = vpop.f32.mrb[31].mxu1 }
0x1da0   : > { %v5612_v58 = vadd.f32 %v5611_v20, %v9221_v3  ;;  %v6485_v3 = vld [vmem:[%s10190_s13] ss:$0 sm:$0xff] }
0x1da2   : > { %v5616_v39 = vsel %vm5615_vm2, %v5612_v58, 0.0 }
0x1da3   : > { %5617 = vadd.xlane.f32.xlu0 %v5616_v39 }
0x1dd0   : > { %5643 = vxpose.xlu0.b32.start.end [1/1] (short) (narrow) %v9217_v2, 8 }
0x1e30   : > { %v5618_v26 = vpop.xlane.xlu0 %5617 }
0x1e31   : > { %v5619_v41 = vmul.f32 0.03125, %v5618_v26 }
0x1e33   : > { %v5620_v56 = vsub.f32 %v5612_v58, %v5619_v41 }
0x1e35   : > { %v5621_v46 = vmul.f32 %v5620_v56, %v5620_v56 }
0x1e37   : > { %v5622_v7 = vsel %vm5615_vm2, %v5621_v46, 0.0 }
0x1e38   : > { %5623 = vadd.xlane.f32.xlu1 %v5622_v7 }
0x1e50   : > { %v5659_v63 = vpop.trf.xlu0 }
0x1ec5   : > { %v5624_v8 = vpop.xlane.xlu1 %5623 }
0x1ec6   : > { %v5625_v11 = vmul.f32 0.03125, %v5624_v8 }
0x1ec8   : > { %v5626_v16 = vadd.f32 1e-05, %v5625_v11 }
0x1eca   : > { %7449 = vrsqrt.f32 %v5626_v16 }
0x1ed4   : > { %v7450_v45 = vpop.eup %7449 }
0x1ed5   : > { %v5628_v38 = vmul.f32 %v7450_v45, %v5620_v56 }
0x1ed7   : > { %v5635_v42 = vmul.f32 %v6484_v59, %v5628_v38 }
0x1ed9   : > { %v5642_v10 = vadd.f32 %v6485_v3, %v5635_v42 }
0x1edb   : > { %6999 = vmatpush3.msk.msra.mxu0 %vm2428_vm6, %v5642_v10 }
0x1edc   : > { %7001 = vmatmul.mubr.msk.f32.vlgmr.msra.gmra.mrb[32].mxu0 %vm5675_vm3, %v5659_v63 }
0x1faf   : > { %v5748_v2 = vpop.f32.mrb[32].mxu0 }
0x1fb0   : > { %5753 = vst.msk [vmem:[%s9225_s3] sm:$0x3] %vm5752_vm4, %v5748_v2  ;;  %v7002_v18 = vpop.f32.mrb[33].mxu0 }
0x1fb1 PF: > { %s10191_s12 = sld [smem:[#allocation83_spill]]  ;;  %s10192_s19 = sld [smem:[#allocation79_spill]] }
0x1fb2   : > { %s10193_s25 = sld [smem:[#allocation89_spill]]  ;;  %s5773_s18 = sshll.u32 %s9223_s23, 4  ;;  %s9907_s18 = int_to_ptr.vmem [resolvable:$true] %s5773_s18 }
0x1fb3   : > { %s5755_s8 = scalar_lea.sflag [#allocation4], %s9140_s6  ;;  %s8095_s17 = scalar_lea.vmem %s9907_s18, 512 }
0x1fb4   : > { %p8096_p7 = scmp.ne.s32.totalorder %s9907_s18, %s8095_s17  ;;  %s8360_s15 = smov [#allocation32]  }
0x1fb5   : > { %s8099_s22 = sshll.u32 %s8360_s15, 4  ;;  %s8100_s22 = int_to_ptr.vmem [resolvable:$false] %s8099_s22 }
0x1fb6   : > { %s8101_s1 = scalar_lea.vmem %s8100_s22, 1024  ;;  %p8102_p11 = scmp.lt.s32.totalorder %s9907_s18, %s8100_s22 }
0x1fb7   : > { %s6502_s4 = sshll.u32 %s10191_s12, 9  ;;  %p8103_p0 = scmp.lt.s32.totalorder %s8101_s1, %s8095_s17 }
0x1fb8   : > { %s9904_s7 = scalar_lea.hbm %s10192_s19, %s6502_s4  ;;  %p10194_p12 = scmp.ne.s32.totalorder %s10193_s25, 0 }
0x1fb9   : > { %p8104_p1 = por %p8103_p0, %p8102_p11 }
0x1fba   : > { %p8097_p10 = pnand %p8096_p7, %p10194_p12 }
0x1fbc   : > { %p8098_p13 = pneg %p8097_p10 }
0x1fbe   : > { %p8105_p4 = pnand %p8104_p1, %p8098_p13 }
0x1fc0   : > { %8108 = shalt.err (!%p8105_p4)
}
0x1fc1   : > { %s8109_s23 = scalar_lea.hbm %s9904_s7, 512  ;;  %s8113_s14 = scalar_lea.hbm %s10192_s19, 1024 }
0x1fc2   : > { %p8110_p3 = scmp.ne.s32.totalorder %s9904_s7, %s8109_s23  ;;  %p8114_p2 = scmp.lt.u32.totalorder %s9904_s7, %s10192_s19 }
0x1fc3   : > { %p8115_p5 = scmp.lt.u32.totalorder %s8113_s14, %s8109_s23  ;;  %p8117_p7 = scmp.lt.u32.totalorder %s8109_s23, %s9904_s7 }
0x1fc4   : > { %p8111_p9 = pnand %p8110_p3, %p10194_p12 }
0x1fc5   : > { %p8116_p6 = por %p8115_p5, %p8114_p2 }
0x1fc6   : > { %p8112_p8 = pneg %p8111_p9 }
0x1fc7   : > { %p8118_p10 = por %p8117_p7, %p8116_p6 }
0x1fc9   : > { %p8119_p13 = pnand %p8118_p10, %p8112_p8 }
0x1fcb   : > { %8122 = shalt.err (!%p8119_p13)
}
0x1fcc   : > { %s8361_s21 = smov 128   ;;  %s10195_s20 = sld [smem:[#allocation80_spill]] }
0x1fcd   : > { %7067 = dma.vmem_to_hbm [thread:$0]  (%p10194_p12), %s9907_s18, 512, %s9904_s7, %s5755_s8, %s8361_s21, %s8361_s21, %s8349_s9  }
0x1fce   : > { %s6492_s13 = sshll.u32 %s10191_s12, 5  ;;  %s5789_s17 = sshll.u32 %s9225_s3, 4  ;;  %s5790_s17 = int_to_ptr.vmem [resolvable:$true] %s5789_s17 }
0x1fcf   : > { %s5760_s15 = scalar_lea.sflag [#allocation34], %s9140_s6  ;;  %s8123_s22 = scalar_lea.vmem %s5790_s17, 32 }
0x1fd0   : > { %p8124_p11 = scmp.ne.s32.totalorder %s5790_s17, %s8123_s22  ;;  %s8362_s1 = smov [#allocation33]  }
0x1fd1   : > { %s8127_s23 = sshll.u32 %s8362_s1, 4  ;;  %s8128_s23 = int_to_ptr.vmem [resolvable:$false] %s8127_s23 }
0x1fd2   : > { %s9932_s4 = scalar_lea.hbm %s10195_s20, %s6492_s13  ;;  %p8125_p0 = pnand %p8124_p11, %p10194_p12 }
0x1fd3   : > { %s8129_s14 = scalar_lea.vmem %s8128_s23, 64  ;;  %p8130_p4 = scmp.lt.s32.totalorder %s5790_s17, %s8128_s23 }
0x1fd4   : > { %p8126_p1 = pneg %p8125_p0  ;;  %p8131_p3 = scmp.lt.s32.totalorder %s8129_s14, %s8123_s22 }
0x1fd6   : > { %p8132_p9 = por %p8131_p3, %p8130_p4 }
0x1fd8   : > { %p8133_p8 = pnand %p8132_p9, %p8126_p1 }
0x1fda   : > { %8136 = shalt.err (!%p8133_p8)
}
0x1fdb   : > { %s8137_s6 = scalar_lea.hbm %s9932_s4, 32  ;;  %s8141_s3 = scalar_lea.hbm %s10195_s20, 64 }
0x1fdc   : > { %p8138_p2 = scmp.ne.s32.totalorder %s9932_s4, %s8137_s6  ;;  %p8142_p7 = scmp.lt.u32.totalorder %s9932_s4, %s10195_s20 }
0x1fdd   : > { %p8143_p10 = scmp.lt.u32.totalorder %s8141_s3, %s8137_s6  ;;  %p8145_p11 = scmp.lt.u32.totalorder %s8137_s6, %s9932_s4 }
0x1fde   : > { %p8139_p5 = pnand %p8138_p2, %p10194_p12 }
0x1fdf   : > { %p8144_p13 = por %p8143_p10, %p8142_p7 }
0x1fe0   : > { %p8140_p6 = pneg %p8139_p5 }
0x1fe1   : > { %p8146_p0 = por %p8145_p11, %p8144_p13 }
0x1fe3   : > { %p8147_p1 = pnand %p8146_p0, %p8140_p6 }
0x1fe5   : > { %8150 = shalt.err (!%p8147_p1)
}
0x1fe6   : > { %7068 = dma.vmem_to_hbm [thread:$0]  (%p10194_p12), %s5790_s17, 32, %s9932_s4, %s5760_s15  }
0x1fe7 PF: > { %s10196_s9 = sld [smem:[#allocation81_spill]]  ;;  %s10197_s12 = sld [smem:[#allocation90_spill]] }
0x1fe8   : > { %p7124_p4 = scmp.ge.s32.totalorder %s8277_s28, 2 }
0x1fed   : > { %s5801_s7 = sand.u32 1, %s10196_s9   ;;  %p10198_p3 = scmp.ne.s32.totalorder %s10197_s12, 0 }
0x1fee   : > { %s5802_s18 = scalar_lea.sflag [#allocation4], %s5801_s7 }
0x1fef   : > { %p7100_p9 = pnand %p7124_p4, %p10198_p3 }
0x1ff1   : > { %8228 = dma.done.wait (!%p7100_p9), %s5802_s18, 512  }
0x1ff2   : > { %8230 = vsyncadd (!%p7100_p9), %s5802_s18, 4294966784  ;;  %s5811_s8 = scalar_lea.sflag [#allocation34], %s5801_s7 }
0x1ff3   : > { %8232 = dma.done.wait (!%p7100_p9), %s5811_s8, 32  }
0x1ff4   : > { %8234 = vsyncadd (!%p7100_p9), %s5811_s8, 4294967264  ;;  %s100_s28 = sadd.s32 1, %s8277_s28   ;;  %s10199_s25 = sld [smem:[#allocation87_spill]] }
0x1ff5   : > { %p97_p8 = scmp.ge.s32.totalorder %s100_s28, 6   ;;  %s10200_s21 = sld [smem:[#allocation88_spill]] }
0x1ff6   : > { %s10201_s18 = sld [smem:[#allocation84_spill]]  ;;  %s10202_s23 = sld [smem:[#allocation85_spill]] }
0x1ff7   : > { %s10203_s13 = sld [smem:[#allocation86_spill]]  ;;  %s10204_s7 = smov %s8241_s10 }
0x1ff8   : > { %s10205_s10 = smov %s8245_s11  ;;  %s10207_s15 = smov %s8253_s0 }
0x1ff9   : > { %s10208_s0 = smov %s8257_s16  ;;  %s10210_s22 = smov %s8273_s26 }
0x1ffa   : > { %s10206_s11 = smov %s10199_s25  ;;  %99 = sbr.rel (!%p97_p8) target bundleno = 95 (0x5f), region = 465 }
0x1ffb   : > { %s10209_s16 = smov %s10200_s21 }
0x1ffd   : > { %s10211_s26 = smov %s10203_s13 }
0x2001   :  { %5816 = vsyncpa [#allocation3], 1 }
0x2002   :  { %5818 = vsyncpa [#allocation3 + $0x1], 1 }
0x2003   :  { %5819 = vsyncpa [#allocation6], 1 }
0x2004   :  { %5820 = vsyncpa [#allocation22], 1 }
0x2005   :  { %5821 = vsyncpa [#allocation25], 1 }
0x2006   :  { %5822 = vsyncpa [#allocation28], 1 }
0x2007   :  { %5823 = vsyncpa [#allocation31], 1 }
0x2008   :  { %5824 = vsyncpa [#allocation4], 1 }
0x2009   :  { %5826 = vsyncpa [#allocation4 + $0x1], 1 }
0x200a   :  { %5827 = vsyncpa [#allocation34], 1 }
0x200b   :  { %5829 = vsyncpa [#allocation34 + $0x1], 1 }

</bundles_post_ra>
